<compile_context>
chip_gen: v6e
topology: v6e:2x2x1
jax: 0.10.0
libtpu: 0.0.40
codegen_flags: <defaults>
</compile_context>

<pallas_src>
import jax
import jax.numpy as jnp
from jax.experimental import pallas as pl
from jax.experimental.pallas import tpu as pltpu

# ----- model hyper-parameters (match nn.Module __init__ shapes) -----
INPUT_DIM = 512        # ResNet18 feature width
LATENT_DIM = 64
NUM_HEADS = 8          # latent_dim * num_heads == 512
MAX_LANES = 4
MAX_POINTS = 32        # forward hard-codes view(..., 32, 2)
OUT_DIM = MAX_LANES * MAX_POINTS * 2   # 256
HD = NUM_HEADS * LATENT_DIM            # 512

# example-input geometry (small, per instructions)
B = 16
C, H_IMG, W_IMG = 3, 16, 16
FLAT_IN = C * H_IMG * W_IMG            # 768

MAX_BATCH_TILE = 256                   # cap on rows per grid step if B grows


def _round_up(v, m):
    return ((v + m - 1) // m) * m


def lane_kernel(x_ref, seg_ref, segt_ref,
                wb_ref, bb_ref,
                wqkv_ref, bqkv_ref,
                wo_ref, bo_ref,
                w1_ref, b1_ref,
                w2_ref, b2_ref,
                out_ref):
    f32 = jnp.float32
    bf16 = jnp.bfloat16

    x = x_ref[...]                                                   # (TM, C*H*W) bf16

    # --- stand-in backbone: Linear + ReLU -> (TM, INPUT_DIM) features ---
    feats = jnp.dot(x, wb_ref[...],
                    preferred_element_type=f32) + bb_ref[...]
    feats = jnp.maximum(feats, 0.0)

    # --- MLA: fused QKV projection (one MXU push, N = 3*H*D) ---
    qkv = jnp.dot(feats.astype(bf16), wqkv_ref[...],
                  preferred_element_type=f32) + bqkv_ref[...]        # (TM, 3*HD)
    q = qkv[:, 0 * HD:1 * HD]
    k = qkv[:, 1 * HD:2 * HD]
    v = qkv[:, 2 * HD:3 * HD]

    # scores[b, h] = sum_d Q[b,h,d] * K[b,h,d] / sqrt(D)
    # seg:  (HD, H) 0/1 indicator, seg_t: (H, HD) 0/1 indicator (bf16 constants)
    scores = jnp.dot((q * k).astype(bf16), seg_ref[...],
                     preferred_element_type=f32) * (1.0 / (LATENT_DIM ** 0.5))  # (TM, H)

    # softmax over heads (f32, EUP reciprocal)
    m = jnp.max(scores, axis=-1, keepdims=True)
    e = jnp.exp(scores - m)
    attn = e * pl.reciprocal(jnp.sum(e, axis=-1, keepdims=True), approx=True)   # (TM, H)

    # attended[b, h, d] = attn[b, h] * V[b, h, d]  (kept flat as (TM, HD))
    attn_full = jnp.dot(attn.astype(bf16), segt_ref[...],
                        preferred_element_type=f32)                              # (TM, HD)
    attended = attn_full * v

    mla_out = jnp.dot(attended.astype(bf16), wo_ref[...],
                      preferred_element_type=f32) + bo_ref[...]                  # (TM, INPUT_DIM)

    # --- head: fc1 + ReLU, fc2 ---
    h1 = jnp.maximum(
        jnp.dot(mla_out.astype(bf16), w1_ref[...],
                preferred_element_type=f32) + b1_ref[...], 0.0)                  # (TM, 1024)
    out = jnp.dot(h1.astype(bf16), w2_ref[...],
                  preferred_element_type=f32) + b2_ref[...]                      # (TM, OUT_DIM)

    out_ref[...] = out


def _const_spec(shape, multi_step):
    """Whole-array block, resident across the grid.

    In the multi-step path constant blocks are single-buffered so resident
    weights are not double-buffered per grid step.
    """
    idx = lambda i: (0,) * len(shape)
    if multi_step:
        return pl.BlockSpec(shape, idx, pipeline_mode=pl.Buffered(1))
    return pl.BlockSpec(shape, idx)


def lane_detection_forward(x_nchw, params, *, batch_tile=None):
    b = x_nchw.shape[0]
    # NCHW -> (B, C*H*W), pre-cast to bf16 (halves input DMA; MXU acc stays f32)
    x_flat = x_nchw.reshape(b, -1).astype(jnp.bfloat16)
    flat_in = x_flat.shape[1]

    # Collapse the grid: one batch tile covering the whole (padded) batch for
    # small B; fall back to 256-row tiles only if the batch is large.
    if batch_tile is None:
        batch_tile = min(_round_up(max(b, 16), 16), MAX_BATCH_TILE)

    pb = _round_up(b, batch_tile)
    if pb != b:
        x_flat = jnp.pad(x_flat, ((0, pb - b), (0, 0)))

    num_tiles = pb // batch_tile
    multi_step = num_tiles > 1

    # hoisted per-head segment-indicator matrices (exact 0/1, tiny, bf16)
    head_of = jnp.arange(HD, dtype=jnp.int32) // LATENT_DIM
    seg = (head_of[:, None] ==
           jnp.arange(NUM_HEADS, dtype=jnp.int32)[None, :]).astype(jnp.bfloat16)  # (HD, H)
    seg_t = seg.T                                                                  # (H, HD)

    wb, bb, wqkv, bqkv, wo, bo, w1, b1, w2, b2 = params
    args = (x_flat, seg, seg_t, wb, bb, wqkv, bqkv, wo, bo, w1, b1, w2, b2)

    # Only shard across TensorCores when there are enough tiles per core.
    semantics = ("parallel",) if num_tiles >= 4 else ("arbitrary",)

    out = pl.pallas_call(
        lane_kernel,
        out_shape=jax.ShapeDtypeStruct((pb, OUT_DIM), jnp.float32),
        grid=(num_tiles,),
        in_specs=[
            pl.BlockSpec((batch_tile, flat_in), lambda i: (i, 0)),   # x batch tile
            _const_spec(seg.shape, multi_step), _const_spec(seg_t.shape, multi_step),
            _const_spec(wb.shape, multi_step), _const_spec(bb.shape, multi_step),
            _const_spec(wqkv.shape, multi_step), _const_spec(bqkv.shape, multi_step),
            _const_spec(wo.shape, multi_step), _const_spec(bo.shape, multi_step),
            _const_spec(w1.shape, multi_step), _const_spec(b1.shape, multi_step),
            _const_spec(w2.shape, multi_step), _const_spec(b2.shape, multi_step),
        ],
        out_specs=pl.BlockSpec((batch_tile, OUT_DIM), lambda i: (i, 0)),
        compiler_params=pltpu.CompilerParams(
            dimension_semantics=semantics,
            vmem_limit_bytes=32 * 1024 * 1024,       # headroom above v5e's 16 MiB default
        ),
    )(*args)

    out = out[:b]
    return out.reshape(b, -1, MAX_POINTS, 2)          # output.view(B, -1, 32, 2)


def init_params(key):
    """Deterministic synthetic parameters. Weights bf16 (MXU-native), biases f32.
    PyTorch Linear weights stored transposed as (in, out)."""
    def linear(k, fan_in, fan_out):
        kw, kb = jax.random.split(k)
        w = (jax.random.normal(kw, (fan_in, fan_out), jnp.float32)
             / jnp.sqrt(float(fan_in))).astype(jnp.bfloat16)
        bias = jax.random.normal(kb, (1, fan_out), jnp.float32) * 0.01
        return w, bias

    keys = jax.random.split(key, 7)
    wb, bb = linear(keys[0], FLAT_IN, INPUT_DIM)            # backbone stand-in
    wq, bq = linear(keys[1], INPUT_DIM, HD)                 # MLA query
    wk, bk = linear(keys[2], INPUT_DIM, HD)                 # MLA key
    wv, bv = linear(keys[3], INPUT_DIM, HD)                 # MLA value
    wqkv = jnp.concatenate([wq, wk, wv], axis=1)            # fused (512, 1536)
    bqkv = jnp.concatenate([bq, bk, bv], axis=1)            # (1, 1536)
    wo, bo = linear(keys[4], HD, INPUT_DIM)                 # MLA output
    w1, b1 = linear(keys[5], INPUT_DIM, 1024)               # fc1
    w2, b2 = linear(keys[6], 1024, OUT_DIM)                 # fc2
    return (wb, bb, wqkv, bqkv, wo, bo, w1, b1, w2, b2)


def reference_forward(x_nchw, params):
    """Pure-JAX f32 reference (same bf16 weights upcast) for a tolerance check."""
    wb, bb, wqkv, bqkv, wo, bo, w1, b1, w2, b2 = [
        p.astype(jnp.float32) for p in params]
    b = x_nchw.shape[0]
    x = x_nchw.reshape(b, -1).astype(jnp.float32)
    feats = jnp.maximum(x @ wb + bb, 0.0)
    qkv = feats @ wqkv + bqkv
    q, k, v = qkv[:, :HD], qkv[:, HD:2 * HD], qkv[:, 2 * HD:]
    qh = q.reshape(b, NUM_HEADS, LATENT_DIM)
    kh = k.reshape(b, NUM_HEADS, LATENT_DIM)
    vh = v.reshape(b, NUM_HEADS, LATENT_DIM)
    scores = jnp.einsum('bhd,bhd->bh', qh, kh) / (LATENT_DIM ** 0.5)
    attn = jax.nn.softmax(scores, axis=-1)
    attended = (attn[:, :, None] * vh).reshape(b, -1)
    mla_out = attended @ wo + bo
    h1 = jnp.maximum(mla_out @ w1 + b1, 0.0)
    out = h1 @ w2 + b2
    return out.reshape(b, -1, MAX_POINTS, 2)


if __name__ == "__main__":
    root = jax.random.PRNGKey(0)
    kx, kp = jax.random.split(root)
    x = jax.random.normal(kx, (B, C, H_IMG, W_IMG), jnp.float32)
    params = init_params(kp)

    out = lane_detection_forward(x, params)
    out = jax.block_until_ready(out)

    assert out.shape == (B, MAX_LANES, MAX_POINTS, 2), out.shape
    assert out.dtype == jnp.float32

    ref = reference_forward(x, params)
    rel_err = jnp.linalg.norm(out - ref) / (jnp.linalg.norm(ref) + 1e-6)
    assert float(rel_err) < 0.08, f"relative error too large: {float(rel_err)}"

    print("KERNEL_OK")
</pallas_src>

<mosaic_0001>
module attributes {stable_mosaic.version = 11 : i64} {
  func.func @lane_kernel(%arg0: i32, %arg1: memref<16x768xbf16, #tpu.memory_space<vmem>>, %arg2: memref<512x8xbf16, #tpu.memory_space<vmem>>, %arg3: memref<8x512xbf16, #tpu.memory_space<vmem>>, %arg4: memref<768x512xbf16, #tpu.memory_space<vmem>>, %arg5: memref<1x512xf32, #tpu.memory_space<vmem>>, %arg6: memref<512x1536xbf16, #tpu.memory_space<vmem>>, %arg7: memref<1x1536xf32, #tpu.memory_space<vmem>>, %arg8: memref<512x512xbf16, #tpu.memory_space<vmem>>, %arg9: memref<1x512xf32, #tpu.memory_space<vmem>>, %arg10: memref<512x1024xbf16, #tpu.memory_space<vmem>>, %arg11: memref<1x1024xf32, #tpu.memory_space<vmem>>, %arg12: memref<1024x256xbf16, #tpu.memory_space<vmem>>, %arg13: memref<1x256xf32, #tpu.memory_space<vmem>>, %arg14: memref<16x256xf32, #tpu.memory_space<vmem>>) attributes {dimension_semantics = [#tpu.dimension_semantics<arbitrary>], iteration_bounds = array<i64: 1>, scalar_prefetch = 0 : i64, scratch_operands = 0 : i64, tpu.core_type = #tpu.core_type<tc>, window_params = [{transform_indices = @transform_0, window_bounds = array<i64: 16, 768>}, {pipeline_mode = #tpu.pipeline_mode<synchronous>, transform_indices = @transform_1, window_bounds = array<i64: 512, 8>}, {pipeline_mode = #tpu.pipeline_mode<synchronous>, transform_indices = @transform_2, window_bounds = array<i64: 8, 512>}, {pipeline_mode = #tpu.pipeline_mode<synchronous>, transform_indices = @transform_3, window_bounds = array<i64: 768, 512>}, {pipeline_mode = #tpu.pipeline_mode<synchronous>, transform_indices = @transform_4, window_bounds = array<i64: 1, 512>}, {pipeline_mode = #tpu.pipeline_mode<synchronous>, transform_indices = @transform_5, window_bounds = array<i64: 512, 1536>}, {pipeline_mode = #tpu.pipeline_mode<synchronous>, transform_indices = @transform_6, window_bounds = array<i64: 1, 1536>}, {pipeline_mode = #tpu.pipeline_mode<synchronous>, transform_indices = @transform_7, window_bounds = array<i64: 512, 512>}, {pipeline_mode = #tpu.pipeline_mode<synchronous>, transform_indices = @transform_8, window_bounds = array<i64: 1, 512>}, {pipeline_mode = #tpu.pipeline_mode<synchronous>, transform_indices = @transform_9, window_bounds = array<i64: 512, 1024>}, {pipeline_mode = #tpu.pipeline_mode<synchronous>, transform_indices = @transform_10, window_bounds = array<i64: 1, 1024>}, {pipeline_mode = #tpu.pipeline_mode<synchronous>, transform_indices = @transform_11, window_bounds = array<i64: 1024, 256>}, {pipeline_mode = #tpu.pipeline_mode<synchronous>, transform_indices = @transform_12, window_bounds = array<i64: 1, 256>}, {transform_indices = @transform_13, window_bounds = array<i64: 16, 256>}]} {
    %c0 = arith.constant 0 : index
    %c0_0 = arith.constant 0 : index
    %0 = vector.load %arg1[%c0, %c0_0] : memref<16x768xbf16, #tpu.memory_space<vmem>>, vector<16x768xbf16>
    %c0_1 = arith.constant 0 : index
    %c0_2 = arith.constant 0 : index
    %1 = vector.load %arg4[%c0_1, %c0_2] : memref<768x512xbf16, #tpu.memory_space<vmem>>, vector<768x512xbf16>
    %cst = arith.constant dense<0.000000e+00> : vector<16x512xf32>
    %2 = tpu.matmul %0, %1, %cst {dimension_numbers = #tpu.dot_dimension_numbers<[1], [0], [0], [1], [0, 0, 1, 1], [], []>} : vector<16x768xbf16>, vector<768x512xbf16>, vector<16x512xf32> -> vector<16x512xf32>
    %c0_3 = arith.constant 0 : index
    %c0_4 = arith.constant 0 : index
    %3 = vector.load %arg5[%c0_3, %c0_4] : memref<1x512xf32, #tpu.memory_space<vmem>>, vector<1x512xf32>
    %4 = vector.broadcast %3 : vector<1x512xf32> to vector<16x512xf32>
    %5 = arith.addf %2, %4 : vector<16x512xf32>
    %cst_5 = arith.constant 0.000000e+00 : f32
    %6 = vector.broadcast %cst_5 : f32 to vector<16x512xf32>
    %7 = arith.maximumf %5, %6 : vector<16x512xf32>
    %8 = arith.truncf %7 : vector<16x512xf32> to vector<16x512xbf16>
    %c0_6 = arith.constant 0 : index
    %c0_7 = arith.constant 0 : index
    %9 = vector.load %arg6[%c0_6, %c0_7] : memref<512x1536xbf16, #tpu.memory_space<vmem>>, vector<512x1536xbf16>
    %cst_8 = arith.constant dense<0.000000e+00> : vector<16x1536xf32>
    %10 = tpu.matmul %8, %9, %cst_8 {dimension_numbers = #tpu.dot_dimension_numbers<[1], [0], [0], [1], [0, 0, 1, 1], [], []>} : vector<16x512xbf16>, vector<512x1536xbf16>, vector<16x1536xf32> -> vector<16x1536xf32>
    %c0_9 = arith.constant 0 : index
    %c0_10 = arith.constant 0 : index
    %11 = vector.load %arg7[%c0_9, %c0_10] : memref<1x1536xf32, #tpu.memory_space<vmem>>, vector<1x1536xf32>
    %12 = vector.broadcast %11 : vector<1x1536xf32> to vector<16x1536xf32>
    %13 = arith.addf %10, %12 : vector<16x1536xf32>
    %14 = vector.extract_strided_slice %13 {offsets = [0, 0], sizes = [16, 512], strides = [1, 1]} : vector<16x1536xf32> to vector<16x512xf32>
    %15 = vector.extract_strided_slice %13 {offsets = [0, 512], sizes = [16, 512], strides = [1, 1]} : vector<16x1536xf32> to vector<16x512xf32>
    %16 = vector.extract_strided_slice %13 {offsets = [0, 1024], sizes = [16, 512], strides = [1, 1]} : vector<16x1536xf32> to vector<16x512xf32>
    %17 = arith.mulf %14, %15 : vector<16x512xf32>
    %18 = arith.truncf %17 : vector<16x512xf32> to vector<16x512xbf16>
    %c0_11 = arith.constant 0 : index
    %c0_12 = arith.constant 0 : index
    %19 = vector.load %arg2[%c0_11, %c0_12] : memref<512x8xbf16, #tpu.memory_space<vmem>>, vector<512x8xbf16>
    %cst_13 = arith.constant dense<0.000000e+00> : vector<16x8xf32>
    %20 = tpu.matmul %18, %19, %cst_13 {dimension_numbers = #tpu.dot_dimension_numbers<[1], [0], [0], [1], [0, 0, 1, 1], [], []>} : vector<16x512xbf16>, vector<512x8xbf16>, vector<16x8xf32> -> vector<16x8xf32>
    %cst_14 = arith.constant 1.250000e-01 : f32
    %21 = vector.broadcast %cst_14 : f32 to vector<16x8xf32>
    %22 = arith.mulf %20, %21 : vector<16x8xf32>
    %cst_15 = arith.constant dense<0xFF800000> : vector<16xf32>
    %23 = vector.multi_reduction <maximumf>, %22, %cst_15 [1] : vector<16x8xf32> to vector<16xf32>
    %24 = vector.shape_cast %23 : vector<16xf32> to vector<16x1xf32>
    %25 = vector.broadcast %24 : vector<16x1xf32> to vector<16x8xf32>
    %26 = arith.subf %22, %25 : vector<16x8xf32>
    %27 = math.exp %26 : vector<16x8xf32>
    %cst_16 = arith.constant dense<0.000000e+00> : vector<16xf32>
    %28 = vector.multi_reduction <add>, %27, %cst_16 [1] : vector<16x8xf32> to vector<16xf32>
    %29 = vector.shape_cast %28 : vector<16xf32> to vector<16x1xf32>
    %30 = tpu.reciprocal %29 {approx = true} : vector<16x1xf32> -> vector<16x1xf32>
    %31 = vector.broadcast %30 : vector<16x1xf32> to vector<16x8xf32>
    %32 = arith.mulf %27, %31 : vector<16x8xf32>
    %33 = arith.truncf %32 : vector<16x8xf32> to vector<16x8xbf16>
    %c0_17 = arith.constant 0 : index
    %c0_18 = arith.constant 0 : index
    %34 = vector.load %arg3[%c0_17, %c0_18] : memref<8x512xbf16, #tpu.memory_space<vmem>>, vector<8x512xbf16>
    %cst_19 = arith.constant dense<0.000000e+00> : vector<16x512xf32>
    %35 = tpu.matmul %33, %34, %cst_19 {dimension_numbers = #tpu.dot_dimension_numbers<[1], [0], [0], [1], [0, 0, 1, 1], [], []>} : vector<16x8xbf16>, vector<8x512xbf16>, vector<16x512xf32> -> vector<16x512xf32>
    %36 = arith.mulf %35, %16 : vector<16x512xf32>
    %37 = arith.truncf %36 : vector<16x512xf32> to vector<16x512xbf16>
    %c0_20 = arith.constant 0 : index
    %c0_21 = arith.constant 0 : index
    %38 = vector.load %arg8[%c0_20, %c0_21] : memref<512x512xbf16, #tpu.memory_space<vmem>>, vector<512x512xbf16>
    %cst_22 = arith.constant dense<0.000000e+00> : vector<16x512xf32>
    %39 = tpu.matmul %37, %38, %cst_22 {dimension_numbers = #tpu.dot_dimension_numbers<[1], [0], [0], [1], [0, 0, 1, 1], [], []>} : vector<16x512xbf16>, vector<512x512xbf16>, vector<16x512xf32> -> vector<16x512xf32>
    %c0_23 = arith.constant 0 : index
    %c0_24 = arith.constant 0 : index
    %40 = vector.load %arg9[%c0_23, %c0_24] : memref<1x512xf32, #tpu.memory_space<vmem>>, vector<1x512xf32>
    %41 = vector.broadcast %40 : vector<1x512xf32> to vector<16x512xf32>
    %42 = arith.addf %39, %41 : vector<16x512xf32>
    %43 = arith.truncf %42 : vector<16x512xf32> to vector<16x512xbf16>
    %c0_25 = arith.constant 0 : index
    %c0_26 = arith.constant 0 : index
    %44 = vector.load %arg10[%c0_25, %c0_26] : memref<512x1024xbf16, #tpu.memory_space<vmem>>, vector<512x1024xbf16>
    %cst_27 = arith.constant dense<0.000000e+00> : vector<16x1024xf32>
    %45 = tpu.matmul %43, %44, %cst_27 {dimension_numbers = #tpu.dot_dimension_numbers<[1], [0], [0], [1], [0, 0, 1, 1], [], []>} : vector<16x512xbf16>, vector<512x1024xbf16>, vector<16x1024xf32> -> vector<16x1024xf32>
    %c0_28 = arith.constant 0 : index
    %c0_29 = arith.constant 0 : index
    %46 = vector.load %arg11[%c0_28, %c0_29] : memref<1x1024xf32, #tpu.memory_space<vmem>>, vector<1x1024xf32>
    %47 = vector.broadcast %46 : vector<1x1024xf32> to vector<16x1024xf32>
    %48 = arith.addf %45, %47 : vector<16x1024xf32>
    %cst_30 = arith.constant 0.000000e+00 : f32
    %49 = vector.broadcast %cst_30 : f32 to vector<16x1024xf32>
    %50 = arith.maximumf %48, %49 : vector<16x1024xf32>
    %51 = arith.truncf %50 : vector<16x1024xf32> to vector<16x1024xbf16>
    %c0_31 = arith.constant 0 : index
    %c0_32 = arith.constant 0 : index
    %52 = vector.load %arg12[%c0_31, %c0_32] : memref<1024x256xbf16, #tpu.memory_space<vmem>>, vector<1024x256xbf16>
    %cst_33 = arith.constant dense<0.000000e+00> : vector<16x256xf32>
    %53 = tpu.matmul %51, %52, %cst_33 {dimension_numbers = #tpu.dot_dimension_numbers<[1], [0], [0], [1], [0, 0, 1, 1], [], []>} : vector<16x1024xbf16>, vector<1024x256xbf16>, vector<16x256xf32> -> vector<16x256xf32>
    %c0_34 = arith.constant 0 : index
    %c0_35 = arith.constant 0 : index
    %54 = vector.load %arg13[%c0_34, %c0_35] : memref<1x256xf32, #tpu.memory_space<vmem>>, vector<1x256xf32>
    %55 = vector.broadcast %54 : vector<1x256xf32> to vector<16x256xf32>
    %56 = arith.addf %53, %55 : vector<16x256xf32>
    %c0_36 = arith.constant 0 : index
    %c0_37 = arith.constant 0 : index
    %57 = vector.load %arg14[%c0_36, %c0_37] : memref<16x256xf32, #tpu.memory_space<vmem>>, vector<16x256xf32>
    tpu.vector_store %arg14[%c0_36, %c0_37], %56 {strides = array<i32>} : memref<16x256xf32, #tpu.memory_space<vmem>>, vector<16x256xf32>,
    return
  }
  func.func @transform_0(%arg0: i32) -> (i32, i32) {
    %c0_i32 = arith.constant 0 : i32
    %c0_i32_0 = arith.constant 0 : i32
    return %arg0, %c0_i32 : i32, i32
  }
  func.func @transform_1(%arg0: i32) -> (i32, i32) {
    %c0_i32 = arith.constant 0 : i32
    %c0_i32_0 = arith.constant 0 : i32
    %c0_i32_1 = arith.constant 0 : i32
    return %c0_i32, %c0_i32_0 : i32, i32
  }
  func.func @transform_2(%arg0: i32) -> (i32, i32) {
    %c0_i32 = arith.constant 0 : i32
    %c0_i32_0 = arith.constant 0 : i32
    %c0_i32_1 = arith.constant 0 : i32
    return %c0_i32, %c0_i32_0 : i32, i32
  }
  func.func @transform_3(%arg0: i32) -> (i32, i32) {
    %c0_i32 = arith.constant 0 : i32
    %c0_i32_0 = arith.constant 0 : i32
    %c0_i32_1 = arith.constant 0 : i32
    return %c0_i32, %c0_i32_0 : i32, i32
  }
  func.func @transform_4(%arg0: i32) -> (i32, i32) {
    %c0_i32 = arith.constant 0 : i32
    %c0_i32_0 = arith.constant 0 : i32
    %c0_i32_1 = arith.constant 0 : i32
    return %c0_i32, %c0_i32_0 : i32, i32
  }
  func.func @transform_5(%arg0: i32) -> (i32, i32) {
    %c0_i32 = arith.constant 0 : i32
    %c0_i32_0 = arith.constant 0 : i32
    %c0_i32_1 = arith.constant 0 : i32
    return %c0_i32, %c0_i32_0 : i32, i32
  }
  func.func @transform_6(%arg0: i32) -> (i32, i32) {
    %c0_i32 = arith.constant 0 : i32
    %c0_i32_0 = arith.constant 0 : i32
    %c0_i32_1 = arith.constant 0 : i32
    return %c0_i32, %c0_i32_0 : i32, i32
  }
  func.func @transform_7(%arg0: i32) -> (i32, i32) {
    %c0_i32 = arith.constant 0 : i32
    %c0_i32_0 = arith.constant 0 : i32
    %c0_i32_1 = arith.constant 0 : i32
    return %c0_i32, %c0_i32_0 : i32, i32
  }
  func.func @transform_8(%arg0: i32) -> (i32, i32) {
    %c0_i32 = arith.constant 0 : i32
    %c0_i32_0 = arith.constant 0 : i32
    %c0_i32_1 = arith.constant 0 : i32
    return %c0_i32, %c0_i32_0 : i32, i32
  }
  func.func @transform_9(%arg0: i32) -> (i32, i32) {
    %c0_i32 = arith.constant 0 : i32
    %c0_i32_0 = arith.constant 0 : i32
    %c0_i32_1 = arith.constant 0 : i32
    return %c0_i32, %c0_i32_0 : i32, i32
  }
  func.func @transform_10(%arg0: i32) -> (i32, i32) {
    %c0_i32 = arith.constant 0 : i32
    %c0_i32_0 = arith.constant 0 : i32
    %c0_i32_1 = arith.constant 0 : i32
    return %c0_i32, %c0_i32_0 : i32, i32
  }
  func.func @transform_11(%arg0: i32) -> (i32, i32) {
    %c0_i32 = arith.constant 0 : i32
    %c0_i32_0 = arith.constant 0 : i32
    %c0_i32_1 = arith.constant 0 : i32
    return %c0_i32, %c0_i32_0 : i32, i32
  }
  func.func @transform_12(%arg0: i32) -> (i32, i32) {
    %c0_i32 = arith.constant 0 : i32
    %c0_i32_0 = arith.constant 0 : i32
    %c0_i32_1 = arith.constant 0 : i32
    return %c0_i32, %c0_i32_0 : i32, i32
  }
  func.func @transform_13(%arg0: i32) -> (i32, i32) {
    %c0_i32 = arith.constant 0 : i32
    %c0_i32_0 = arith.constant 0 : i32
    return %arg0, %c0_i32 : i32, i32
  }
}

</mosaic_0001>

<bundles_post_ra>
// kernel: tpu_custom_call.1
= control target key start
LH: loop header
LB: loop body
LE: loop exit
PB: predicated region body
PF: predicated region fallthrough
CT: control target
= control target key end

     0   :  { %18 = vsyncpa [#allocation3], 0  ;;  %s12235_s0 = inlined_call_operand.hbm [shape: bf16[16,768], index: 0, kind: input, shape index: {}]   ;;  %s12236_s1 = inlined_call_operand.vmem [shape: bf16[512,8], index: 1, kind: input, shape index: {}]   ;;  %s12237_s2 = inlined_call_operand.hbm [shape: bf16[8,512], index: 2, kind: input, shape index: {}]   ;;  %s12238_s3 = inlined_call_operand.hbm [shape: bf16[768,512], index: 3, kind: input, shape index: {}]   ;;  %s12239_s4 = inlined_call_operand.hbm [shape: f32[1,512], index: 4, kind: input, shape index: {}]   ;;  %s12240_s5 = inlined_call_operand.hbm [shape: bf16[512,1536], index: 5, kind: input, shape index: {}]   ;;  %s12241_s6 = inlined_call_operand.hbm [shape: f32[1,1536], index: 6, kind: input, shape index: {}]   ;;  %s12242_s7 = inlined_call_operand.hbm [shape: bf16[512,512], index: 7, kind: input, shape index: {}]   ;;  %s12243_s8 = inlined_call_operand.hbm [shape: f32[1,512], index: 8, kind: input, shape index: {}]   ;;  %s12244_s9 = inlined_call_operand.hbm [shape: bf16[512,1024], index: 9, kind: input, shape index: {}]   ;;  %s12245_s10 = inlined_call_operand.hbm [shape: f32[1,1024], index: 10, kind: input, shape index: {}]   ;;  %s12246_s11 = inlined_call_operand.hbm [shape: bf16[1024,256], index: 11, kind: input, shape index: {}]   ;;  %s12247_s12 = inlined_call_operand.hbm [shape: f32[1,256], index: 12, kind: input, shape index: {}]   ;;  %s12248_s13 = inlined_call_operand.hbm [shape: f32[16,256], index: 13, kind: output, shape index: {}]  }
   0x1   :  { %19 = vsyncpa [#allocation6], 0 }
   0x2   :  { %20 = vsyncpa [#allocation9], 0 }
   0x3   :  { %21 = vsyncpa [#allocation12], 0 }
   0x4   :  { %22 = vsyncpa [#allocation15], 0 }
   0x5   :  { %23 = vsyncpa [#allocation18], 0 }
   0x6   :  { %24 = vsyncpa [#allocation21], 0 }
   0x7   :  { %25 = vsyncpa [#allocation4], 0  ;;  %s11734_s25 = smov [#allocation5]   ;;  %s11735_s27 = smov [#allocation8]  }
   0x8   :  { %s46_s26 = sshll.u32 %s11734_s25, 4  ;;  %s68_s28 = sshll.u32 %s11735_s27, 4  ;;  %s47_s26 = int_to_ptr.vmem [resolvable:$true] %s46_s26  ;;  %s69_s28 = int_to_ptr.vmem [resolvable:$true] %s68_s28 }
   0x9   :  { %s11466_s29 = scalar_lea.vmem %s47_s26, 256  ;;  %p11471_p1 = scmp.lt.s32.totalorder %s47_s26, %s47_s26 }
   0xa   :  { %p11467_p0 = scmp.ne.s32.totalorder %s47_s26, %s11466_s29  ;;  %p11472_p2 = scmp.lt.s32.totalorder %s11466_s29, %s11466_s29 }
   0xc   :  { %p11473_p3 = por %p11472_p2, %p11471_p1 }
   0xe   :  { %p11474_p4 = pnand %p11473_p3, %p11467_p0 }
  0x10   :  { %11477 = shalt.err (!%p11474_p4)
}
  0x11   :  { %49 = dma.hbm_to_vmem [thread:$0]  %s12237_s2, 256, %s47_s26, [#allocation6]  }
  0x12   :  { %s11486_s15 = scalar_lea.vmem %s69_s28, 64  ;;  %p11491_p6 = scmp.lt.s32.totalorder %s69_s28, %s69_s28 }
  0x13   :  { %p11487_p5 = scmp.ne.s32.totalorder %s69_s28, %s11486_s15  ;;  %p11492_p7 = scmp.lt.s32.totalorder %s11486_s15, %s11486_s15 }
  0x15   :  { %p11493_p8 = por %p11492_p7, %p11491_p6 }
  0x17   :  { %p11494_p9 = pnand %p11493_p8, %p11487_p5 }
  0x19   :  { %11497 = shalt.err (!%p11494_p9)
}
  0x1a   :  { %71 = dma.hbm_to_vmem [thread:$0]  %s12239_s4, 64, %s69_s28, [#allocation9]  }
  0x1b   :  { %s11736_s18 = smov [#allocation11]   ;;  %s11737_s20 = smov [#allocation14]  }
  0x1c   :  { %s90_s19 = sshll.u32 %s11736_s18, 4  ;;  %s112_s21 = sshll.u32 %s11737_s20, 4  ;;  %s91_s19 = int_to_ptr.vmem [resolvable:$true] %s90_s19  ;;  %s113_s21 = int_to_ptr.vmem [resolvable:$true] %s112_s21 }
  0x1d   :  { %s11506_s22 = scalar_lea.vmem %s91_s19, 192  ;;  %p11511_p11 = scmp.lt.s32.totalorder %s91_s19, %s91_s19 }
  0x1e   :  { %p11507_p10 = scmp.ne.s32.totalorder %s91_s19, %s11506_s22  ;;  %p11512_p12 = scmp.lt.s32.totalorder %s11506_s22, %s11506_s22 }
  0x20   :  { %p11513_p13 = por %p11512_p12, %p11511_p11 }
  0x22   :  { %p11514_p0 = pnand %p11513_p13, %p11507_p10 }
  0x24   :  { %11517 = shalt.err (!%p11514_p0)
}
  0x25   :  { %93 = dma.hbm_to_vmem [thread:$0]  %s12241_s6, 192, %s91_s19, [#allocation12]  }
  0x26   :  { %s11526_s24 = scalar_lea.vmem %s113_s21, 64  ;;  %p11531_p2 = scmp.lt.s32.totalorder %s113_s21, %s113_s21 }
  0x27   :  { %p11527_p1 = scmp.ne.s32.totalorder %s113_s21, %s11526_s24  ;;  %p11532_p3 = scmp.lt.s32.totalorder %s11526_s24, %s11526_s24 }
  0x29   :  { %p11533_p4 = por %p11532_p3, %p11531_p2 }
  0x2b   :  { %p11534_p5 = pnand %p11533_p4, %p11527_p1 }
  0x2d   :  { %11537 = shalt.err (!%p11534_p5)
}
  0x2e   :  { %115 = dma.hbm_to_vmem [thread:$0]  %s12243_s8, 64, %s113_s21, [#allocation15]  }
  0x2f   :  { %s11738_s26 = smov [#allocation17]   ;;  %s11739_s28 = smov [#allocation2]  }
  0x30   :  { %s134_s27 = sshll.u32 %s11738_s26, 4  ;;  %s31_s29 = sshll.u32 %s11739_s28, 4  ;;  %s135_s27 = int_to_ptr.vmem [resolvable:$true] %s134_s27  ;;  %s32_s29 = int_to_ptr.vmem [resolvable:$true] %s31_s29 }
  0x31   :  { %s11546_s30 = scalar_lea.vmem %s135_s27, 128  ;;  %p11551_p7 = scmp.lt.s32.totalorder %s135_s27, %s135_s27 }
  0x32   :  { %p11547_p6 = scmp.ne.s32.totalorder %s135_s27, %s11546_s30  ;;  %p11552_p8 = scmp.lt.s32.totalorder %s11546_s30, %s11546_s30 }
  0x34   :  { %p11553_p9 = por %p11552_p8, %p11551_p7 }
  0x36   :  { %p11554_p10 = pnand %p11553_p9, %p11547_p6 }
  0x38   :  { %11557 = shalt.err (!%p11554_p10)
}
  0x39   :  { %137 = dma.hbm_to_vmem [thread:$0]  %s12245_s10, 128, %s135_s27, [#allocation18]  }
  0x3a   :  { %s11566_s15 = scalar_lea.vmem %s32_s29, 768  ;;  %p11571_p12 = scmp.lt.s32.totalorder %s32_s29, %s32_s29 }
  0x3b   :  { %p11567_p11 = scmp.ne.s32.totalorder %s32_s29, %s11566_s15  ;;  %p11572_p13 = scmp.lt.s32.totalorder %s11566_s15, %s11566_s15 }
  0x3d   :  { %p11573_p0 = por %p11572_p13, %p11571_p12 }
  0x3f   :  { %p11574_p1 = pnand %p11573_p0, %p11567_p11 }
  0x41   :  { %11577 = shalt.err (!%p11574_p1)
}
  0x42   :  { %s11740_s8 = smov 384   ;;  %s11741_s16 = smov 24  }
  0x43   :  { %37 = dma.hbm_to_vmem [thread:$0]  %s12235_s0, 768, %s32_s29, [#allocation3], %s11740_s8, %s11740_s8, %s11741_s16  }
  0x44   :  { %s11742_s19 = smov [#allocation7]  }
  0x45   :  { %s55_s20 = sshll.u32 %s11742_s19, 4  ;;  %s56_s20 = int_to_ptr.vmem [resolvable:$true] %s55_s20 }
  0x46   :  { %s11586_s21 = scalar_lea.vmem %s56_s20, 24576  ;;  %p11591_p3 = scmp.lt.s32.totalorder %s56_s20, %s56_s20 }
  0x47   :  { %p11587_p2 = scmp.ne.s32.totalorder %s56_s20, %s11586_s21  ;;  %p11592_p4 = scmp.lt.s32.totalorder %s11586_s21, %s11586_s21 }
  0x49   :  { %p11593_p5 = por %p11592_p4, %p11591_p3 }
  0x4b   :  { %p11594_p6 = pnand %p11593_p5, %p11587_p2 }
  0x4d   :  { %11597 = shalt.err (!%p11594_p6)
}
  0x4e   :  { %s11743_s10 = smov 256   ;;  %s11744_s22 = smov 16  }
  0x4f   :  { %61 = dma.hbm_to_vmem [thread:$0]  %s12238_s3, 24576, %s56_s20, [#allocation6], %s11743_s10, %s11743_s10, %s11744_s22  }
  0x50   :  { %s11745_s0 = smov [#allocation10]  }
  0x51   :  { %s77_s24 = sshll.u32 %s11745_s0, 4  ;;  %s78_s24 = int_to_ptr.vmem [resolvable:$true] %s77_s24 }
  0x52   :  { %s11606_s4 = scalar_lea.vmem %s78_s24, 49152  ;;  %p11611_p8 = scmp.lt.s32.totalorder %s78_s24, %s78_s24 }
  0x53   :  { %p11607_p7 = scmp.ne.s32.totalorder %s78_s24, %s11606_s4  ;;  %p11612_p9 = scmp.lt.s32.totalorder %s11606_s4, %s11606_s4 }
  0x55   :  { %p11613_p10 = por %p11612_p9, %p11611_p8 }
  0x57   :  { %p11614_p11 = pnand %p11613_p10, %p11607_p7 }
  0x59   :  { %11617 = shalt.err (!%p11614_p11)
}
  0x5a   :  { %s11746_s25 = smov 768   ;;  %s11747_s26 = smov 48  }
  0x5b   :  { %83 = dma.hbm_to_vmem [thread:$0]  %s12240_s5, 49152, %s78_s24, [#allocation9], %s11746_s25, %s11746_s25, %s11747_s26  }
  0x5c   :  { %s11748_s29 = smov [#allocation13]   ;;  %s11749_s6 = smov [#allocation16]  }
  0x5d   :  { %s99_s30 = sshll.u32 %s11748_s29, 4  ;;  %s121_s3 = sshll.u32 %s11749_s6, 4  ;;  %s100_s30 = int_to_ptr.vmem [resolvable:$true] %s99_s30  ;;  %s122_s3 = int_to_ptr.vmem [resolvable:$true] %s121_s3 }
  0x5e   :  { %s11626_s14 = scalar_lea.vmem %s100_s30, 16384  ;;  %p11631_p13 = scmp.lt.s32.totalorder %s100_s30, %s100_s30 }
  0x5f   :  { %p11627_p12 = scmp.ne.s32.totalorder %s100_s30, %s11626_s14  ;;  %p11632_p0 = scmp.lt.s32.totalorder %s11626_s14, %s11626_s14 }
  0x61   :  { %p11633_p1 = por %p11632_p0, %p11631_p13 }
  0x63   :  { %p11634_p2 = pnand %p11633_p1, %p11627_p12 }
  0x65   :  { %11637 = shalt.err (!%p11634_p2)
}
  0x66   :  { %105 = dma.hbm_to_vmem [thread:$0]  %s12242_s7, 16384, %s100_s30, [#allocation12], %s11743_s10, %s11743_s10, %s11744_s22  }
  0x67   :  { %s11646_s5 = scalar_lea.vmem %s122_s3, 32768  ;;  %p11651_p4 = scmp.lt.s32.totalorder %s122_s3, %s122_s3 }
  0x68   :  { %p11647_p3 = scmp.ne.s32.totalorder %s122_s3, %s11646_s5  ;;  %p11652_p5 = scmp.lt.s32.totalorder %s11646_s5, %s11646_s5 }
  0x6a   :  { %p11653_p6 = por %p11652_p5, %p11651_p4 }
  0x6c   :  { %p11654_p7 = pnand %p11653_p6, %p11647_p3 }
  0x6e   :  { %11657 = shalt.err (!%p11654_p7)
}
  0x6f   :  { %s11750_s16 = smov 512   ;;  %s11751_s17 = smov 32  }
  0x70   :  { %127 = dma.hbm_to_vmem [thread:$0]  %s12244_s9, 32768, %s122_s3, [#allocation15], %s11750_s16, %s11750_s16, %s11751_s17  }
  0x71   :  { %s11752_s20 = smov [#allocation19]  }
  0x72   :  { %s143_s21 = sshll.u32 %s11752_s20, 4  ;;  %s144_s21 = int_to_ptr.vmem [resolvable:$true] %s143_s21 }
  0x73   :  { %s11666_s2 = scalar_lea.vmem %s144_s21, 16384  ;;  %p11671_p9 = scmp.lt.s32.totalorder %s144_s21, %s144_s21 }
  0x74   :  { %p11667_p8 = scmp.ne.s32.totalorder %s144_s21, %s11666_s2  ;;  %p11672_p10 = scmp.lt.s32.totalorder %s11666_s2, %s11666_s2 }
  0x76   :  { %p11673_p11 = por %p11672_p10, %p11671_p9 }
  0x78   :  { %p11674_p12 = pnand %p11673_p11, %p11667_p8 }
  0x7a   :  { %11677 = shalt.err (!%p11674_p12)
}
  0x7b   :  { %s11753_s7 = smov 128   ;;  %s11754_s23 = smov 8  }
  0x7c   :  { %149 = dma.hbm_to_vmem [thread:$0]  %s12246_s11, 16384, %s144_s21, [#allocation18], %s11753_s7, %s11753_s7, %s11754_s23  }
  0x7d   :  { %s11755_s4 = smov [#allocation20]  }
  0x7e   :  { %s156_s25 = sshll.u32 %s11755_s4, 4  ;;  %s157_s25 = int_to_ptr.vmem [resolvable:$true] %s156_s25 }
  0x7f   :  { %s11686_s9 = scalar_lea.vmem %s157_s25, 32  ;;  %p11691_p0 = scmp.lt.s32.totalorder %s157_s25, %s157_s25 }
  0x80   :  { %p11687_p13 = scmp.ne.s32.totalorder %s157_s25, %s11686_s9  ;;  %p11692_p1 = scmp.lt.s32.totalorder %s11686_s9, %s11686_s9 }
  0x82   :  { %p11693_p2 = por %p11692_p1, %p11691_p0 }
  0x84   :  { %p11694_p3 = pnand %p11693_p2, %p11687_p13 }
  0x86   :  { %11697 = shalt.err (!%p11694_p3)
}
  0x87   :  { %159 = dma.hbm_to_vmem [thread:$0]  %s12247_s12, 32, %s157_s25, [#allocation21]  }
  0x88   :  { %11718 = dma.done.wait [#allocation3], 768  }
  0x89   :  { %11719 = vsyncadd [#allocation3], 4294966528 }
  0x8a   :  { %11720 = dma.done.wait [#allocation6], 24832  }
  0x8b   :  { %11721 = vsyncadd [#allocation6], 4294942464 }
  0x8c   :  { %11722 = dma.done.wait [#allocation9], 49216  }
  0x8d   :  { %11723 = vsyncadd [#allocation9], 4294918080 }
  0x8e   :  { %11724 = dma.done.wait [#allocation12], 16576  }
  0x8f   :  { %11725 = vsyncadd [#allocation12], 4294950720 }
  0x90   :  { %11726 = dma.done.wait [#allocation15], 32832  }
  0x91   :  { %11727 = vsyncadd [#allocation15], 4294934464 }
  0x92   :  { %11728 = dma.done.wait [#allocation18], 16512  }
  0x93   :  { %11729 = vsyncadd [#allocation18], 4294950784 }
  0x94   :  { %11730 = dma.done.wait [#allocation21], 32  }
  0x95   :  { %11731 = vsyncadd [#allocation21], 4294967264  ;;  %v10156_v0 = vld [vmem:[#allocation7 + $0xe4] ss:$16 sps:$4 sm:$0xff]   ;;  %v10160_v2 = vld [vmem:[#allocation7 + $0xe0] ss:$16 sps:$4 sm:$0xff]  }
  0x96   :  { %v10158_v1 = vld [vmem:[#allocation7 + $0x2e4] ss:$16 sps:$4 sm:$0xff]   ;;  %1407 = vmatprep.subr.bf16.mxu0 %v10156_v0  ;;  %v10161_v3 = vld [vmem:[#allocation7 + $0x2e0] ss:$16 sps:$4 sm:$0xff]   ;;  %vm4913_vm0 = vcmask 64512   ;;  %vm4952_vm1 = vcmask 1043456  }
  0x97   :  { %1450 = vmatprep.subr.bf16.mxu1 %v10158_v1  ;;  %v10162_v4 = vld [vmem:[#allocation7 + $0xc4] ss:$16 sps:$4 sm:$0xff]   ;;  %1408 = vmatpush1.bf16.msra.mxu0 %v10160_v2  ;;  %v10166_v6 = vld [vmem:[#allocation7 + $0xc0] ss:$16 sps:$4 sm:$0xff]  }
  0x98   :  { %1451 = vmatpush1.bf16.msra.mxu1 %v10161_v3  ;;  %v10164_v5 = vld [vmem:[#allocation7 + $0x2c4] ss:$16 sps:$4 sm:$0xff]   ;;  %1409 = vmatprep.subr.bf16.mxu0 %v10162_v4  ;;  %v10167_v7 = vld [vmem:[#allocation7 + $0x2c0] ss:$16 sps:$4 sm:$0xff]   ;;  %v10263_v3 = vld [vmem:[#allocation7 + $0xec] ss:$16 sps:$4 sm:$0xff]  }
  0x99   :  { %1452 = vmatprep.subr.bf16.mxu1 %v10164_v5  ;;  %v10168_v8 = vld [vmem:[#allocation7 + $0xa4] ss:$16 sps:$4 sm:$0xff]   ;;  %v10172_v10 = vld [vmem:[#allocation7 + $0xa0] ss:$16 sps:$4 sm:$0xff]  }
  0x9a   :  { %v10170_v9 = vld [vmem:[#allocation7 + $0x2a4] ss:$16 sps:$4 sm:$0xff]   ;;  %v10173_v11 = vld [vmem:[#allocation7 + $0x2a0] ss:$16 sps:$4 sm:$0xff]  }
  0x9b   :  { %1410 = vmatpush1.bf16.msra.mxu0 %v10166_v6  ;;  %v10174_v12 = vld [vmem:[#allocation7 + $0x84] ss:$16 sps:$4 sm:$0xff]   ;;  %v10178_v14 = vld [vmem:[#allocation7 + $0x80] ss:$16 sps:$4 sm:$0xff]  }
  0x9c   :  { %1453 = vmatpush1.bf16.msra.mxu1 %v10167_v7  ;;  %1411 = vmatprep.subr.bf16.mxu0 %v10168_v8  ;;  %v10176_v13 = vld [vmem:[#allocation7 + $0x284] ss:$16 sps:$4 sm:$0xff]   ;;  %v10179_v15 = vld [vmem:[#allocation7 + $0x280] ss:$16 sps:$4 sm:$0xff]   ;;  %v10261_v7 = vld [vmem:[#allocation7 + $0xe8] ss:$16 sps:$4 sm:$0xff]  }
  0x9d   :  { %1454 = vmatprep.subr.bf16.mxu1 %v10170_v9  ;;  %v10180_v16 = vld [vmem:[#allocation7 + $0x64] ss:$16 sps:$4 sm:$0xff]   ;;  %v10184_v18 = vld [vmem:[#allocation7 + $0x60] ss:$16 sps:$4 sm:$0xff]   ;;  %v10269_v9 = vld [vmem:[#allocation7 + $0xcc] ss:$16 sps:$4 sm:$0xff]  }
  0x9e   :  { %v10182_v17 = vld [vmem:[#allocation7 + $0x264] ss:$16 sps:$4 sm:$0xff]   ;;  %v10185_v19 = vld [vmem:[#allocation7 + $0x260] ss:$16 sps:$4 sm:$0xff]  }
  0x9f   :  { %1412 = vmatpush1.bf16.msra.mxu0 %v10172_v10  ;;  %v10186_v20 = vld [vmem:[#allocation7 + $0x44] ss:$16 sps:$4 sm:$0xff]   ;;  %v10190_v22 = vld [vmem:[#allocation7 + $0x40] ss:$16 sps:$4 sm:$0xff]  }
  0xa0   :  { %1455 = vmatpush1.bf16.msra.mxu1 %v10173_v11  ;;  %1413 = vmatprep.subr.bf16.mxu0 %v10174_v12  ;;  %v10188_v21 = vld [vmem:[#allocation7 + $0x244] ss:$16 sps:$4 sm:$0xff]   ;;  %v10191_v23 = vld [vmem:[#allocation7 + $0x240] ss:$16 sps:$4 sm:$0xff]   ;;  %v10267_v11 = vld [vmem:[#allocation7 + $0xc8] ss:$16 sps:$4 sm:$0xff]  }
  0xa1   :  { %1456 = vmatprep.subr.bf16.mxu1 %v10176_v13  ;;  %v10192_v24 = vld [vmem:[#allocation7 + $0x24] ss:$16 sps:$4 sm:$0xff]   ;;  %v10196_v26 = vld [vmem:[#allocation7 + $0x20] ss:$16 sps:$4 sm:$0xff]   ;;  %v10275_v13 = vld [vmem:[#allocation7 + $0xac] ss:$16 sps:$4 sm:$0xff]  }
  0xa2   :  { %v10194_v25 = vld [vmem:[#allocation7 + $0x224] ss:$16 sps:$4 sm:$0xff]   ;;  %v10197_v27 = vld [vmem:[#allocation7 + $0x220] ss:$16 sps:$4 sm:$0xff]  }
  0xa3   :  { %1414 = vmatpush1.bf16.msra.mxu0 %v10178_v14  ;;  %v10198_v28 = vld [vmem:[#allocation7 + $0x4] ss:$16 sps:$4 sm:$0xff]   ;;  %v10202_v30 = vld [vmem:[#allocation7] ss:$16 sps:$4 sm:$0xff]  }
  0xa4   :  { %1457 = vmatpush1.bf16.msra.mxu1 %v10179_v15  ;;  %1415 = vmatprep.subr.bf16.mxu0 %v10180_v16  ;;  %v10200_v29 = vld [vmem:[#allocation7 + $0x204] ss:$16 sps:$4 sm:$0xff]   ;;  %v10203_v31 = vld [vmem:[#allocation7 + $0x200] ss:$16 sps:$4 sm:$0xff]   ;;  %v10273_v15 = vld [vmem:[#allocation7 + $0xa8] ss:$16 sps:$4 sm:$0xff]  }
  0xa5   :  { %1458 = vmatprep.subr.bf16.mxu1 %v10182_v17  ;;  %v10204_v32 = vld [vmem:[#allocation7 + $0x1e4] ss:$16 sps:$4 sm:$0xff]   ;;  %v10208_v34 = vld [vmem:[#allocation7 + $0x1e0] ss:$16 sps:$4 sm:$0xff]   ;;  %v10281_v17 = vld [vmem:[#allocation7 + $0x8c] ss:$16 sps:$4 sm:$0xff]  }
  0xa6   :  { %v10206_v33 = vld [vmem:[#allocation7 + $0x3e4] ss:$16 sps:$4 sm:$0xff]   ;;  %v10209_v35 = vld [vmem:[#allocation7 + $0x3e0] ss:$16 sps:$4 sm:$0xff]  }
  0xa7   :  { %1416 = vmatpush1.bf16.msra.mxu0 %v10184_v18  ;;  %v10210_v36 = vld [vmem:[#allocation7 + $0x1c4] ss:$16 sps:$4 sm:$0xff]   ;;  %v10214_v38 = vld [vmem:[#allocation7 + $0x1c0] ss:$16 sps:$4 sm:$0xff]  }
  0xa8   :  { %1459 = vmatpush1.bf16.msra.mxu1 %v10185_v19  ;;  %1417 = vmatprep.subr.bf16.mxu0 %v10186_v20  ;;  %v10212_v37 = vld [vmem:[#allocation7 + $0x3c4] ss:$16 sps:$4 sm:$0xff]   ;;  %v10215_v39 = vld [vmem:[#allocation7 + $0x3c0] ss:$16 sps:$4 sm:$0xff]   ;;  %v10279_v19 = vld [vmem:[#allocation7 + $0x88] ss:$16 sps:$4 sm:$0xff]  }
  0xa9   :  { %1460 = vmatprep.subr.bf16.mxu1 %v10188_v21  ;;  %v10216_v40 = vld [vmem:[#allocation7 + $0x1a4] ss:$16 sps:$4 sm:$0xff]   ;;  %v10220_v42 = vld [vmem:[#allocation7 + $0x1a0] ss:$16 sps:$4 sm:$0xff]   ;;  %v10287_v21 = vld [vmem:[#allocation7 + $0x6c] ss:$16 sps:$4 sm:$0xff]  }
  0xaa   :  { %v10218_v41 = vld [vmem:[#allocation7 + $0x3a4] ss:$16 sps:$4 sm:$0xff]   ;;  %v10221_v43 = vld [vmem:[#allocation7 + $0x3a0] ss:$16 sps:$4 sm:$0xff]  }
  0xab   :  { %1418 = vmatpush1.bf16.msra.mxu0 %v10190_v22  ;;  %v10222_v44 = vld [vmem:[#allocation7 + $0x184] ss:$16 sps:$4 sm:$0xff]   ;;  %v10226_v46 = vld [vmem:[#allocation7 + $0x180] ss:$16 sps:$4 sm:$0xff]  }
  0xac   :  { %1461 = vmatpush1.bf16.msra.mxu1 %v10191_v23  ;;  %1419 = vmatprep.subr.bf16.mxu0 %v10192_v24  ;;  %v10224_v45 = vld [vmem:[#allocation7 + $0x384] ss:$16 sps:$4 sm:$0xff]   ;;  %v10227_v47 = vld [vmem:[#allocation7 + $0x380] ss:$16 sps:$4 sm:$0xff]   ;;  %v10285_v23 = vld [vmem:[#allocation7 + $0x68] ss:$16 sps:$4 sm:$0xff]  }
  0xad   :  { %1462 = vmatprep.subr.bf16.mxu1 %v10194_v25  ;;  %v10228_v48 = vld [vmem:[#allocation7 + $0x164] ss:$16 sps:$4 sm:$0xff]   ;;  %v10232_v52 = vld [vmem:[#allocation7 + $0x160] ss:$16 sps:$4 sm:$0xff]   ;;  %v10293_v25 = vld [vmem:[#allocation7 + $0x4c] ss:$16 sps:$4 sm:$0xff]  }
  0xae   :  { %v10254_v49 = vld [vmem:[#allocation2 + $0x4] ss:$24 sps:$4 sm:$0xff]   ;;  %v10233_v53 = vld [vmem:[#allocation7 + $0x360] ss:$16 sps:$4 sm:$0xff]  }
  0xaf   :  { %1420 = vmatpush1.bf16.msra.mxu0 %v10196_v26  ;;  %v10230_v50 = vld [vmem:[#allocation7 + $0x364] ss:$16 sps:$4 sm:$0xff]   ;;  %1439 = vmatprep.mubr.bf16.mxu0 %v10254_v49  ;;  %v10238_v56 = vld [vmem:[#allocation7 + $0x140] ss:$16 sps:$4 sm:$0xff]  }
  0xb0   :  { %1463 = vmatpush1.bf16.msra.mxu1 %v10197_v27  ;;  %1421 = vmatprep.subr.bf16.mxu0 %v10198_v28  ;;  %v11870_v51 = vld [vmem:[#allocation2 + $0xc] ss:$24 sps:$4 sm:$0xff]   ;;  %v10239_v57 = vld [vmem:[#allocation7 + $0x340] ss:$16 sps:$4 sm:$0xff]   ;;  %v10291_v27 = vld [vmem:[#allocation7 + $0x48] ss:$16 sps:$4 sm:$0xff]  }
  0xb1   :  { %1464 = vmatprep.subr.bf16.mxu1 %v10200_v29  ;;  %1482 = vmatprep.mubr.bf16.mxu1 %v11870_v51  ;;  %v10234_v54 = vld [vmem:[#allocation7 + $0x144] ss:$16 sps:$4 sm:$0xff]   ;;  %v10244_v60 = vld [vmem:[#allocation7 + $0x120] ss:$16 sps:$4 sm:$0xff]   ;;  %v10299_v29 = vld [vmem:[#allocation7 + $0x2c] ss:$16 sps:$4 sm:$0xff]  }
  0xb2   :  { %v10236_v55 = vld [vmem:[#allocation7 + $0x344] ss:$16 sps:$4 sm:$0xff]   ;;  %v10245_v61 = vld [vmem:[#allocation7 + $0x320] ss:$16 sps:$4 sm:$0xff]  }
  0xb3   :  { %1422 = vmatpush1.bf16.msra.mxu0 %v10202_v30  ;;  %v10240_v58 = vld [vmem:[#allocation7 + $0x124] ss:$16 sps:$4 sm:$0xff]   ;;  %v10250_v0 = vld [vmem:[#allocation7 + $0x100] ss:$16 sps:$4 sm:$0xff]  }
  0xb4   :  { %1465 = vmatpush1.bf16.msra.mxu1 %v10203_v31  ;;  %1423 = vmatprep.subr.bf16.mxu0 %v10204_v32  ;;  %v10242_v59 = vld [vmem:[#allocation7 + $0x324] ss:$16 sps:$4 sm:$0xff]   ;;  %v10251_v1 = vld [vmem:[#allocation7 + $0x300] ss:$16 sps:$4 sm:$0xff]   ;;  %v10297_v31 = vld [vmem:[#allocation7 + $0x28] ss:$16 sps:$4 sm:$0xff]  }
  0xb5   :  { %1466 = vmatprep.subr.bf16.mxu1 %v10206_v33  ;;  %v10246_v62 = vld [vmem:[#allocation7 + $0x104] ss:$16 sps:$4 sm:$0xff]   ;;  %v11873_v4 = vld [vmem:[#allocation2] ss:$24 sps:$4 sm:$0xff]   ;;  %v10305_v33 = vld [vmem:[#allocation7 + $0xc] ss:$16 sps:$4 sm:$0xff]  }
  0xb6   :  { %v10248_v63 = vld [vmem:[#allocation7 + $0x304] ss:$16 sps:$4 sm:$0xff]   ;;  %v10255_v5 = vld [vmem:[#allocation2 + $0x8] ss:$24 sps:$4 sm:$0xff]  }
  0xb7   :  { %1424 = vmatpush2.bf16.msra.mxu0 %v10208_v34  ;;  %v10260_v2 = vld [vmem:[#allocation7 + $0x4e4] ss:$16 sps:$4 sm:$0xff]   ;;  %v10258_v6 = vld [vmem:[#allocation7 + $0x4e0] ss:$16 sps:$4 sm:$0xff]  }
  0xb8   :  { %1467 = vmatpush2.bf16.msra.mxu1 %v10209_v35  ;;  %1425 = vmatprep.subr.bf16.mxu0 %v10210_v36  ;;  %v10266_v8 = vld [vmem:[#allocation7 + $0x4c4] ss:$16 sps:$4 sm:$0xff]   ;;  %v10264_v10 = vld [vmem:[#allocation7 + $0x4c0] ss:$16 sps:$4 sm:$0xff]   ;;  %v10303_v36 = vld [vmem:[#allocation7 + $0x8] ss:$16 sps:$4 sm:$0xff]  }
  0xb9   :  { %1468 = vmatprep.subr.bf16.mxu1 %v10212_v37  ;;  %v10272_v12 = vld [vmem:[#allocation7 + $0x4a4] ss:$16 sps:$4 sm:$0xff]   ;;  %v10270_v14 = vld [vmem:[#allocation7 + $0x4a0] ss:$16 sps:$4 sm:$0xff]  }
  0xba   :  { %v10278_v16 = vld [vmem:[#allocation7 + $0x484] ss:$16 sps:$4 sm:$0xff]   ;;  %v10276_v18 = vld [vmem:[#allocation7 + $0x480] ss:$16 sps:$4 sm:$0xff]  }
  0xbb   :  { %1426 = vmatpush2.bf16.msra.mxu0 %v10214_v38  ;;  %v10284_v20 = vld [vmem:[#allocation7 + $0x464] ss:$16 sps:$4 sm:$0xff]   ;;  %v10282_v22 = vld [vmem:[#allocation7 + $0x460] ss:$16 sps:$4 sm:$0xff]   ;;  %v10311_v38 = vld [vmem:[#allocation7 + $0x1ec] ss:$16 sps:$4 sm:$0xff]  }
  0xbc   :  { %1469 = vmatpush2.bf16.msra.mxu1 %v10215_v39  ;;  %1427 = vmatprep.subr.bf16.mxu0 %v10216_v40  ;;  %v10290_v24 = vld [vmem:[#allocation7 + $0x444] ss:$16 sps:$4 sm:$0xff]   ;;  %v10288_v26 = vld [vmem:[#allocation7 + $0x440] ss:$16 sps:$4 sm:$0xff]   ;;  %v10309_v40 = vld [vmem:[#allocation7 + $0x1e8] ss:$16 sps:$4 sm:$0xff]  }
  0xbd   :  { %1470 = vmatprep.subr.bf16.mxu1 %v10218_v41  ;;  %v10296_v28 = vld [vmem:[#allocation7 + $0x424] ss:$16 sps:$4 sm:$0xff]   ;;  %v10294_v30 = vld [vmem:[#allocation7 + $0x420] ss:$16 sps:$4 sm:$0xff]  }
  0xbe   :  { %v10302_v32 = vld [vmem:[#allocation7 + $0x404] ss:$16 sps:$4 sm:$0xff]   ;;  %v10300_v35 = vld [vmem:[#allocation7 + $0x400] ss:$16 sps:$4 sm:$0xff]  }
  0xbf   :  { %1428 = vmatpush2.bf16.msra.mxu0 %v10220_v42  ;;  %v11876_v34 = vld [vmem:[#allocation2 + $0x14] ss:$24 sps:$4 sm:$0xff]   ;;  %v10306_v39 = vld [vmem:[#allocation7 + $0x5e0] ss:$16 sps:$4 sm:$0xff]  }
  0xc0   :  { %1471 = vmatpush2.bf16.msra.mxu1 %v10221_v43  ;;  %1429 = vmatprep.subr.bf16.mxu0 %v10222_v44  ;;  %v10308_v37 = vld [vmem:[#allocation7 + $0x5e4] ss:$16 sps:$4 sm:$0xff]   ;;  %v10317_v42 = vld [vmem:[#allocation7 + $0x1cc] ss:$16 sps:$4 sm:$0xff]   ;;  %v10312_v43 = vld [vmem:[#allocation7 + $0x5c0] ss:$16 sps:$4 sm:$0xff]  }
  0xc1   :  { %1472 = vmatprep.subr.bf16.mxu1 %v10224_v45  ;;  %v10314_v41 = vld [vmem:[#allocation7 + $0x5c4] ss:$16 sps:$4 sm:$0xff]   ;;  %v10315_v44 = vld [vmem:[#allocation7 + $0x1c8] ss:$16 sps:$4 sm:$0xff]  }
  0xc2   :  { %v10320_v45 = vld [vmem:[#allocation7 + $0x5a4] ss:$16 sps:$4 sm:$0xff]  }
  0xc3   :  { %1430 = vmatpush2.bf16.msra.mxu0 %v10226_v46  ;;  %v10323_v46 = vld [vmem:[#allocation7 + $0x1ac] ss:$16 sps:$4 sm:$0xff]  }
  0xc4   :  { %1473 = vmatpush2.bf16.msra.mxu1 %v10227_v47  ;;  %1431 = vmatprep.subr.bf16.mxu0 %v10228_v48  ;;  %v10318_v47 = vld [vmem:[#allocation7 + $0x5a0] ss:$16 sps:$4 sm:$0xff]   ;;  %v10321_v48 = vld [vmem:[#allocation7 + $0x1a8] ss:$16 sps:$4 sm:$0xff]  }
  0xc5   :  { %1474 = vmatprep.subr.bf16.mxu1 %v10230_v50  ;;  %v10329_v50 = vld [vmem:[#allocation7 + $0x18c] ss:$16 sps:$4 sm:$0xff]  }
  0xc7   :  { %1432 = vmatpush2.bf16.msra.mxu0 %v10232_v52  ;;  %v10324_v52 = vld [vmem:[#allocation7 + $0x580] ss:$16 sps:$4 sm:$0xff]  }
  0xc8   :  { %1475 = vmatpush2.bf16.msra.mxu1 %v10233_v53  ;;  %1433 = vmatprep.subr.bf16.mxu0 %v10234_v54  ;;  %v10327_v53 = vld [vmem:[#allocation7 + $0x188] ss:$16 sps:$4 sm:$0xff]   ;;  %v10332_v54 = vld [vmem:[#allocation7 + $0x564] ss:$16 sps:$4 sm:$0xff]  }
  0xc9   :  { %1476 = vmatprep.subr.bf16.mxu1 %v10236_v55  ;;  %v10335_v55 = vld [vmem:[#allocation7 + $0x16c] ss:$16 sps:$4 sm:$0xff]  }
  0xcb   :  { %1434 = vmatpush2.bf16.msra.mxu0 %v10238_v56  ;;  %v10330_v56 = vld [vmem:[#allocation7 + $0x560] ss:$16 sps:$4 sm:$0xff]  }
  0xcc   :  { %1477 = vmatpush2.bf16.msra.mxu1 %v10239_v57  ;;  %1435 = vmatprep.subr.bf16.mxu0 %v10240_v58  ;;  %v10333_v57 = vld [vmem:[#allocation7 + $0x168] ss:$16 sps:$4 sm:$0xff]   ;;  %v10338_v58 = vld [vmem:[#allocation7 + $0x544] ss:$16 sps:$4 sm:$0xff]  }
  0xcd   :  { %1478 = vmatprep.subr.bf16.mxu1 %v10242_v59  ;;  %v10341_v59 = vld [vmem:[#allocation7 + $0x14c] ss:$16 sps:$4 sm:$0xff]  }
  0xcf   :  { %1436 = vmatpush2.bf16.msra.mxu0 %v10244_v60  ;;  %v10336_v60 = vld [vmem:[#allocation7 + $0x540] ss:$16 sps:$4 sm:$0xff]  }
  0xd0   :  { %1479 = vmatpush2.bf16.msra.mxu1 %v10245_v61  ;;  %1437 = vmatprep.subr.bf16.mxu0 %v10246_v62  ;;  %v10339_v61 = vld [vmem:[#allocation7 + $0x148] ss:$16 sps:$4 sm:$0xff]   ;;  %v10344_v62 = vld [vmem:[#allocation7 + $0x524] ss:$16 sps:$4 sm:$0xff]  }
  0xd1   :  { %1480 = vmatprep.subr.bf16.mxu1 %v10248_v63  ;;  %v10347_v63 = vld [vmem:[#allocation7 + $0x12c] ss:$16 sps:$4 sm:$0xff]  }
  0xd3   :  { %1438 = vmatpush2.bf16.msra.mxu0 %v10250_v0  ;;  %v10342_v0 = vld [vmem:[#allocation7 + $0x520] ss:$16 sps:$4 sm:$0xff]  }
  0xd4   :  { %1481 = vmatpush2.bf16.msra.mxu1 %v10251_v1  ;;  %1493 = vmatprep.subr.bf16.mxu0 %v10260_v2  ;;  %v10345_v1 = vld [vmem:[#allocation7 + $0x128] ss:$16 sps:$4 sm:$0xff]   ;;  %v10350_v2 = vld [vmem:[#allocation7 + $0x504] ss:$16 sps:$4 sm:$0xff]  }
  0xd5   :  { %1536 = vmatprep.subr.bf16.mxu1 %v10263_v3  ;;  %v10353_v3 = vld [vmem:[#allocation7 + $0x10c] ss:$16 sps:$4 sm:$0xff]  }
  0xd6   :  { %1440 = vmatmul.mubr.bf16.vlgmr.msra.gmra.mxu0 %v11873_v4 }
  0xd7   :  { %1483 = vmatmul.mubr.bf16.vlgmr.msra.gmra.mxu1 %v10255_v5  ;;  %1494 = vmatpush1.bf16.msra.mxu0 %v10258_v6  ;;  %v10348_v5 = vld [vmem:[#allocation7 + $0x500] ss:$16 sps:$4 sm:$0xff]   ;;  %v10351_v6 = vld [vmem:[#allocation7 + $0x108] ss:$16 sps:$4 sm:$0xff]  }
  0xd8   :  { %1537 = vmatpush1.bf16.msra.mxu1 %v10261_v7  ;;  %1495 = vmatprep.subr.bf16.mxu0 %v10266_v8  ;;  %v10359_v7 = vld [vmem:[#allocation7 + $0x2ec] ss:$16 sps:$4 sm:$0xff]  }
  0xd9   :  { %1538 = vmatprep.subr.bf16.mxu1 %v10269_v9  ;;  %1568 = vmatprep.mubr.bf16.mxu1 %v10254_v49  ;;  %v10326_v49 = vld [vmem:[#allocation7 + $0x584] ss:$16 sps:$4 sm:$0xff]   ;;  %v10362_v8 = vld [vmem:[#allocation7 + $0x4ec] ss:$16 sps:$4 sm:$0xff]   ;;  %v11879_v9 = vld [vmem:[#allocation2 + $0x10] ss:$24 sps:$4 sm:$0xff]  }
  0xda   :  { %1525 = vmatprep.mubr.bf16.mxu0 %v11876_v34 }
  0xdb   :  { %1496 = vmatpush1.bf16.msra.mxu0 %v10264_v10  ;;  %v10357_v10 = vld [vmem:[#allocation7 + $0x2e8] ss:$16 sps:$4 sm:$0xff]  }
  0xdc   :  { %1539 = vmatpush1.bf16.msra.mxu1 %v10267_v11  ;;  %1497 = vmatprep.subr.bf16.mxu0 %v10272_v12  ;;  %v10360_v11 = vld [vmem:[#allocation7 + $0x4e8] ss:$16 sps:$4 sm:$0xff]   ;;  %v10365_v12 = vld [vmem:[#allocation7 + $0x2cc] ss:$16 sps:$4 sm:$0xff]  }
  0xdd   :  { %1540 = vmatprep.subr.bf16.mxu1 %v10275_v13  ;;  %v10368_v13 = vld [vmem:[#allocation7 + $0x4cc] ss:$16 sps:$4 sm:$0xff]  }
  0xdf   :  { %1498 = vmatpush1.bf16.msra.mxu0 %v10270_v14  ;;  %v10363_v14 = vld [vmem:[#allocation7 + $0x2c8] ss:$16 sps:$4 sm:$0xff]  }
  0xe0   :  { %1541 = vmatpush1.bf16.msra.mxu1 %v10273_v15  ;;  %1499 = vmatprep.subr.bf16.mxu0 %v10278_v16  ;;  %v10366_v15 = vld [vmem:[#allocation7 + $0x4c8] ss:$16 sps:$4 sm:$0xff]   ;;  %v10371_v16 = vld [vmem:[#allocation7 + $0x2ac] ss:$16 sps:$4 sm:$0xff]  }
  0xe1   :  { %1542 = vmatprep.subr.bf16.mxu1 %v10281_v17  ;;  %v10374_v17 = vld [vmem:[#allocation7 + $0x4ac] ss:$16 sps:$4 sm:$0xff]  }
  0xe3   :  { %1500 = vmatpush1.bf16.msra.mxu0 %v10276_v18  ;;  %v10369_v18 = vld [vmem:[#allocation7 + $0x2a8] ss:$16 sps:$4 sm:$0xff]  }
  0xe4   :  { %1543 = vmatpush1.bf16.msra.mxu1 %v10279_v19  ;;  %1501 = vmatprep.subr.bf16.mxu0 %v10284_v20  ;;  %v10372_v19 = vld [vmem:[#allocation7 + $0x4a8] ss:$16 sps:$4 sm:$0xff]   ;;  %v10377_v20 = vld [vmem:[#allocation7 + $0x28c] ss:$16 sps:$4 sm:$0xff]  }
  0xe5   :  { %1544 = vmatprep.subr.bf16.mxu1 %v10287_v21  ;;  %v10380_v21 = vld [vmem:[#allocation7 + $0x48c] ss:$16 sps:$4 sm:$0xff]  }
  0xe7   :  { %1502 = vmatpush1.bf16.msra.mxu0 %v10282_v22  ;;  %v10378_v22 = vld [vmem:[#allocation7 + $0x488] ss:$16 sps:$4 sm:$0xff]  }
  0xe8   :  { %1545 = vmatpush1.bf16.msra.mxu1 %v10285_v23  ;;  %1503 = vmatprep.subr.bf16.mxu0 %v10290_v24  ;;  %v10383_v23 = vld [vmem:[#allocation7 + $0x26c] ss:$16 sps:$4 sm:$0xff]  }
  0xe9   :  { %1546 = vmatprep.subr.bf16.mxu1 %v10293_v25  ;;  %v10386_v24 = vld [vmem:[#allocation7 + $0x46c] ss:$16 sps:$4 sm:$0xff]   ;;  %v10381_v25 = vld [vmem:[#allocation7 + $0x268] ss:$16 sps:$4 sm:$0xff]  }
  0xeb   :  { %1504 = vmatpush1.bf16.msra.mxu0 %v10288_v26  ;;  %v10389_v26 = vld [vmem:[#allocation7 + $0x24c] ss:$16 sps:$4 sm:$0xff]  }
  0xec   :  { %1547 = vmatpush1.bf16.msra.mxu1 %v10291_v27  ;;  %1505 = vmatprep.subr.bf16.mxu0 %v10296_v28  ;;  %v10392_v27 = vld [vmem:[#allocation7 + $0x44c] ss:$16 sps:$4 sm:$0xff]   ;;  %v10387_v28 = vld [vmem:[#allocation7 + $0x248] ss:$16 sps:$4 sm:$0xff]  }
  0xed   :  { %1548 = vmatprep.subr.bf16.mxu1 %v10299_v29  ;;  %v10390_v29 = vld [vmem:[#allocation7 + $0x448] ss:$16 sps:$4 sm:$0xff]  }
  0xef   :  { %1506 = vmatpush1.bf16.msra.mxu0 %v10294_v30  ;;  %v10395_v30 = vld [vmem:[#allocation7 + $0x22c] ss:$16 sps:$4 sm:$0xff]  }
  0xf0   :  { %1549 = vmatpush1.bf16.msra.mxu1 %v10297_v31  ;;  %1507 = vmatprep.subr.bf16.mxu0 %v10302_v32  ;;  %v10398_v31 = vld [vmem:[#allocation7 + $0x42c] ss:$16 sps:$4 sm:$0xff]   ;;  %v10393_v32 = vld [vmem:[#allocation7 + $0x228] ss:$16 sps:$4 sm:$0xff]  }
  0xf1   :  { %1550 = vmatprep.subr.bf16.mxu1 %v10305_v33  ;;  %v10396_v33 = vld [vmem:[#allocation7 + $0x428] ss:$16 sps:$4 sm:$0xff]  }
  0xf3   :  { %1508 = vmatpush1.bf16.msra.mxu0 %v10300_v35  ;;  %v10404_v35 = vld [vmem:[#allocation7 + $0x40c] ss:$16 sps:$4 sm:$0xff]  }
  0xf4   :  { %1551 = vmatpush1.bf16.msra.mxu1 %v10303_v36  ;;  %1509 = vmatprep.subr.bf16.mxu0 %v10308_v37  ;;  %v10399_v36 = vld [vmem:[#allocation7 + $0x208] ss:$16 sps:$4 sm:$0xff]  }
  0xf5   :  { %1552 = vmatprep.subr.bf16.mxu1 %v10311_v38  ;;  %v10402_v37 = vld [vmem:[#allocation7 + $0x408] ss:$16 sps:$4 sm:$0xff]   ;;  %v10407_v38 = vld [vmem:[#allocation7 + $0x3ec] ss:$16 sps:$4 sm:$0xff]  }
  0xf7   :  { %1510 = vmatpush2.bf16.msra.mxu0 %v10306_v39  ;;  %v10410_v39 = vld [vmem:[#allocation7 + $0x5ec] ss:$16 sps:$4 sm:$0xff]  }
  0xf8   :  { %1553 = vmatpush2.bf16.msra.mxu1 %v10309_v40  ;;  %1511 = vmatprep.subr.bf16.mxu0 %v10314_v41  ;;  %v10405_v40 = vld [vmem:[#allocation7 + $0x3e8] ss:$16 sps:$4 sm:$0xff]  }
  0xf9   :  { %1554 = vmatprep.subr.bf16.mxu1 %v10317_v42  ;;  %v10408_v41 = vld [vmem:[#allocation7 + $0x5e8] ss:$16 sps:$4 sm:$0xff]   ;;  %v10413_v42 = vld [vmem:[#allocation7 + $0x3cc] ss:$16 sps:$4 sm:$0xff]  }
  0xfb   :  { %1512 = vmatpush2.bf16.msra.mxu0 %v10312_v43  ;;  %v10416_v43 = vld [vmem:[#allocation7 + $0x5cc] ss:$16 sps:$4 sm:$0xff]  }
  0xfc   :  { %1555 = vmatpush2.bf16.msra.mxu1 %v10315_v44  ;;  %1513 = vmatprep.subr.bf16.mxu0 %v10320_v45  ;;  %v10411_v44 = vld [vmem:[#allocation7 + $0x3c8] ss:$16 sps:$4 sm:$0xff]  }
  0xfd   :  { %1556 = vmatprep.subr.bf16.mxu1 %v10323_v46  ;;  %v10414_v45 = vld [vmem:[#allocation7 + $0x5c8] ss:$16 sps:$4 sm:$0xff]   ;;  %v10419_v46 = vld [vmem:[#allocation7 + $0x3ac] ss:$16 sps:$4 sm:$0xff]  }
  0xff   :  { %1514 = vmatpush2.bf16.msra.mxu0 %v10318_v47  ;;  %v10422_v47 = vld [vmem:[#allocation7 + $0x5ac] ss:$16 sps:$4 sm:$0xff]  }
 0x100   :  { %1557 = vmatpush2.bf16.msra.mxu1 %v10321_v48  ;;  %1515 = vmatprep.subr.bf16.mxu0 %v10326_v49  ;;  %v10417_v48 = vld [vmem:[#allocation7 + $0x3a8] ss:$16 sps:$4 sm:$0xff]  }
 0x101   :  { %1558 = vmatprep.subr.bf16.mxu1 %v10329_v50  ;;  %v10420_v49 = vld [vmem:[#allocation7 + $0x5a8] ss:$16 sps:$4 sm:$0xff]   ;;  %v10425_v50 = vld [vmem:[#allocation7 + $0x38c] ss:$16 sps:$4 sm:$0xff]  }
 0x103   :  { %1516 = vmatpush2.bf16.msra.mxu0 %v10324_v52  ;;  %v10428_v52 = vld [vmem:[#allocation7 + $0x58c] ss:$16 sps:$4 sm:$0xff]  }
 0x104   :  { %1559 = vmatpush2.bf16.msra.mxu1 %v10327_v53  ;;  %1517 = vmatprep.subr.bf16.mxu0 %v10332_v54  ;;  %v10423_v53 = vld [vmem:[#allocation7 + $0x388] ss:$16 sps:$4 sm:$0xff]  }
 0x105   :  { %1560 = vmatprep.subr.bf16.mxu1 %v10335_v55  ;;  %v10426_v54 = vld [vmem:[#allocation7 + $0x588] ss:$16 sps:$4 sm:$0xff]   ;;  %v10431_v55 = vld [vmem:[#allocation7 + $0x36c] ss:$16 sps:$4 sm:$0xff]  }
 0x107   :  { %1518 = vmatpush2.bf16.msra.mxu0 %v10330_v56  ;;  %v10434_v56 = vld [vmem:[#allocation7 + $0x56c] ss:$16 sps:$4 sm:$0xff]  }
 0x108   :  { %1561 = vmatpush2.bf16.msra.mxu1 %v10333_v57  ;;  %1519 = vmatprep.subr.bf16.mxu0 %v10338_v58  ;;  %v10429_v57 = vld [vmem:[#allocation7 + $0x368] ss:$16 sps:$4 sm:$0xff]  }
 0x109   :  { %1562 = vmatprep.subr.bf16.mxu1 %v10341_v59  ;;  %v10432_v58 = vld [vmem:[#allocation7 + $0x568] ss:$16 sps:$4 sm:$0xff]   ;;  %v10437_v59 = vld [vmem:[#allocation7 + $0x34c] ss:$16 sps:$4 sm:$0xff]  }
 0x10b   :  { %1520 = vmatpush2.bf16.msra.mxu0 %v10336_v60  ;;  %v10440_v60 = vld [vmem:[#allocation7 + $0x54c] ss:$16 sps:$4 sm:$0xff]  }
 0x10c   :  { %1563 = vmatpush2.bf16.msra.mxu1 %v10339_v61  ;;  %1521 = vmatprep.subr.bf16.mxu0 %v10344_v62  ;;  %v10435_v61 = vld [vmem:[#allocation7 + $0x348] ss:$16 sps:$4 sm:$0xff]  }
 0x10d   :  { %1564 = vmatprep.subr.bf16.mxu1 %v10347_v63  ;;  %v10438_v62 = vld [vmem:[#allocation7 + $0x548] ss:$16 sps:$4 sm:$0xff]   ;;  %v10443_v63 = vld [vmem:[#allocation7 + $0x32c] ss:$16 sps:$4 sm:$0xff]  }
 0x10f   :  { %1522 = vmatpush2.bf16.msra.mxu0 %v10342_v0  ;;  %v10446_v0 = vld [vmem:[#allocation7 + $0x52c] ss:$16 sps:$4 sm:$0xff]  }
 0x110   :  { %1565 = vmatpush2.bf16.msra.mxu1 %v10345_v1  ;;  %1523 = vmatprep.subr.bf16.mxu0 %v10350_v2  ;;  %v10441_v1 = vld [vmem:[#allocation7 + $0x328] ss:$16 sps:$4 sm:$0xff]  }
 0x111   :  { %1566 = vmatprep.subr.bf16.mxu1 %v10353_v3  ;;  %v10444_v2 = vld [vmem:[#allocation7 + $0x528] ss:$16 sps:$4 sm:$0xff]   ;;  %v10449_v3 = vld [vmem:[#allocation7 + $0x30c] ss:$16 sps:$4 sm:$0xff]  }
 0x113   :  { %1524 = vmatpush2.bf16.msra.mxu0 %v10348_v5  ;;  %v10452_v5 = vld [vmem:[#allocation7 + $0x50c] ss:$16 sps:$4 sm:$0xff]  }
 0x114   :  { %1567 = vmatpush2.bf16.msra.mxu1 %v10351_v6  ;;  %1579 = vmatprep.subr.bf16.mxu0 %v10359_v7  ;;  %v10447_v6 = vld [vmem:[#allocation7 + $0x308] ss:$16 sps:$4 sm:$0xff]  }
 0x115   :  { %1622 = vmatprep.subr.bf16.mxu1 %v10362_v8  ;;  %v10450_v7 = vld [vmem:[#allocation7 + $0x508] ss:$16 sps:$4 sm:$0xff]  }
 0x116   :  { %1526 = vmatmul.mubr.bf16.vlgmr.msra.gmra.mxu0 %v11879_v9  ;;  %v10455_v8 = vld [vmem:[#allocation10 + $0x2a4] ss:$48 sps:$4 sm:$0xff]  }
 0x117   :  { %1569 = vmatmul.mubr.bf16.vlgmr.msra.gmra.mxu1 %v11873_v4  ;;  %1580 = vmatpush1.bf16.msra.mxu0 %v10357_v10  ;;  %v10375_v4 = vld [vmem:[#allocation7 + $0x288] ss:$16 sps:$4 sm:$0xff]   ;;  %v10453_v10 = vld [vmem:[#allocation10 + $0x2a0] ss:$48 sps:$4 sm:$0xff]  }
 0x118   :  { %1623 = vmatpush1.bf16.msra.mxu1 %v10360_v11  ;;  %1581 = vmatprep.subr.bf16.mxu0 %v10365_v12  ;;  %v10458_v11 = vld [vmem:[#allocation10 + $0x244] ss:$48 sps:$4 sm:$0xff]   ;;  %v10456_v12 = vld [vmem:[#allocation10 + $0x240] ss:$48 sps:$4 sm:$0xff]  }
 0x119   :  { %1624 = vmatprep.subr.bf16.mxu1 %v10368_v13  ;;  %1611 = vmatprep.mubr.bf16.mxu0 %v11870_v51  ;;  %v10384_v51 = vld [vmem:[#allocation7 + $0x468] ss:$16 sps:$4 sm:$0xff]  }
 0x11a   :  { %1654 = vmatprep.mubr.bf16.mxu1 %v11876_v34  ;;  %v10401_v34 = vld [vmem:[#allocation7 + $0x20c] ss:$16 sps:$4 sm:$0xff]   ;;  %v11457_v13 = vld [vmem:[#allocation2 + $0x8] ss:$24 sps:$4 sm:$0xff]  }
 0x11b   :  { %1582 = vmatpush1.bf16.msra.mxu0 %v10363_v14  ;;  %v10461_v14 = vld [vmem:[#allocation10 + $0x1e4] ss:$48 sps:$4 sm:$0xff]  }
 0x11c   :  { %1625 = vmatpush1.bf16.msra.mxu1 %v10366_v15  ;;  %1583 = vmatprep.subr.bf16.mxu0 %v10371_v16  ;;  %v10459_v15 = vld [vmem:[#allocation10 + $0x1e0] ss:$48 sps:$4 sm:$0xff]   ;;  %v10464_v16 = vld [vmem:[#allocation10 + $0x184] ss:$48 sps:$4 sm:$0xff]  }
 0x11d   :  { %1626 = vmatprep.subr.bf16.mxu1 %v10374_v17  ;;  %v10462_v17 = vld [vmem:[#allocation10 + $0x180] ss:$48 sps:$4 sm:$0xff]  }
 0x11f   :  { %1584 = vmatpush1.bf16.msra.mxu0 %v10369_v18  ;;  %v10467_v18 = vld [vmem:[#allocation10 + $0x124] ss:$48 sps:$4 sm:$0xff]  }
 0x120   :  { %1627 = vmatpush1.bf16.msra.mxu1 %v10372_v19  ;;  %1585 = vmatprep.subr.bf16.mxu0 %v10377_v20  ;;  %v10465_v19 = vld [vmem:[#allocation10 + $0x120] ss:$48 sps:$4 sm:$0xff]   ;;  %v10470_v20 = vld [vmem:[#allocation10 + $0xc4] ss:$48 sps:$4 sm:$0xff]  }
 0x121   :  { %1628 = vmatprep.subr.bf16.mxu1 %v10380_v21  ;;  %v10506_v21 = vld [vmem:[#allocation10 + $0x8a4] ss:$48 sps:$4 sm:$0xff]  }
 0x123   :  { %1586 = vmatpush1.bf16.msra.mxu0 %v10375_v4  ;;  %v10468_v4 = vld [vmem:[#allocation10 + $0xc0] ss:$48 sps:$4 sm:$0xff]  }
 0x124   :  { %1629 = vmatpush1.bf16.msra.mxu1 %v10378_v22  ;;  %1587 = vmatprep.subr.bf16.mxu0 %v10383_v23  ;;  %v10504_v22 = vld [vmem:[#allocation10 + $0x8a0] ss:$48 sps:$4 sm:$0xff]   ;;  %v10473_v23 = vld [vmem:[#allocation10 + $0x64] ss:$48 sps:$4 sm:$0xff]  }
 0x125   :  { %1630 = vmatprep.subr.bf16.mxu1 %v10386_v24  ;;  %v10471_v24 = vld [vmem:[#allocation10 + $0x60] ss:$48 sps:$4 sm:$0xff]  }
 0x127   :  { %1588 = vmatpush1.bf16.msra.mxu0 %v10381_v25  ;;  %v10510_v25 = vld [vmem:[#allocation10 + $0x840] ss:$48 sps:$4 sm:$0xff]  }
 0x128   :  { %1631 = vmatpush1.bf16.msra.mxu1 %v10384_v51  ;;  %1589 = vmatprep.subr.bf16.mxu0 %v10389_v26  ;;  %v10476_v51 = vld [vmem:[#allocation10 + $0x4] ss:$48 sps:$4 sm:$0xff]  }
 0x129   :  { %1632 = vmatprep.subr.bf16.mxu1 %v10392_v27  ;;  %v10518_v26 = vld [vmem:[#allocation10 + $0x7e4] ss:$48 sps:$4 sm:$0xff]   ;;  %v10474_v27 = vld [vmem:[#allocation10] ss:$48 sps:$4 sm:$0xff]  }
 0x12b   :  { %1590 = vmatpush1.bf16.msra.mxu0 %v10387_v28  ;;  %v10516_v28 = vld [vmem:[#allocation10 + $0x7e0] ss:$48 sps:$4 sm:$0xff]  }
 0x12c   :  { %1633 = vmatpush1.bf16.msra.mxu1 %v10390_v29  ;;  %1591 = vmatprep.subr.bf16.mxu0 %v10395_v30  ;;  %v10479_v29 = vld [vmem:[#allocation10 + $0x5a4] ss:$48 sps:$4 sm:$0xff]  }
 0x12d   :  { %1634 = vmatprep.subr.bf16.mxu1 %v10398_v31  ;;  %v10524_v30 = vld [vmem:[#allocation10 + $0x784] ss:$48 sps:$4 sm:$0xff]   ;;  %v10477_v31 = vld [vmem:[#allocation10 + $0x5a0] ss:$48 sps:$4 sm:$0xff]  }
 0x12f   :  { %1592 = vmatpush1.bf16.msra.mxu0 %v10393_v32  ;;  %v10522_v32 = vld [vmem:[#allocation10 + $0x780] ss:$48 sps:$4 sm:$0xff]  }
 0x130   :  { %1635 = vmatpush1.bf16.msra.mxu1 %v10396_v33  ;;  %1593 = vmatprep.subr.bf16.mxu0 %v10401_v34  ;;  %v10482_v33 = vld [vmem:[#allocation10 + $0x544] ss:$48 sps:$4 sm:$0xff]  }
 0x131   :  { %1636 = vmatprep.subr.bf16.mxu1 %v10404_v35  ;;  %v10530_v34 = vld [vmem:[#allocation10 + $0x724] ss:$48 sps:$4 sm:$0xff]   ;;  %v10480_v35 = vld [vmem:[#allocation10 + $0x540] ss:$48 sps:$4 sm:$0xff]  }
 0x133   :  { %1594 = vmatpush1.bf16.msra.mxu0 %v10399_v36  ;;  %v10528_v36 = vld [vmem:[#allocation10 + $0x720] ss:$48 sps:$4 sm:$0xff]  }
 0x134   :  { %1637 = vmatpush1.bf16.msra.mxu1 %v10402_v37  ;;  %1595 = vmatprep.subr.bf16.mxu0 %v10407_v38  ;;  %v10485_v37 = vld [vmem:[#allocation10 + $0x4e4] ss:$48 sps:$4 sm:$0xff]  }
 0x135   :  { %1638 = vmatprep.subr.bf16.mxu1 %v10410_v39  ;;  %v10536_v38 = vld [vmem:[#allocation10 + $0x6c4] ss:$48 sps:$4 sm:$0xff]   ;;  %v10483_v39 = vld [vmem:[#allocation10 + $0x4e0] ss:$48 sps:$4 sm:$0xff]  }
 0x137   :  { %1596 = vmatpush2.bf16.msra.mxu0 %v10405_v40  ;;  %v10534_v40 = vld [vmem:[#allocation10 + $0x6c0] ss:$48 sps:$4 sm:$0xff]  }
 0x138   :  { %1639 = vmatpush2.bf16.msra.mxu1 %v10408_v41  ;;  %1597 = vmatprep.subr.bf16.mxu0 %v10413_v42  ;;  %v10488_v41 = vld [vmem:[#allocation10 + $0x484] ss:$48 sps:$4 sm:$0xff]  }
 0x139   :  { %1640 = vmatprep.subr.bf16.mxu1 %v10416_v43  ;;  %v10542_v42 = vld [vmem:[#allocation10 + $0x664] ss:$48 sps:$4 sm:$0xff]   ;;  %v10486_v43 = vld [vmem:[#allocation10 + $0x480] ss:$48 sps:$4 sm:$0xff]  }
 0x13b   :  { %1598 = vmatpush2.bf16.msra.mxu0 %v10411_v44  ;;  %v10540_v44 = vld [vmem:[#allocation10 + $0x660] ss:$48 sps:$4 sm:$0xff]  }
 0x13c   :  { %1641 = vmatpush2.bf16.msra.mxu1 %v10414_v45  ;;  %1599 = vmatprep.subr.bf16.mxu0 %v10419_v46  ;;  %v10491_v45 = vld [vmem:[#allocation10 + $0x424] ss:$48 sps:$4 sm:$0xff]  }
 0x13d   :  { %1642 = vmatprep.subr.bf16.mxu1 %v10422_v47  ;;  %v10548_v46 = vld [vmem:[#allocation10 + $0x604] ss:$48 sps:$4 sm:$0xff]   ;;  %v10489_v47 = vld [vmem:[#allocation10 + $0x420] ss:$48 sps:$4 sm:$0xff]  }
 0x13f   :  { %1600 = vmatpush2.bf16.msra.mxu0 %v10417_v48  ;;  %v10546_v48 = vld [vmem:[#allocation10 + $0x600] ss:$48 sps:$4 sm:$0xff]  }
 0x140   :  { %1643 = vmatpush2.bf16.msra.mxu1 %v10420_v49  ;;  %1601 = vmatprep.subr.bf16.mxu0 %v10425_v50  ;;  %v10494_v49 = vld [vmem:[#allocation10 + $0x3c4] ss:$48 sps:$4 sm:$0xff]  }
 0x141   :  { %1644 = vmatprep.subr.bf16.mxu1 %v10428_v52  ;;  %v10554_v50 = vld [vmem:[#allocation10 + $0xba4] ss:$48 sps:$4 sm:$0xff]   ;;  %v10492_v52 = vld [vmem:[#allocation10 + $0x3c0] ss:$48 sps:$4 sm:$0xff]  }
 0x143   :  { %1602 = vmatpush2.bf16.msra.mxu0 %v10423_v53  ;;  %v10552_v53 = vld [vmem:[#allocation10 + $0xba0] ss:$48 sps:$4 sm:$0xff]  }
 0x144   :  { %1645 = vmatpush2.bf16.msra.mxu1 %v10426_v54  ;;  %1603 = vmatprep.subr.bf16.mxu0 %v10431_v55  ;;  %v10497_v54 = vld [vmem:[#allocation10 + $0x364] ss:$48 sps:$4 sm:$0xff]  }
 0x145   :  { %1646 = vmatprep.subr.bf16.mxu1 %v10434_v56  ;;  %v10560_v55 = vld [vmem:[#allocation10 + $0xb44] ss:$48 sps:$4 sm:$0xff]   ;;  %v10495_v56 = vld [vmem:[#allocation10 + $0x360] ss:$48 sps:$4 sm:$0xff]  }
 0x147   :  { %1604 = vmatpush2.bf16.msra.mxu0 %v10429_v57  ;;  %v10558_v57 = vld [vmem:[#allocation10 + $0xb40] ss:$48 sps:$4 sm:$0xff]  }
 0x148   :  { %1647 = vmatpush2.bf16.msra.mxu1 %v10432_v58  ;;  %1605 = vmatprep.subr.bf16.mxu0 %v10437_v59  ;;  %v10500_v58 = vld [vmem:[#allocation10 + $0x304] ss:$48 sps:$4 sm:$0xff]  }
 0x149   :  { %1648 = vmatprep.subr.bf16.mxu1 %v10440_v60  ;;  %v10566_v59 = vld [vmem:[#allocation10 + $0xae4] ss:$48 sps:$4 sm:$0xff]   ;;  %v10498_v60 = vld [vmem:[#allocation10 + $0x300] ss:$48 sps:$4 sm:$0xff]  }
 0x14b   :  { %1606 = vmatpush2.bf16.msra.mxu0 %v10435_v61  ;;  %v10564_v61 = vld [vmem:[#allocation10 + $0xae0] ss:$48 sps:$4 sm:$0xff]  }
 0x14c   :  { %1649 = vmatpush2.bf16.msra.mxu1 %v10438_v62  ;;  %1607 = vmatprep.subr.bf16.mxu0 %v10443_v63  ;;  %v10503_v62 = vld [vmem:[#allocation10 + $0x2ac] ss:$48 sps:$4 sm:$0xff]   ;;  %v10572_v63 = vld [vmem:[#allocation10 + $0xa84] ss:$48 sps:$4 sm:$0xff]  }
 0x14d   :  { %1650 = vmatprep.subr.bf16.mxu1 %v10446_v0  ;;  %v10570_v0 = vld [vmem:[#allocation10 + $0xa80] ss:$48 sps:$4 sm:$0xff]  }
 0x14f   :  { %1608 = vmatpush2.bf16.msra.mxu0 %v10441_v1  ;;  %v10578_v1 = vld [vmem:[#allocation10 + $0xa24] ss:$48 sps:$4 sm:$0xff]  }
 0x150   :  { %1651 = vmatpush2.bf16.msra.mxu1 %v10444_v2  ;;  %1609 = vmatprep.subr.bf16.mxu0 %v10449_v3  ;;  %v10576_v2 = vld [vmem:[#allocation10 + $0xa20] ss:$48 sps:$4 sm:$0xff]   ;;  %v10584_v3 = vld [vmem:[#allocation10 + $0x9c4] ss:$48 sps:$4 sm:$0xff]  }
 0x151   :  { %1652 = vmatprep.subr.bf16.mxu1 %v10452_v5  ;;  %v10582_v5 = vld [vmem:[#allocation10 + $0x9c0] ss:$48 sps:$4 sm:$0xff]  }
 0x153   :  { %1610 = vmatpush2.bf16.msra.mxu0 %v10447_v6  ;;  %v10590_v6 = vld [vmem:[#allocation10 + $0x964] ss:$48 sps:$4 sm:$0xff]  }
 0x154   :  { %1653 = vmatpush2.bf16.msra.mxu1 %v10450_v7  ;;  %4045 = vmatprep.subr.bf16.mxu0 %v10455_v8  ;;  %v10588_v7 = vld [vmem:[#allocation10 + $0x960] ss:$48 sps:$4 sm:$0xff]   ;;  %v10596_v8 = vld [vmem:[#allocation10 + $0x904] ss:$48 sps:$4 sm:$0xff]  }
 0x155   :  { %4088 = vmatprep.subr.bf16.mxu1 %v10506_v21 }
 0x156   :  { %1612 = vmatmul.mubr.bf16.vlgmr.msra.gmra.mxu0 %v11457_v13 }
 0x157   :  { %1655 = vmatmul.mubr.bf16.vlgmr.msra.gmra.mxu1 %v11879_v9  ;;  %4046 = vmatpush1.bf16.msra.mxu0 %v10453_v10  ;;  %v10512_v9 = vld [vmem:[#allocation10 + $0x844] ss:$48 sps:$4 sm:$0xff]   ;;  %v10594_v10 = vld [vmem:[#allocation10 + $0x900] ss:$48 sps:$4 sm:$0xff]  }
 0x158   :  { %4047 = vmatprep.subr.bf16.mxu0 %v10458_v11  ;;  %4089 = vmatpush1.bf16.msra.mxu1 %v10504_v22  ;;  %v10602_v11 = vld [vmem:[#allocation10 + $0x8ac] ss:$48 sps:$4 sm:$0xff]  }
 0x159   :  { %4090 = vmatprep.subr.bf16.mxu1 %v10512_v9 }
 0x15b   :  { %4048 = vmatpush1.bf16.msra.mxu0 %v10456_v12  ;;  %v397_v12 = vlaneseq }
 0x15c   :  { %4049 = vmatprep.subr.bf16.mxu0 %v10461_v14  ;;  %4091 = vmatpush1.bf16.msra.mxu1 %v10510_v25 }
 0x15d   :  { %4092 = vmatprep.subr.bf16.mxu1 %v10518_v26  ;;  %v11886_v14 = vshrl.u32 %v397_v12, 7 }
 0x15f   :  { %4050 = vmatpush1.bf16.msra.mxu0 %v10459_v15 }
 0x160   :  { %4051 = vmatprep.subr.bf16.mxu0 %v10464_v16  ;;  %4093 = vmatpush1.bf16.msra.mxu1 %v10516_v28  ;;  %v11888_v16 = vld [vmem:[#allocation8] sm:$0xf] }
 0x161   :  { %4094 = vmatprep.subr.bf16.mxu1 %v10524_v30 }
 0x163   :  { %4052 = vmatpush1.bf16.msra.mxu0 %v10462_v17  ;;  %v11891_v17 = vsub.s32 0, %v11886_v14 }
 0x164   :  { %4053 = vmatprep.subr.bf16.mxu0 %v10467_v18  ;;  %4095 = vmatpush1.bf16.msra.mxu1 %v10522_v32  ;;  %v11894_v18 = vsub.s32 1, %v11886_v14 }
 0x165   :  { %4096 = vmatprep.subr.bf16.mxu1 %v10530_v34 }
 0x166   :  { %v404_v21 = vrot.slane %v11888_v16, %v11894_v18 }
 0x167   :  { %4054 = vmatpush1.bf16.msra.mxu0 %v10465_v19 }
 0x168   :  { %4055 = vmatprep.subr.bf16.mxu0 %v10470_v20  ;;  %4097 = vmatpush1.bf16.msra.mxu1 %v10528_v36 }
 0x169   :  { %4098 = vmatprep.subr.bf16.mxu1 %v10536_v38 }
 0x16b   :  { %4056 = vmatpush1.bf16.msra.mxu0 %v10468_v4  ;;  %v400_v4 = vrot.slane %v11888_v16, %v11891_v17 }
 0x16c   :  { %4057 = vmatprep.subr.bf16.mxu0 %v10473_v23  ;;  %4099 = vmatpush1.bf16.msra.mxu1 %v10534_v40 }
 0x16d   :  { %4100 = vmatprep.subr.bf16.mxu1 %v10542_v42 }
 0x16f   :  { %4058 = vmatpush1.bf16.msra.mxu0 %v10471_v24 }
 0x170   :  { %4059 = vmatprep.subr.bf16.mxu0 %v10476_v51  ;;  %4101 = vmatpush1.bf16.msra.mxu1 %v10540_v44 }
 0x171   :  { %4102 = vmatprep.subr.bf16.mxu1 %v10548_v46  ;;  %v10509_v46 = vld [vmem:[#allocation10 + $0x24c] ss:$48 sps:$4 sm:$0xff]  }
 0x173   :  { %4060 = vmatpush1.bf16.msra.mxu0 %v10474_v27 }
 0x174   :  { %4061 = vmatprep.subr.bf16.mxu0 %v10479_v29  ;;  %4103 = vmatpush1.bf16.msra.mxu1 %v10546_v48  ;;  %v10507_v48 = vld [vmem:[#allocation10 + $0x248] ss:$48 sps:$4 sm:$0xff]  }
 0x175   :  { %4104 = vmatprep.subr.bf16.mxu1 %v10554_v50  ;;  %v10513_v50 = vld [vmem:[#allocation10 + $0x1e8] ss:$48 sps:$4 sm:$0xff]  }
 0x177   :  { %4062 = vmatpush2.bf16.msra.mxu0 %v10477_v31 }
 0x178   :  { %4063 = vmatprep.subr.bf16.mxu0 %v10482_v33  ;;  %4105 = vmatpush2.bf16.msra.mxu1 %v10552_v53  ;;  %v10519_v53 = vld [vmem:[#allocation10 + $0x188] ss:$48 sps:$4 sm:$0xff]  }
 0x179   :  { %4106 = vmatprep.subr.bf16.mxu1 %v10560_v55  ;;  %v10525_v55 = vld [vmem:[#allocation10 + $0x128] ss:$48 sps:$4 sm:$0xff]  }
 0x17b   :  { %4064 = vmatpush2.bf16.msra.mxu0 %v10480_v35 }
 0x17c   :  { %4065 = vmatprep.subr.bf16.mxu0 %v10485_v37  ;;  %4107 = vmatpush2.bf16.msra.mxu1 %v10558_v57  ;;  %v10531_v57 = vld [vmem:[#allocation10 + $0xc8] ss:$48 sps:$4 sm:$0xff]  }
 0x17d   :  { %4108 = vmatprep.subr.bf16.mxu1 %v10566_v59  ;;  %v10537_v59 = vld [vmem:[#allocation10 + $0x68] ss:$48 sps:$4 sm:$0xff]  }
 0x17f   :  { %4066 = vmatpush2.bf16.msra.mxu0 %v10483_v39 }
 0x180   :  { %4067 = vmatprep.subr.bf16.mxu0 %v10488_v41  ;;  %4109 = vmatpush2.bf16.msra.mxu1 %v10564_v61  ;;  %v10543_v61 = vld [vmem:[#allocation10 + $0x8] ss:$48 sps:$4 sm:$0xff]  }
 0x181   :  { %4110 = vmatprep.subr.bf16.mxu1 %v10572_v63  ;;  %v10549_v63 = vld [vmem:[#allocation10 + $0x5a8] ss:$48 sps:$4 sm:$0xff]  }
 0x183   :  { %4068 = vmatpush2.bf16.msra.mxu0 %v10486_v43 }
 0x184   :  { %4069 = vmatprep.subr.bf16.mxu0 %v10491_v45  ;;  %4111 = vmatpush2.bf16.msra.mxu1 %v10570_v0  ;;  %v10501_v45 = vld [vmem:[#allocation10 + $0x2a8] ss:$48 sps:$4 sm:$0xff]   ;;  %v10557_v0 = vld [vmem:[#allocation10 + $0x54c] ss:$48 sps:$4 sm:$0xff]  }
 0x185   :  { %4112 = vmatprep.subr.bf16.mxu1 %v10578_v1  ;;  %v10555_v1 = vld [vmem:[#allocation10 + $0x548] ss:$48 sps:$4 sm:$0xff]  }
 0x187   :  { %4070 = vmatpush2.bf16.msra.mxu0 %v10489_v47 }
 0x188   :  { %4071 = vmatprep.subr.bf16.mxu0 %v10494_v49  ;;  %4113 = vmatpush2.bf16.msra.mxu1 %v10576_v2  ;;  %v10515_v49 = vld [vmem:[#allocation10 + $0x1ec] ss:$48 sps:$4 sm:$0xff]  }
 0x189   :  { %4114 = vmatprep.subr.bf16.mxu1 %v10584_v3  ;;  %v10563_v2 = vld [vmem:[#allocation10 + $0x4ec] ss:$48 sps:$4 sm:$0xff]  }
 0x18b   :  { %4072 = vmatpush2.bf16.msra.mxu0 %v10492_v52  ;;  %v10521_v52 = vld [vmem:[#allocation10 + $0x18c] ss:$48 sps:$4 sm:$0xff]  }
 0x18c   :  { %4073 = vmatprep.subr.bf16.mxu0 %v10497_v54  ;;  %4115 = vmatpush2.bf16.msra.mxu1 %v10582_v5  ;;  %v10527_v54 = vld [vmem:[#allocation10 + $0x12c] ss:$48 sps:$4 sm:$0xff]   ;;  %v10561_v5 = vld [vmem:[#allocation10 + $0x4e8] ss:$48 sps:$4 sm:$0xff]  }
 0x18d   :  { %4116 = vmatprep.subr.bf16.mxu1 %v10590_v6  ;;  %v10569_v6 = vld [vmem:[#allocation10 + $0x48c] ss:$48 sps:$4 sm:$0xff]  }
 0x18f   :  { %4074 = vmatpush2.bf16.msra.mxu0 %v10495_v56  ;;  %v10533_v56 = vld [vmem:[#allocation10 + $0xcc] ss:$48 sps:$4 sm:$0xff]  }
 0x190   :  { %4075 = vmatprep.subr.bf16.mxu0 %v10500_v58  ;;  %4117 = vmatpush2.bf16.msra.mxu1 %v10588_v7  ;;  %v10539_v58 = vld [vmem:[#allocation10 + $0x6c] ss:$48 sps:$4 sm:$0xff]  }
 0x191   :  { %4118 = vmatprep.subr.bf16.mxu1 %v10596_v8  ;;  %v10567_v8 = vld [vmem:[#allocation10 + $0x488] ss:$48 sps:$4 sm:$0xff]  }
 0x193   :  { %4076 = vmatpush2.bf16.msra.mxu0 %v10498_v60  ;;  %v10545_v60 = vld [vmem:[#allocation10 + $0xc] ss:$48 sps:$4 sm:$0xff]  }
 0x194   :  { %4131 = vmatprep.subr.bf16.mxu0 %v10503_v62  ;;  %4119 = vmatpush2.bf16.msra.mxu1 %v10594_v10  ;;  %v10551_v62 = vld [vmem:[#allocation10 + $0x5ac] ss:$48 sps:$4 sm:$0xff]  }
 0x195   :  { %4174 = vmatprep.subr.bf16.mxu1 %v10602_v11  ;;  %v10575_v10 = vld [vmem:[#allocation10 + $0x42c] ss:$48 sps:$4 sm:$0xff]   ;;  %v11908_v11 = vsub.s32 3, %v11886_v14 }
 0x196   :  { %v1441_v13 = vpop.f32.mrf.mxu0 }
 0x197   :  { %v1484_v19 = vpop.f32.mrf.mxu1  ;;  %v1442_v25 = vadd.f32 %v1441_v13, %v400_v4  ;;  %v11911_v13 = vsub.s32 2, %v11886_v14 }
 0x198   :  { %v1443_v15 = vpop.f32.mrf.mxu0 }
 0x199   :  { %v1486_v22 = vpop.f32.mrf.mxu1  ;;  %v1444_v9 = vadd.f32 %v1443_v15, %v404_v21  ;;  %v1485_v31 = vadd.f32 %v1484_v19, %v1442_v25  ;;  %v10573_v15 = vld [vmem:[#allocation10 + $0x428] ss:$48 sps:$4 sm:$0xff]   ;;  %v10581_v19 = vld [vmem:[#allocation10 + $0x3cc] ss:$48 sps:$4 sm:$0xff]  }
 0x19a   :  { %v1445_v20 = vpop.f32.mrf.mxu0 }
 0x19b   :  { %v1446_v24 = vadd.f32 %v1445_v20, %v400_v4  ;;  %v1488_v51 = vpop.f32.mrf.mxu1  ;;  %v1487_v29 = vadd.f32 %v1486_v22, %v1444_v9  ;;  %v412_v20 = vrot.slane %v11888_v16, %v11908_v11  ;;  %v408_v4 = vrot.slane %v11888_v16, %v11911_v13  ;;  %v10579_v22 = vld [vmem:[#allocation10 + $0x3c8] ss:$48 sps:$4 sm:$0xff]  }
 0x19c   :  { %v1447_v23 = vpop.f32.mrf.mxu0 }
 0x19d   :  { %v1448_v27 = vadd.f32 %v1447_v23, %v404_v21  ;;  %v1489_v30 = vadd.f32 %v1488_v51, %v1446_v24  ;;  %v1490_v32 = vpop.f32.mrf.mxu1  ;;  %v10587_v23 = vld [vmem:[#allocation10 + $0x36c] ss:$48 sps:$4 sm:$0xff]  }
 0x19f   :  { %v1491_v34 = vadd.f32 %v1490_v32, %v1448_v27 }
 0x1d6   :  { %v1527_v26 = vpop.f32.mrf.mxu0 }
 0x1d7   :  { %v1528_v37 = vadd.f32 %v1527_v26, %v1485_v31  ;;  %v1570_v3 = vpop.f32.mrf.mxu1  ;;  %v10593_v31 = vld [vmem:[#allocation10 + $0x30c] ss:$48 sps:$4 sm:$0xff]  }
 0x1d8   :  { %v1529_v28 = vpop.f32.mrf.mxu0  ;;  %v1571_v27 = vadd.f32 %v1570_v3, %v408_v4  ;;  %v10623_v3 = vld [vmem:[#allocation10 + $0x134] ss:$48 sps:$4 sm:$0xff]  }
 0x1d9   :  { %v1530_v35 = vadd.f32 %v1529_v28, %v1487_v29  ;;  %v1665_v43 = vmax.f32 %v1528_v37, 0.0  ;;  %v1572_v7 = vpop.f32.mrf.mxu1 }
 0x1da   :  { %v1531_v33 = vpop.f32.mrf.mxu0  ;;  %v1573_v25 = vadd.f32 %v1572_v7, %v412_v20  ;;  %v10626_v7 = vld [vmem:[#allocation10 + $0x72c] ss:$48 sps:$4 sm:$0xff]  }
 0x1db   :  { %v1532_v36 = vadd.f32 %v1531_v33, %v1489_v30  ;;  %v1666_v41 = vmax.f32 %v1530_v35, 0.0  ;;  %v1574_v12 = vpop.f32.mrf.mxu1  ;;  %v10585_v30 = vld [vmem:[#allocation10 + $0x368] ss:$48 sps:$4 sm:$0xff]  }
 0x1dc   :  { %v1533_v38 = vpop.f32.mrf.mxu0  ;;  %v1575_v28 = vadd.f32 %v1574_v12, %v408_v4  ;;  %v10627_v12 = vld [vmem:[#allocation10 + $0xd0] ss:$48 sps:$4 sm:$0xff]   ;;  %v10638_v4 = vld [vmem:[#allocation10 + $0x66c] ss:$48 sps:$4 sm:$0xff]  }
 0x1dd   :  { %v1669_v39 = vmax.f32 %v1532_v36, 0.0  ;;  %v1534_v40 = vadd.f32 %v1533_v38, %v1491_v34  ;;  %v1576_v21 = vpop.f32.mrf.mxu1 }
 0x1de   :  { %v1577_v34 = vadd.f32 %v1576_v21, %v412_v20  ;;  %v10630_v20 = vld [vmem:[#allocation10 + $0x6c8] ss:$48 sps:$4 sm:$0xff]   ;;  %v10633_v21 = vld [vmem:[#allocation10 + $0x70] ss:$48 sps:$4 sm:$0xff]  }
 0x1df   :  { %v1670_v42 = vmax.f32 %v1534_v40, 0.0  ;;  %v11902_v47 = vpack.c.bf16 %v1669_v39, %v1665_v43  ;;  %v10591_v40 = vld [vmem:[#allocation10 + $0x308] ss:$48 sps:$4 sm:$0xff]  }
 0x1e1   :  { %v11900_v44 = vpack.c.bf16 %v1670_v42, %v1666_v41  ;;  %v10599_v41 = vld [vmem:[#allocation10 + $0x2b4] ss:$48 sps:$4 sm:$0xff]  }
 0x1e3   :  { %4077 = vmatprep.mubr.bf16.mxu0 %v11900_v44 }
 0x1e4   :  { %4078 = vmatmul.mubr.bf16.vlgmr.msra.gmra.mxu0 %v11902_v47 }
 0x1e5   :  { %4132 = vmatpush1.bf16.msra.mxu0 %v10501_v45  ;;  %4163 = vmatprep.mubr.bf16.mxu0 %v11900_v44 }
 0x1e6   :  { %4133 = vmatprep.subr.bf16.mxu0 %v10509_v46  ;;  %v10597_v46 = vld [vmem:[#allocation10 + $0x2b0] ss:$48 sps:$4 sm:$0xff]  }
 0x1e9   :  { %4134 = vmatpush1.bf16.msra.mxu0 %v10507_v48 }
 0x1ea   :  { %4135 = vmatprep.subr.bf16.mxu0 %v10515_v49 }
 0x1ed   :  { %4136 = vmatpush1.bf16.msra.mxu0 %v10513_v50 }
 0x1ee   :  { %4137 = vmatprep.subr.bf16.mxu0 %v10521_v52  ;;  %v10605_v52 = vld [vmem:[#allocation10 + $0x254] ss:$48 sps:$4 sm:$0xff]  }
 0x1f1   :  { %4138 = vmatpush1.bf16.msra.mxu0 %v10519_v53 }
 0x1f2   :  { %4139 = vmatprep.subr.bf16.mxu0 %v10527_v54 }
 0x1f5   :  { %4140 = vmatpush1.bf16.msra.mxu0 %v10525_v55  ;;  %v10600_v55 = vld [vmem:[#allocation10 + $0x8a8] ss:$48 sps:$4 sm:$0xff]  }
 0x1f6   :  { %4141 = vmatprep.subr.bf16.mxu0 %v10533_v56  ;;  %v10603_v56 = vld [vmem:[#allocation10 + $0x250] ss:$48 sps:$4 sm:$0xff]  }
 0x1f9   :  { %4142 = vmatpush1.bf16.msra.mxu0 %v10531_v57 }
 0x1fa   :  { %4143 = vmatprep.subr.bf16.mxu0 %v10539_v58  ;;  %v10608_v58 = vld [vmem:[#allocation10 + $0x84c] ss:$48 sps:$4 sm:$0xff]  }
 0x1fd   :  { %4144 = vmatpush1.bf16.msra.mxu0 %v10537_v59  ;;  %v10611_v59 = vld [vmem:[#allocation10 + $0x1f4] ss:$48 sps:$4 sm:$0xff]  }
 0x1fe   :  { %4145 = vmatprep.subr.bf16.mxu0 %v10545_v60  ;;  %v10606_v60 = vld [vmem:[#allocation10 + $0x848] ss:$48 sps:$4 sm:$0xff]  }
 0x201   :  { %4146 = vmatpush1.bf16.msra.mxu0 %v10543_v61  ;;  %v10609_v61 = vld [vmem:[#allocation10 + $0x1f0] ss:$48 sps:$4 sm:$0xff]  }
 0x202   :  { %4147 = vmatprep.subr.bf16.mxu0 %v10551_v62  ;;  %v10614_v62 = vld [vmem:[#allocation10 + $0x7ec] ss:$48 sps:$4 sm:$0xff]  }
 0x205   :  { %4148 = vmatpush2.bf16.msra.mxu0 %v10549_v63  ;;  %v10617_v63 = vld [vmem:[#allocation10 + $0x194] ss:$48 sps:$4 sm:$0xff]  }
 0x206   :  { %4149 = vmatprep.subr.bf16.mxu0 %v10557_v0  ;;  %v10612_v0 = vld [vmem:[#allocation10 + $0x7e8] ss:$48 sps:$4 sm:$0xff]  }
 0x209   :  { %4150 = vmatpush2.bf16.msra.mxu0 %v10555_v1  ;;  %v10615_v1 = vld [vmem:[#allocation10 + $0x190] ss:$48 sps:$4 sm:$0xff]  }
 0x20a   :  { %4151 = vmatprep.subr.bf16.mxu0 %v10563_v2  ;;  %v10620_v2 = vld [vmem:[#allocation10 + $0x78c] ss:$48 sps:$4 sm:$0xff]  }
 0x20d   :  { %4152 = vmatpush2.bf16.msra.mxu0 %v10561_v5  ;;  %v10618_v5 = vld [vmem:[#allocation10 + $0x788] ss:$48 sps:$4 sm:$0xff]  }
 0x20e   :  { %4153 = vmatprep.subr.bf16.mxu0 %v10569_v6  ;;  %v10621_v6 = vld [vmem:[#allocation10 + $0x130] ss:$48 sps:$4 sm:$0xff]  }
 0x211   :  { %4154 = vmatpush2.bf16.msra.mxu0 %v10567_v8  ;;  %v10629_v8 = vld [vmem:[#allocation10 + $0xd4] ss:$48 sps:$4 sm:$0xff]  }
 0x212   :  { %4155 = vmatprep.subr.bf16.mxu0 %v10575_v10  ;;  %v10624_v10 = vld [vmem:[#allocation10 + $0x728] ss:$48 sps:$4 sm:$0xff]  }
 0x215   :  { %4156 = vmatpush2.bf16.msra.mxu0 %v10573_v15  ;;  %v10632_v15 = vld [vmem:[#allocation10 + $0x6cc] ss:$48 sps:$4 sm:$0xff]  }
 0x216   :  { %v1613_v9 = vpop.f32.mrf.mxu0  ;;  %4157 = vmatprep.subr.bf16.mxu0 %v10581_v19  ;;  %v10635_v19 = vld [vmem:[#allocation10 + $0x74] ss:$48 sps:$4 sm:$0xff]  }
 0x217   :  { %v1656_v24 = vpop.f32.mrf.mxu1  ;;  %v1614_v16 = vadd.f32 %v1613_v9, %v1571_v27  ;;  %v10639_v9 = vld [vmem:[#allocation10 + $0x10] ss:$48 sps:$4 sm:$0xff]   ;;  %v10650_v27 = vld [vmem:[#allocation10 + $0xbac] ss:$48 sps:$4 sm:$0xff]  }
 0x218   :  { %v1615_v51 = vpop.f32.mrf.mxu0 }
 0x219   :  { %v1658_v26 = vpop.f32.mrf.mxu1  ;;  %v1616_v29 = vadd.f32 %v1615_v51, %v1573_v25  ;;  %4158 = vmatpush2.bf16.msra.mxu0 %v10579_v22  ;;  %v1657_v43 = vadd.f32 %v1656_v24, %v1614_v16  ;;  %v10641_v22 = vld [vmem:[#allocation10 + $0x14] ss:$48 sps:$4 sm:$0xff]   ;;  %v10644_v24 = vld [vmem:[#allocation10 + $0x60c] ss:$48 sps:$4 sm:$0xff]   ;;  %v10642_v51 = vld [vmem:[#allocation10 + $0x608] ss:$48 sps:$4 sm:$0xff]  }
 0x21a   :  { %v1617_v32 = vpop.f32.mrf.mxu0  ;;  %4159 = vmatprep.subr.bf16.mxu0 %v10587_v23  ;;  %v10636_v23 = vld [vmem:[#allocation10 + $0x668] ss:$48 sps:$4 sm:$0xff]   ;;  %v10647_v25 = vld [vmem:[#allocation10 + $0x5b4] ss:$48 sps:$4 sm:$0xff]   ;;  %v10662_v16 = vld [vmem:[#allocation10 + $0xaec] ss:$48 sps:$4 sm:$0xff]  }
 0x21b   :  { %v1660_v33 = vpop.f32.mrf.mxu1  ;;  %v1618_v35 = vadd.f32 %v1617_v32, %v1575_v28  ;;  %v1659_v37 = vadd.f32 %v1658_v26, %v1616_v29  ;;  %v1667_v53 = vmax.f32 %v1657_v43, 0.0  ;;  %v10645_v26 = vld [vmem:[#allocation10 + $0x5b0] ss:$48 sps:$4 sm:$0xff]   ;;  %v10653_v28 = vld [vmem:[#allocation10 + $0x554] ss:$48 sps:$4 sm:$0xff]  }
 0x21c   :  { %v1619_v36 = vpop.f32.mrf.mxu0  ;;  %v10648_v29 = vld [vmem:[#allocation10 + $0xba8] ss:$48 sps:$4 sm:$0xff]   ;;  %v10659_v32 = vld [vmem:[#allocation10 + $0x4f4] ss:$48 sps:$4 sm:$0xff]  }
 0x21d   :  { %v1661_v38 = vadd.f32 %v1660_v33, %v1618_v35  ;;  %v1620_v39 = vadd.f32 %v1619_v36, %v1577_v34  ;;  %4160 = vmatpush2.bf16.msra.mxu0 %v10585_v30  ;;  %v1662_v42 = vpop.f32.mrf.mxu1  ;;  %v1668_v48 = vmax.f32 %v1659_v37, 0.0  ;;  %v10651_v30 = vld [vmem:[#allocation10 + $0x550] ss:$48 sps:$4 sm:$0xff]   ;;  %v10654_v33 = vld [vmem:[#allocation10 + $0xb48] ss:$48 sps:$4 sm:$0xff]  }
 0x21e   :  { %4161 = vmatprep.subr.bf16.mxu0 %v10593_v31  ;;  %v10656_v31 = vld [vmem:[#allocation10 + $0xb4c] ss:$48 sps:$4 sm:$0xff]   ;;  %v10657_v34 = vld [vmem:[#allocation10 + $0x4f0] ss:$48 sps:$4 sm:$0xff]   ;;  %v10665_v35 = vld [vmem:[#allocation10 + $0x494] ss:$48 sps:$4 sm:$0xff]  }
 0x21f   :  { %v1663_v45 = vadd.f32 %v1662_v42, %v1620_v39  ;;  %v1671_v49 = vmax.f32 %v1661_v38, 0.0  ;;  %v10660_v36 = vld [vmem:[#allocation10 + $0xae8] ss:$48 sps:$4 sm:$0xff]   ;;  %v10663_v37 = vld [vmem:[#allocation10 + $0x490] ss:$48 sps:$4 sm:$0xff]  }
 0x220   :  { %v10668_v38 = vld [vmem:[#allocation10 + $0xa8c] ss:$48 sps:$4 sm:$0xff]   ;;  %v10671_v39 = vld [vmem:[#allocation10 + $0x434] ss:$48 sps:$4 sm:$0xff]  }
 0x221   :  { %v1672_v50 = vmax.f32 %v1663_v45, 0.0  ;;  %4162 = vmatpush2.bf16.msra.mxu0 %v10591_v40  ;;  %v11920_v57 = vpack.c.bf16 %v1671_v49, %v1667_v53  ;;  %v10666_v40 = vld [vmem:[#allocation10 + $0xa88] ss:$48 sps:$4 sm:$0xff]   ;;  %v10674_v42 = vld [vmem:[#allocation10 + $0xa2c] ss:$48 sps:$4 sm:$0xff]  }
 0x222   :  { %4217 = vmatprep.subr.bf16.mxu0 %v10599_v41  ;;  %v10669_v41 = vld [vmem:[#allocation10 + $0x430] ss:$48 sps:$4 sm:$0xff]   ;;  %v10677_v43 = vld [vmem:[#allocation10 + $0x3d4] ss:$48 sps:$4 sm:$0xff]   ;;  %v10672_v45 = vld [vmem:[#allocation10 + $0xa28] ss:$48 sps:$4 sm:$0xff]  }
 0x223   :  { %v11917_v54 = vpack.c.bf16 %v1672_v50, %v1668_v48  ;;  %v10680_v48 = vld [vmem:[#allocation10 + $0x9cc] ss:$48 sps:$4 sm:$0xff]   ;;  %v10683_v49 = vld [vmem:[#allocation10 + $0x374] ss:$48 sps:$4 sm:$0xff]   ;;  %v10678_v50 = vld [vmem:[#allocation10 + $0x9c8] ss:$48 sps:$4 sm:$0xff]  }
 0x224   :  { %4164 = vmatmul.mubr.bf16.vlgmr.msra.gmra.mxu0 %v11902_v47  ;;  %v10686_v53 = vld [vmem:[#allocation10 + $0x96c] ss:$48 sps:$4 sm:$0xff]  }
 0x225   :  { %4218 = vmatpush1.bf16.msra.mxu0 %v10597_v46  ;;  %4249 = vmatprep.mubr.bf16.mxu0 %v11900_v44  ;;  %v10675_v46 = vld [vmem:[#allocation10 + $0x3d0] ss:$48 sps:$4 sm:$0xff]  }
 0x226   :  { %4120 = vmatprep.mubr.bf16.mxu1 %v11917_v54  ;;  %4219 = vmatprep.subr.bf16.mxu0 %v10605_v52  ;;  %v10681_v52 = vld [vmem:[#allocation10 + $0x370] ss:$48 sps:$4 sm:$0xff]  }
 0x227   :  { %4121 = vmatmul.mubr.bf16.vlgmr.msra.gmra.mxu1 %v11920_v57 }
 0x228   :  { %4175 = vmatpush1.bf16.msra.mxu1 %v10600_v55  ;;  %4206 = vmatprep.mubr.bf16.mxu1 %v11917_v54  ;;  %v10689_v55 = vld [vmem:[#allocation10 + $0x314] ss:$48 sps:$4 sm:$0xff]  }
 0x229   :  { %4220 = vmatpush1.bf16.msra.mxu0 %v10603_v56  ;;  %4176 = vmatprep.subr.bf16.mxu1 %v10608_v58  ;;  %v10684_v56 = vld [vmem:[#allocation10 + $0x968] ss:$48 sps:$4 sm:$0xff]   ;;  %v10687_v58 = vld [vmem:[#allocation10 + $0x310] ss:$48 sps:$4 sm:$0xff]  }
 0x22a   :  { %4221 = vmatprep.subr.bf16.mxu0 %v10611_v59  ;;  %v10692_v59 = vld [vmem:[#allocation10 + $0x90c] ss:$48 sps:$4 sm:$0xff]  }
 0x22c   :  { %4177 = vmatpush1.bf16.msra.mxu1 %v10606_v60  ;;  %v10695_v60 = vld [vmem:[#allocation10 + $0x2bc] ss:$48 sps:$4 sm:$0xff]  }
 0x22d   :  { %4222 = vmatpush1.bf16.msra.mxu0 %v10609_v61  ;;  %4178 = vmatprep.subr.bf16.mxu1 %v10614_v62  ;;  %v10690_v61 = vld [vmem:[#allocation10 + $0x908] ss:$48 sps:$4 sm:$0xff]  }
 0x22e   :  { %4223 = vmatprep.subr.bf16.mxu0 %v10617_v63  ;;  %v10693_v62 = vld [vmem:[#allocation10 + $0x2b8] ss:$48 sps:$4 sm:$0xff]   ;;  %v10698_v63 = vld [vmem:[#allocation10 + $0x8b4] ss:$48 sps:$4 sm:$0xff]  }
 0x230   :  { %4179 = vmatpush1.bf16.msra.mxu1 %v10612_v0  ;;  %v10701_v0 = vld [vmem:[#allocation10 + $0x25c] ss:$48 sps:$4 sm:$0xff]  }
 0x231   :  { %4224 = vmatpush1.bf16.msra.mxu0 %v10615_v1  ;;  %4180 = vmatprep.subr.bf16.mxu1 %v10620_v2  ;;  %v10696_v1 = vld [vmem:[#allocation10 + $0x8b0] ss:$48 sps:$4 sm:$0xff]   ;;  %v10699_v2 = vld [vmem:[#allocation10 + $0x258] ss:$48 sps:$4 sm:$0xff]  }
 0x232   :  { %4225 = vmatprep.subr.bf16.mxu0 %v10623_v3  ;;  %v10704_v3 = vld [vmem:[#allocation10 + $0x854] ss:$48 sps:$4 sm:$0xff]  }
 0x234   :  { %4181 = vmatpush1.bf16.msra.mxu1 %v10618_v5  ;;  %v10707_v5 = vld [vmem:[#allocation10 + $0x1fc] ss:$48 sps:$4 sm:$0xff]  }
 0x235   :  { %4226 = vmatpush1.bf16.msra.mxu0 %v10621_v6  ;;  %4182 = vmatprep.subr.bf16.mxu1 %v10626_v7  ;;  %v10702_v6 = vld [vmem:[#allocation10 + $0x850] ss:$48 sps:$4 sm:$0xff]   ;;  %v10705_v7 = vld [vmem:[#allocation10 + $0x1f8] ss:$48 sps:$4 sm:$0xff]  }
 0x236   :  { %4227 = vmatprep.subr.bf16.mxu0 %v10629_v8  ;;  %v10710_v8 = vld [vmem:[#allocation10 + $0x7f4] ss:$48 sps:$4 sm:$0xff]  }
 0x238   :  { %4183 = vmatpush1.bf16.msra.mxu1 %v10624_v10  ;;  %v10713_v10 = vld [vmem:[#allocation10 + $0x19c] ss:$48 sps:$4 sm:$0xff]  }
 0x239   :  { %4228 = vmatpush1.bf16.msra.mxu0 %v10627_v12  ;;  %4184 = vmatprep.subr.bf16.mxu1 %v10632_v15  ;;  %v10708_v12 = vld [vmem:[#allocation10 + $0x7f0] ss:$48 sps:$4 sm:$0xff]   ;;  %v10711_v15 = vld [vmem:[#allocation10 + $0x198] ss:$48 sps:$4 sm:$0xff]  }
 0x23a   :  { %4229 = vmatprep.subr.bf16.mxu0 %v10635_v19  ;;  %v10716_v19 = vld [vmem:[#allocation10 + $0x794] ss:$48 sps:$4 sm:$0xff]  }
 0x23c   :  { %4185 = vmatpush1.bf16.msra.mxu1 %v10630_v20  ;;  %v10719_v20 = vld [vmem:[#allocation10 + $0x13c] ss:$48 sps:$4 sm:$0xff]  }
 0x23d   :  { %4230 = vmatpush1.bf16.msra.mxu0 %v10633_v21  ;;  %4186 = vmatprep.subr.bf16.mxu1 %v10638_v4  ;;  %v10714_v21 = vld [vmem:[#allocation10 + $0x790] ss:$48 sps:$4 sm:$0xff]   ;;  %v10717_v4 = vld [vmem:[#allocation10 + $0x138] ss:$48 sps:$4 sm:$0xff]  }
 0x23e   :  { %4231 = vmatprep.subr.bf16.mxu0 %v10641_v22  ;;  %v10722_v22 = vld [vmem:[#allocation10 + $0x734] ss:$48 sps:$4 sm:$0xff]  }
 0x240   :  { %4187 = vmatpush1.bf16.msra.mxu1 %v10636_v23  ;;  %v10725_v23 = vld [vmem:[#allocation10 + $0xdc] ss:$48 sps:$4 sm:$0xff]  }
 0x241   :  { %4232 = vmatpush1.bf16.msra.mxu0 %v10639_v9  ;;  %4188 = vmatprep.subr.bf16.mxu1 %v10644_v24  ;;  %v10720_v9 = vld [vmem:[#allocation10 + $0x730] ss:$48 sps:$4 sm:$0xff]   ;;  %v10723_v24 = vld [vmem:[#allocation10 + $0xd8] ss:$48 sps:$4 sm:$0xff]  }
 0x242   :  { %4233 = vmatprep.subr.bf16.mxu0 %v10647_v25  ;;  %v10728_v25 = vld [vmem:[#allocation10 + $0x6d4] ss:$48 sps:$4 sm:$0xff]  }
 0x244   :  { %4189 = vmatpush1.bf16.msra.mxu1 %v10642_v51  ;;  %v10731_v51 = vld [vmem:[#allocation10 + $0x7c] ss:$48 sps:$4 sm:$0xff]  }
 0x245   :  { %4234 = vmatpush2.bf16.msra.mxu0 %v10645_v26  ;;  %4190 = vmatprep.subr.bf16.mxu1 %v10650_v27  ;;  %v10726_v26 = vld [vmem:[#allocation10 + $0x6d0] ss:$48 sps:$4 sm:$0xff]   ;;  %v10729_v27 = vld [vmem:[#allocation10 + $0x78] ss:$48 sps:$4 sm:$0xff]  }
 0x246   :  { %4235 = vmatprep.subr.bf16.mxu0 %v10653_v28  ;;  %v10734_v28 = vld [vmem:[#allocation10 + $0x674] ss:$48 sps:$4 sm:$0xff]  }
 0x248   :  { %4191 = vmatpush2.bf16.msra.mxu1 %v10648_v29  ;;  %v10737_v29 = vld [vmem:[#allocation10 + $0x1c] ss:$48 sps:$4 sm:$0xff]  }
 0x249   :  { %4236 = vmatpush2.bf16.msra.mxu0 %v10651_v30  ;;  %4192 = vmatprep.subr.bf16.mxu1 %v10656_v31  ;;  %v10732_v30 = vld [vmem:[#allocation10 + $0x670] ss:$48 sps:$4 sm:$0xff]   ;;  %v10735_v31 = vld [vmem:[#allocation10 + $0x18] ss:$48 sps:$4 sm:$0xff]  }
 0x24a   :  { %4237 = vmatprep.subr.bf16.mxu0 %v10659_v32  ;;  %v10740_v32 = vld [vmem:[#allocation10 + $0x614] ss:$48 sps:$4 sm:$0xff]  }
 0x24c   :  { %4193 = vmatpush2.bf16.msra.mxu1 %v10654_v33  ;;  %v10743_v33 = vld [vmem:[#allocation10 + $0x5bc] ss:$48 sps:$4 sm:$0xff]  }
 0x24d   :  { %4238 = vmatpush2.bf16.msra.mxu0 %v10657_v34  ;;  %4194 = vmatprep.subr.bf16.mxu1 %v10662_v16  ;;  %v10738_v34 = vld [vmem:[#allocation10 + $0x610] ss:$48 sps:$4 sm:$0xff]   ;;  %v10741_v16 = vld [vmem:[#allocation10 + $0x5b8] ss:$48 sps:$4 sm:$0xff]  }
 0x24e   :  { %4239 = vmatprep.subr.bf16.mxu0 %v10665_v35  ;;  %v10746_v35 = vld [vmem:[#allocation10 + $0xbb4] ss:$48 sps:$4 sm:$0xff]  }
 0x250   :  { %4195 = vmatpush2.bf16.msra.mxu1 %v10660_v36  ;;  %v10749_v36 = vld [vmem:[#allocation10 + $0x55c] ss:$48 sps:$4 sm:$0xff]  }
 0x251   :  { %4240 = vmatpush2.bf16.msra.mxu0 %v10663_v37  ;;  %4196 = vmatprep.subr.bf16.mxu1 %v10668_v38  ;;  %v10744_v37 = vld [vmem:[#allocation10 + $0xbb0] ss:$48 sps:$4 sm:$0xff]   ;;  %v10747_v38 = vld [vmem:[#allocation10 + $0x558] ss:$48 sps:$4 sm:$0xff]  }
 0x252   :  { %4241 = vmatprep.subr.bf16.mxu0 %v10671_v39  ;;  %v10752_v39 = vld [vmem:[#allocation10 + $0xb54] ss:$48 sps:$4 sm:$0xff]  }
 0x254   :  { %4197 = vmatpush2.bf16.msra.mxu1 %v10666_v40  ;;  %v10755_v40 = vld [vmem:[#allocation10 + $0x4fc] ss:$48 sps:$4 sm:$0xff]  }
 0x255   :  { %4242 = vmatpush2.bf16.msra.mxu0 %v10669_v41  ;;  %4198 = vmatprep.subr.bf16.mxu1 %v10674_v42  ;;  %v10750_v41 = vld [vmem:[#allocation10 + $0xb50] ss:$48 sps:$4 sm:$0xff]   ;;  %v10753_v42 = vld [vmem:[#allocation10 + $0x4f8] ss:$48 sps:$4 sm:$0xff]  }
 0x256   :  { %4243 = vmatprep.subr.bf16.mxu0 %v10677_v43  ;;  %v10758_v43 = vld [vmem:[#allocation10 + $0xaf4] ss:$48 sps:$4 sm:$0xff]  }
 0x258   :  { %4199 = vmatpush2.bf16.msra.mxu1 %v10672_v45  ;;  %v10761_v45 = vld [vmem:[#allocation10 + $0x49c] ss:$48 sps:$4 sm:$0xff]  }
 0x259   :  { %4244 = vmatpush2.bf16.msra.mxu0 %v10675_v46  ;;  %4200 = vmatprep.subr.bf16.mxu1 %v10680_v48  ;;  %v10756_v46 = vld [vmem:[#allocation10 + $0xaf0] ss:$48 sps:$4 sm:$0xff]   ;;  %v10759_v48 = vld [vmem:[#allocation10 + $0x498] ss:$48 sps:$4 sm:$0xff]  }
 0x25a   :  { %4245 = vmatprep.subr.bf16.mxu0 %v10683_v49  ;;  %v10764_v49 = vld [vmem:[#allocation10 + $0xa94] ss:$48 sps:$4 sm:$0xff]  }
 0x25c   :  { %4201 = vmatpush2.bf16.msra.mxu1 %v10678_v50  ;;  %v10767_v50 = vld [vmem:[#allocation10 + $0x43c] ss:$48 sps:$4 sm:$0xff]  }
 0x25d   :  { %4246 = vmatpush2.bf16.msra.mxu0 %v10681_v52  ;;  %4202 = vmatprep.subr.bf16.mxu1 %v10686_v53  ;;  %v10762_v52 = vld [vmem:[#allocation10 + $0xa90] ss:$48 sps:$4 sm:$0xff]   ;;  %v10765_v53 = vld [vmem:[#allocation10 + $0x438] ss:$48 sps:$4 sm:$0xff]  }
 0x25e   :  { %4247 = vmatprep.subr.bf16.mxu0 %v10689_v55  ;;  %v10770_v55 = vld [vmem:[#allocation10 + $0xa34] ss:$48 sps:$4 sm:$0xff]  }
 0x260   :  { %4203 = vmatpush2.bf16.msra.mxu1 %v10684_v56  ;;  %v10773_v56 = vld [vmem:[#allocation10 + $0x3dc] ss:$48 sps:$4 sm:$0xff]  }
 0x261   :  { %4248 = vmatpush2.bf16.msra.mxu0 %v10687_v58  ;;  %4204 = vmatprep.subr.bf16.mxu1 %v10692_v59  ;;  %v10768_v58 = vld [vmem:[#allocation10 + $0xa30] ss:$48 sps:$4 sm:$0xff]   ;;  %v10771_v59 = vld [vmem:[#allocation10 + $0x3d8] ss:$48 sps:$4 sm:$0xff]  }
 0x262   :  { %4303 = vmatprep.subr.bf16.mxu0 %v10695_v60  ;;  %v10776_v60 = vld [vmem:[#allocation10 + $0x9d4] ss:$48 sps:$4 sm:$0xff]  }
 0x264   :  { %4205 = vmatpush2.bf16.msra.mxu1 %v10690_v61  ;;  %4250 = vmatmul.mubr.bf16.vlgmr.msra.gmra.mxu0 %v11902_v47  ;;  %v10779_v61 = vld [vmem:[#allocation10 + $0x37c] ss:$48 sps:$4 sm:$0xff]  }
 0x265   :  { %4304 = vmatpush1.bf16.msra.mxu0 %v10693_v62  ;;  %4335 = vmatprep.mubr.bf16.mxu0 %v11900_v44  ;;  %v10774_v62 = vld [vmem:[#allocation10 + $0x9d0] ss:$48 sps:$4 sm:$0xff]  }
 0x266   :  { %4260 = vmatprep.subr.bf16.mxu1 %v10698_v63  ;;  %4305 = vmatprep.subr.bf16.mxu0 %v10701_v0  ;;  %v10777_v63 = vld [vmem:[#allocation10 + $0x378] ss:$48 sps:$4 sm:$0xff]   ;;  %v10782_v0 = vld [vmem:[#allocation10 + $0x974] ss:$48 sps:$4 sm:$0xff]  }
 0x267   :  { %4207 = vmatmul.mubr.bf16.vlgmr.msra.gmra.mxu1 %v11920_v57 }
 0x268   :  { %4261 = vmatpush1.bf16.msra.mxu1 %v10696_v1  ;;  %4292 = vmatprep.mubr.bf16.mxu1 %v11917_v54  ;;  %v10785_v1 = vld [vmem:[#allocation10 + $0x31c] ss:$48 sps:$4 sm:$0xff]  }
 0x269   :  { %4306 = vmatpush1.bf16.msra.mxu0 %v10699_v2  ;;  %4262 = vmatprep.subr.bf16.mxu1 %v10704_v3  ;;  %v10780_v2 = vld [vmem:[#allocation10 + $0x970] ss:$48 sps:$4 sm:$0xff]   ;;  %v10783_v3 = vld [vmem:[#allocation10 + $0x318] ss:$48 sps:$4 sm:$0xff]  }
 0x26a   :  { %4307 = vmatprep.subr.bf16.mxu0 %v10707_v5  ;;  %v10788_v5 = vld [vmem:[#allocation10 + $0x914] ss:$48 sps:$4 sm:$0xff]  }
 0x26c   :  { %4263 = vmatpush1.bf16.msra.mxu1 %v10702_v6  ;;  %v10791_v6 = vld [vmem:[#allocation10 + $0x2c4] ss:$48 sps:$4 sm:$0xff]  }
 0x26d   :  { %4308 = vmatpush1.bf16.msra.mxu0 %v10705_v7  ;;  %4264 = vmatprep.subr.bf16.mxu1 %v10710_v8  ;;  %v10786_v7 = vld [vmem:[#allocation10 + $0x910] ss:$48 sps:$4 sm:$0xff]  }
 0x26e   :  { %4309 = vmatprep.subr.bf16.mxu0 %v10713_v10  ;;  %v10789_v8 = vld [vmem:[#allocation10 + $0x2c0] ss:$48 sps:$4 sm:$0xff]   ;;  %v10794_v10 = vld [vmem:[#allocation10 + $0x8bc] ss:$48 sps:$4 sm:$0xff]  }
 0x270   :  { %4265 = vmatpush1.bf16.msra.mxu1 %v10708_v12  ;;  %v10797_v12 = vld [vmem:[#allocation10 + $0x264] ss:$48 sps:$4 sm:$0xff]  }
 0x271   :  { %4310 = vmatpush1.bf16.msra.mxu0 %v10711_v15  ;;  %4266 = vmatprep.subr.bf16.mxu1 %v10716_v19  ;;  %v10792_v15 = vld [vmem:[#allocation10 + $0x8b8] ss:$48 sps:$4 sm:$0xff]   ;;  %v10795_v19 = vld [vmem:[#allocation10 + $0x260] ss:$48 sps:$4 sm:$0xff]  }
 0x272   :  { %4311 = vmatprep.subr.bf16.mxu0 %v10719_v20  ;;  %v10800_v20 = vld [vmem:[#allocation10 + $0x85c] ss:$48 sps:$4 sm:$0xff]  }
 0x274   :  { %4267 = vmatpush1.bf16.msra.mxu1 %v10714_v21  ;;  %v10803_v21 = vld [vmem:[#allocation10 + $0x204] ss:$48 sps:$4 sm:$0xff]  }
 0x275   :  { %4312 = vmatpush1.bf16.msra.mxu0 %v10717_v4  ;;  %4268 = vmatprep.subr.bf16.mxu1 %v10722_v22  ;;  %v10798_v4 = vld [vmem:[#allocation10 + $0x858] ss:$48 sps:$4 sm:$0xff]   ;;  %v10801_v22 = vld [vmem:[#allocation10 + $0x200] ss:$48 sps:$4 sm:$0xff]  }
 0x276   :  { %4313 = vmatprep.subr.bf16.mxu0 %v10725_v23  ;;  %v10806_v23 = vld [vmem:[#allocation10 + $0x7fc] ss:$48 sps:$4 sm:$0xff]  }
 0x278   :  { %4269 = vmatpush1.bf16.msra.mxu1 %v10720_v9  ;;  %v10809_v9 = vld [vmem:[#allocation10 + $0x1a4] ss:$48 sps:$4 sm:$0xff]  }
 0x279   :  { %4314 = vmatpush1.bf16.msra.mxu0 %v10723_v24  ;;  %4270 = vmatprep.subr.bf16.mxu1 %v10728_v25  ;;  %v10804_v24 = vld [vmem:[#allocation10 + $0x7f8] ss:$48 sps:$4 sm:$0xff]   ;;  %v10807_v25 = vld [vmem:[#allocation10 + $0x1a0] ss:$48 sps:$4 sm:$0xff]  }
 0x27a   :  { %4315 = vmatprep.subr.bf16.mxu0 %v10731_v51  ;;  %v10812_v51 = vld [vmem:[#allocation10 + $0x79c] ss:$48 sps:$4 sm:$0xff]  }
 0x27c   :  { %4271 = vmatpush1.bf16.msra.mxu1 %v10726_v26  ;;  %v10815_v26 = vld [vmem:[#allocation10 + $0x144] ss:$48 sps:$4 sm:$0xff]  }
 0x27d   :  { %4316 = vmatpush1.bf16.msra.mxu0 %v10729_v27  ;;  %4272 = vmatprep.subr.bf16.mxu1 %v10734_v28  ;;  %v10810_v27 = vld [vmem:[#allocation10 + $0x798] ss:$48 sps:$4 sm:$0xff]   ;;  %v10813_v28 = vld [vmem:[#allocation10 + $0x140] ss:$48 sps:$4 sm:$0xff]  }
 0x27e   :  { %4317 = vmatprep.subr.bf16.mxu0 %v10737_v29  ;;  %v10818_v29 = vld [vmem:[#allocation10 + $0x73c] ss:$48 sps:$4 sm:$0xff]  }
 0x280   :  { %4273 = vmatpush1.bf16.msra.mxu1 %v10732_v30  ;;  %v10821_v30 = vld [vmem:[#allocation10 + $0xe4] ss:$48 sps:$4 sm:$0xff]  }
 0x281   :  { %4318 = vmatpush1.bf16.msra.mxu0 %v10735_v31  ;;  %4274 = vmatprep.subr.bf16.mxu1 %v10740_v32  ;;  %v10816_v31 = vld [vmem:[#allocation10 + $0x738] ss:$48 sps:$4 sm:$0xff]   ;;  %v10819_v32 = vld [vmem:[#allocation10 + $0xe0] ss:$48 sps:$4 sm:$0xff]  }
 0x282   :  { %4319 = vmatprep.subr.bf16.mxu0 %v10743_v33  ;;  %v10824_v33 = vld [vmem:[#allocation10 + $0x6dc] ss:$48 sps:$4 sm:$0xff]  }
 0x284   :  { %4275 = vmatpush1.bf16.msra.mxu1 %v10738_v34  ;;  %v10827_v34 = vld [vmem:[#allocation10 + $0x84] ss:$48 sps:$4 sm:$0xff]  }
 0x285   :  { %4320 = vmatpush2.bf16.msra.mxu0 %v10741_v16  ;;  %4276 = vmatprep.subr.bf16.mxu1 %v10746_v35  ;;  %v10822_v16 = vld [vmem:[#allocation10 + $0x6d8] ss:$48 sps:$4 sm:$0xff]   ;;  %v10825_v35 = vld [vmem:[#allocation10 + $0x80] ss:$48 sps:$4 sm:$0xff]  }
 0x286   :  { %4321 = vmatprep.subr.bf16.mxu0 %v10749_v36  ;;  %v10830_v36 = vld [vmem:[#allocation10 + $0x67c] ss:$48 sps:$4 sm:$0xff]  }
 0x288   :  { %4277 = vmatpush2.bf16.msra.mxu1 %v10744_v37  ;;  %v10833_v37 = vld [vmem:[#allocation10 + $0x24] ss:$48 sps:$4 sm:$0xff]  }
 0x289   :  { %4322 = vmatpush2.bf16.msra.mxu0 %v10747_v38  ;;  %4278 = vmatprep.subr.bf16.mxu1 %v10752_v39  ;;  %v10828_v38 = vld [vmem:[#allocation10 + $0x678] ss:$48 sps:$4 sm:$0xff]   ;;  %v10831_v39 = vld [vmem:[#allocation10 + $0x20] ss:$48 sps:$4 sm:$0xff]  }
 0x28a   :  { %4323 = vmatprep.subr.bf16.mxu0 %v10755_v40  ;;  %v10836_v40 = vld [vmem:[#allocation10 + $0x61c] ss:$48 sps:$4 sm:$0xff]  }
 0x28c   :  { %4279 = vmatpush2.bf16.msra.mxu1 %v10750_v41  ;;  %v10839_v41 = vld [vmem:[#allocation10 + $0x5c4] ss:$48 sps:$4 sm:$0xff]  }
 0x28d   :  { %4324 = vmatpush2.bf16.msra.mxu0 %v10753_v42  ;;  %4280 = vmatprep.subr.bf16.mxu1 %v10758_v43  ;;  %v10834_v42 = vld [vmem:[#allocation10 + $0x618] ss:$48 sps:$4 sm:$0xff]   ;;  %v10837_v43 = vld [vmem:[#allocation10 + $0x5c0] ss:$48 sps:$4 sm:$0xff]  }
 0x28e   :  { %4325 = vmatprep.subr.bf16.mxu0 %v10761_v45  ;;  %v10842_v45 = vld [vmem:[#allocation10 + $0xbbc] ss:$48 sps:$4 sm:$0xff]  }
 0x290   :  { %4281 = vmatpush2.bf16.msra.mxu1 %v10756_v46  ;;  %v10845_v46 = vld [vmem:[#allocation10 + $0x564] ss:$48 sps:$4 sm:$0xff]  }
 0x291   :  { %4326 = vmatpush2.bf16.msra.mxu0 %v10759_v48  ;;  %4282 = vmatprep.subr.bf16.mxu1 %v10764_v49  ;;  %v10840_v48 = vld [vmem:[#allocation10 + $0xbb8] ss:$48 sps:$4 sm:$0xff]   ;;  %v10843_v49 = vld [vmem:[#allocation10 + $0x560] ss:$48 sps:$4 sm:$0xff]  }
 0x292   :  { %4327 = vmatprep.subr.bf16.mxu0 %v10767_v50  ;;  %v10848_v50 = vld [vmem:[#allocation10 + $0xb5c] ss:$48 sps:$4 sm:$0xff]  }
 0x294   :  { %4283 = vmatpush2.bf16.msra.mxu1 %v10762_v52  ;;  %v10851_v52 = vld [vmem:[#allocation10 + $0x504] ss:$48 sps:$4 sm:$0xff]  }
 0x295   :  { %4328 = vmatpush2.bf16.msra.mxu0 %v10765_v53  ;;  %4284 = vmatprep.subr.bf16.mxu1 %v10770_v55  ;;  %v10846_v53 = vld [vmem:[#allocation10 + $0xb58] ss:$48 sps:$4 sm:$0xff]   ;;  %v10849_v55 = vld [vmem:[#allocation10 + $0x500] ss:$48 sps:$4 sm:$0xff]  }
 0x296   :  { %4329 = vmatprep.subr.bf16.mxu0 %v10773_v56  ;;  %v10854_v56 = vld [vmem:[#allocation10 + $0xafc] ss:$48 sps:$4 sm:$0xff]  }
 0x298   :  { %4285 = vmatpush2.bf16.msra.mxu1 %v10768_v58  ;;  %v10857_v58 = vld [vmem:[#allocation10 + $0x4a4] ss:$48 sps:$4 sm:$0xff]  }
 0x299   :  { %4330 = vmatpush2.bf16.msra.mxu0 %v10771_v59  ;;  %4286 = vmatprep.subr.bf16.mxu1 %v10776_v60  ;;  %v10852_v59 = vld [vmem:[#allocation10 + $0xaf8] ss:$48 sps:$4 sm:$0xff]   ;;  %v10855_v60 = vld [vmem:[#allocation10 + $0x4a0] ss:$48 sps:$4 sm:$0xff]  }
 0x29a   :  { %4331 = vmatprep.subr.bf16.mxu0 %v10779_v61  ;;  %v10860_v61 = vld [vmem:[#allocation10 + $0xa9c] ss:$48 sps:$4 sm:$0xff]  }
 0x29c   :  { %4287 = vmatpush2.bf16.msra.mxu1 %v10774_v62  ;;  %v10863_v62 = vld [vmem:[#allocation10 + $0x444] ss:$48 sps:$4 sm:$0xff]  }
 0x29d   :  { %4332 = vmatpush2.bf16.msra.mxu0 %v10777_v63  ;;  %4288 = vmatprep.subr.bf16.mxu1 %v10782_v0  ;;  %v10858_v63 = vld [vmem:[#allocation10 + $0xa98] ss:$48 sps:$4 sm:$0xff]   ;;  %v10861_v0 = vld [vmem:[#allocation10 + $0x440] ss:$48 sps:$4 sm:$0xff]  }
 0x29e   :  { %4333 = vmatprep.subr.bf16.mxu0 %v10785_v1  ;;  %v10866_v1 = vld [vmem:[#allocation10 + $0xa3c] ss:$48 sps:$4 sm:$0xff]  }
 0x2a0   :  { %4289 = vmatpush2.bf16.msra.mxu1 %v10780_v2  ;;  %v10869_v2 = vld [vmem:[#allocation10 + $0x3e4] ss:$48 sps:$4 sm:$0xff]  }
 0x2a1   :  { %4334 = vmatpush2.bf16.msra.mxu0 %v10783_v3  ;;  %4290 = vmatprep.subr.bf16.mxu1 %v10788_v5  ;;  %v10864_v3 = vld [vmem:[#allocation10 + $0xa38] ss:$48 sps:$4 sm:$0xff]   ;;  %v10867_v5 = vld [vmem:[#allocation10 + $0x3e0] ss:$48 sps:$4 sm:$0xff]  }
 0x2a2   :  { %4389 = vmatprep.subr.bf16.mxu0 %v10791_v6  ;;  %v10872_v6 = vld [vmem:[#allocation10 + $0x9dc] ss:$48 sps:$4 sm:$0xff]  }
 0x2a4   :  { %4291 = vmatpush2.bf16.msra.mxu1 %v10786_v7  ;;  %4336 = vmatmul.mubr.bf16.vlgmr.msra.gmra.mxu0 %v11902_v47  ;;  %v10875_v7 = vld [vmem:[#allocation10 + $0x384] ss:$48 sps:$4 sm:$0xff]  }
 0x2a5   :  { %4390 = vmatpush1.bf16.msra.mxu0 %v10789_v8  ;;  %4421 = vmatprep.mubr.bf16.mxu0 %v11900_v44  ;;  %v10870_v8 = vld [vmem:[#allocation10 + $0x9d8] ss:$48 sps:$4 sm:$0xff]  }
 0x2a6   :  { %4346 = vmatprep.subr.bf16.mxu1 %v10794_v10  ;;  %4391 = vmatprep.subr.bf16.mxu0 %v10797_v12  ;;  %v10873_v10 = vld [vmem:[#allocation10 + $0x380] ss:$48 sps:$4 sm:$0xff]   ;;  %v10878_v12 = vld [vmem:[#allocation10 + $0x97c] ss:$48 sps:$4 sm:$0xff]  }
 0x2a7   :  { %4293 = vmatmul.mubr.bf16.vlgmr.msra.gmra.mxu1 %v11920_v57 }
 0x2a8   :  { %4347 = vmatpush1.bf16.msra.mxu1 %v10792_v15  ;;  %4378 = vmatprep.mubr.bf16.mxu1 %v11917_v54  ;;  %v10881_v15 = vld [vmem:[#allocation10 + $0x324] ss:$48 sps:$4 sm:$0xff]  }
 0x2a9   :  { %4392 = vmatpush1.bf16.msra.mxu0 %v10795_v19  ;;  %4348 = vmatprep.subr.bf16.mxu1 %v10800_v20  ;;  %v10876_v19 = vld [vmem:[#allocation10 + $0x978] ss:$48 sps:$4 sm:$0xff]   ;;  %v10879_v20 = vld [vmem:[#allocation10 + $0x320] ss:$48 sps:$4 sm:$0xff]  }
 0x2aa   :  { %4393 = vmatprep.subr.bf16.mxu0 %v10803_v21  ;;  %v10884_v21 = vld [vmem:[#allocation10 + $0x91c] ss:$48 sps:$4 sm:$0xff]  }
 0x2ac   :  { %4349 = vmatpush1.bf16.msra.mxu1 %v10798_v4  ;;  %v10887_v4 = vld [vmem:[#allocation10 + $0x2cc] ss:$48 sps:$4 sm:$0xff]  }
 0x2ad   :  { %4394 = vmatpush1.bf16.msra.mxu0 %v10801_v22  ;;  %4350 = vmatprep.subr.bf16.mxu1 %v10806_v23  ;;  %v10882_v22 = vld [vmem:[#allocation10 + $0x918] ss:$48 sps:$4 sm:$0xff]  }
 0x2ae   :  { %4395 = vmatprep.subr.bf16.mxu0 %v10809_v9  ;;  %v10885_v23 = vld [vmem:[#allocation10 + $0x2c8] ss:$48 sps:$4 sm:$0xff]   ;;  %v10890_v9 = vld [vmem:[#allocation10 + $0x8c4] ss:$48 sps:$4 sm:$0xff]  }
 0x2b0   :  { %4351 = vmatpush1.bf16.msra.mxu1 %v10804_v24  ;;  %v10893_v24 = vld [vmem:[#allocation10 + $0x26c] ss:$48 sps:$4 sm:$0xff]  }
 0x2b1   :  { %4396 = vmatpush1.bf16.msra.mxu0 %v10807_v25  ;;  %4352 = vmatprep.subr.bf16.mxu1 %v10812_v51  ;;  %v10888_v25 = vld [vmem:[#allocation10 + $0x8c0] ss:$48 sps:$4 sm:$0xff]   ;;  %v10891_v51 = vld [vmem:[#allocation10 + $0x268] ss:$48 sps:$4 sm:$0xff]  }
 0x2b2   :  { %4397 = vmatprep.subr.bf16.mxu0 %v10815_v26  ;;  %v10896_v26 = vld [vmem:[#allocation10 + $0x864] ss:$48 sps:$4 sm:$0xff]  }
 0x2b4   :  { %4353 = vmatpush1.bf16.msra.mxu1 %v10810_v27  ;;  %v10899_v27 = vld [vmem:[#allocation10 + $0x20c] ss:$48 sps:$4 sm:$0xff]  }
 0x2b5   :  { %4398 = vmatpush1.bf16.msra.mxu0 %v10813_v28  ;;  %4354 = vmatprep.subr.bf16.mxu1 %v10818_v29  ;;  %v10894_v28 = vld [vmem:[#allocation10 + $0x860] ss:$48 sps:$4 sm:$0xff]   ;;  %v10897_v29 = vld [vmem:[#allocation10 + $0x208] ss:$48 sps:$4 sm:$0xff]  }
 0x2b6   :  { %4399 = vmatprep.subr.bf16.mxu0 %v10821_v30  ;;  %v10902_v30 = vld [vmem:[#allocation10 + $0x804] ss:$48 sps:$4 sm:$0xff]  }
 0x2b8   :  { %4355 = vmatpush1.bf16.msra.mxu1 %v10816_v31  ;;  %v10905_v31 = vld [vmem:[#allocation10 + $0x1ac] ss:$48 sps:$4 sm:$0xff]  }
 0x2b9   :  { %4400 = vmatpush1.bf16.msra.mxu0 %v10819_v32  ;;  %4356 = vmatprep.subr.bf16.mxu1 %v10824_v33  ;;  %v10900_v32 = vld [vmem:[#allocation10 + $0x800] ss:$48 sps:$4 sm:$0xff]   ;;  %v10908_v33 = vld [vmem:[#allocation10 + $0x7a4] ss:$48 sps:$4 sm:$0xff]  }
 0x2ba   :  { %4401 = vmatprep.subr.bf16.mxu0 %v10827_v34  ;;  %v10911_v34 = vld [vmem:[#allocation10 + $0x14c] ss:$48 sps:$4 sm:$0xff]  }
 0x2bc   :  { %4357 = vmatpush1.bf16.msra.mxu1 %v10822_v16  ;;  %v10906_v16 = vld [vmem:[#allocation10 + $0x7a0] ss:$48 sps:$4 sm:$0xff]  }
 0x2bd   :  { %4402 = vmatpush1.bf16.msra.mxu0 %v10825_v35  ;;  %4358 = vmatprep.subr.bf16.mxu1 %v10830_v36  ;;  %v10909_v35 = vld [vmem:[#allocation10 + $0x148] ss:$48 sps:$4 sm:$0xff]   ;;  %v10914_v36 = vld [vmem:[#allocation10 + $0x744] ss:$48 sps:$4 sm:$0xff]  }
 0x2be   :  { %4403 = vmatprep.subr.bf16.mxu0 %v10833_v37  ;;  %v10917_v37 = vld [vmem:[#allocation10 + $0xec] ss:$48 sps:$4 sm:$0xff]  }
 0x2c0   :  { %4359 = vmatpush1.bf16.msra.mxu1 %v10828_v38  ;;  %v10912_v38 = vld [vmem:[#allocation10 + $0x740] ss:$48 sps:$4 sm:$0xff]  }
 0x2c1   :  { %4404 = vmatpush1.bf16.msra.mxu0 %v10831_v39  ;;  %4360 = vmatprep.subr.bf16.mxu1 %v10836_v40  ;;  %v10915_v39 = vld [vmem:[#allocation10 + $0xe8] ss:$48 sps:$4 sm:$0xff]   ;;  %v10920_v40 = vld [vmem:[#allocation10 + $0x6e4] ss:$48 sps:$4 sm:$0xff]  }
 0x2c2   :  { %4405 = vmatprep.subr.bf16.mxu0 %v10839_v41  ;;  %v10923_v41 = vld [vmem:[#allocation10 + $0x8c] ss:$48 sps:$4 sm:$0xff]  }
 0x2c4   :  { %4361 = vmatpush1.bf16.msra.mxu1 %v10834_v42  ;;  %v10918_v42 = vld [vmem:[#allocation10 + $0x6e0] ss:$48 sps:$4 sm:$0xff]  }
 0x2c5   :  { %4406 = vmatpush2.bf16.msra.mxu0 %v10837_v43  ;;  %4362 = vmatprep.subr.bf16.mxu1 %v10842_v45  ;;  %v10921_v43 = vld [vmem:[#allocation10 + $0x88] ss:$48 sps:$4 sm:$0xff]   ;;  %v10926_v45 = vld [vmem:[#allocation10 + $0x684] ss:$48 sps:$4 sm:$0xff]  }
 0x2c6   :  { %4407 = vmatprep.subr.bf16.mxu0 %v10845_v46  ;;  %v10929_v46 = vld [vmem:[#allocation10 + $0x2c] ss:$48 sps:$4 sm:$0xff]  }
 0x2c8   :  { %4363 = vmatpush2.bf16.msra.mxu1 %v10840_v48  ;;  %v10924_v48 = vld [vmem:[#allocation10 + $0x680] ss:$48 sps:$4 sm:$0xff]  }
 0x2c9   :  { %4408 = vmatpush2.bf16.msra.mxu0 %v10843_v49  ;;  %4364 = vmatprep.subr.bf16.mxu1 %v10848_v50  ;;  %v10927_v49 = vld [vmem:[#allocation10 + $0x28] ss:$48 sps:$4 sm:$0xff]   ;;  %v10932_v50 = vld [vmem:[#allocation10 + $0x624] ss:$48 sps:$4 sm:$0xff]  }
 0x2ca   :  { %4409 = vmatprep.subr.bf16.mxu0 %v10851_v52  ;;  %v10935_v52 = vld [vmem:[#allocation10 + $0x5cc] ss:$48 sps:$4 sm:$0xff]  }
 0x2cc   :  { %4365 = vmatpush2.bf16.msra.mxu1 %v10846_v53  ;;  %v10930_v53 = vld [vmem:[#allocation10 + $0x620] ss:$48 sps:$4 sm:$0xff]  }
 0x2cd   :  { %4410 = vmatpush2.bf16.msra.mxu0 %v10849_v55  ;;  %4366 = vmatprep.subr.bf16.mxu1 %v10854_v56  ;;  %v10933_v55 = vld [vmem:[#allocation10 + $0x5c8] ss:$48 sps:$4 sm:$0xff]   ;;  %v10938_v56 = vld [vmem:[#allocation10 + $0xbc4] ss:$48 sps:$4 sm:$0xff]  }
 0x2ce   :  { %4411 = vmatprep.subr.bf16.mxu0 %v10857_v58  ;;  %v10941_v58 = vld [vmem:[#allocation10 + $0x56c] ss:$48 sps:$4 sm:$0xff]  }
 0x2d0   :  { %4367 = vmatpush2.bf16.msra.mxu1 %v10852_v59  ;;  %v10936_v59 = vld [vmem:[#allocation10 + $0xbc0] ss:$48 sps:$4 sm:$0xff]  }
 0x2d1   :  { %4412 = vmatpush2.bf16.msra.mxu0 %v10855_v60  ;;  %4368 = vmatprep.subr.bf16.mxu1 %v10860_v61  ;;  %v10939_v60 = vld [vmem:[#allocation10 + $0x568] ss:$48 sps:$4 sm:$0xff]   ;;  %v10944_v61 = vld [vmem:[#allocation10 + $0xb64] ss:$48 sps:$4 sm:$0xff]  }
 0x2d2   :  { %4413 = vmatprep.subr.bf16.mxu0 %v10863_v62  ;;  %v10947_v62 = vld [vmem:[#allocation10 + $0x50c] ss:$48 sps:$4 sm:$0xff]  }
 0x2d4   :  { %4369 = vmatpush2.bf16.msra.mxu1 %v10858_v63  ;;  %v10942_v63 = vld [vmem:[#allocation10 + $0xb60] ss:$48 sps:$4 sm:$0xff]  }
 0x2d5   :  { %4414 = vmatpush2.bf16.msra.mxu0 %v10861_v0  ;;  %4370 = vmatprep.subr.bf16.mxu1 %v10866_v1  ;;  %v10945_v0 = vld [vmem:[#allocation10 + $0x508] ss:$48 sps:$4 sm:$0xff]   ;;  %v10950_v1 = vld [vmem:[#allocation10 + $0xb04] ss:$48 sps:$4 sm:$0xff]  }
 0x2d6   :  { %4415 = vmatprep.subr.bf16.mxu0 %v10869_v2  ;;  %v10953_v2 = vld [vmem:[#allocation10 + $0x4ac] ss:$48 sps:$4 sm:$0xff]  }
 0x2d8   :  { %4371 = vmatpush2.bf16.msra.mxu1 %v10864_v3  ;;  %v10948_v3 = vld [vmem:[#allocation10 + $0xb00] ss:$48 sps:$4 sm:$0xff]  }
 0x2d9   :  { %4416 = vmatpush2.bf16.msra.mxu0 %v10867_v5  ;;  %4372 = vmatprep.subr.bf16.mxu1 %v10872_v6  ;;  %v10951_v5 = vld [vmem:[#allocation10 + $0x4a8] ss:$48 sps:$4 sm:$0xff]   ;;  %v10956_v6 = vld [vmem:[#allocation10 + $0xaa4] ss:$48 sps:$4 sm:$0xff]  }
 0x2da   :  { %4417 = vmatprep.subr.bf16.mxu0 %v10875_v7  ;;  %v10959_v7 = vld [vmem:[#allocation10 + $0x44c] ss:$48 sps:$4 sm:$0xff]  }
 0x2dc   :  { %4373 = vmatpush2.bf16.msra.mxu1 %v10870_v8  ;;  %v11938_v8 = vpop.f32.mrf.mxu0 }
 0x2dd   :  { %4418 = vmatpush2.bf16.msra.mxu0 %v10873_v10  ;;  %4374 = vmatprep.subr.bf16.mxu1 %v10878_v12  ;;  %v10954_v10 = vld [vmem:[#allocation10 + $0xaa0] ss:$48 sps:$4 sm:$0xff]   ;;  %v10957_v12 = vld [vmem:[#allocation10 + $0x448] ss:$48 sps:$4 sm:$0xff]  }
 0x2de   :  { %4419 = vmatprep.subr.bf16.mxu0 %v10881_v15  ;;  %v10962_v15 = vld [vmem:[#allocation10 + $0xa44] ss:$48 sps:$4 sm:$0xff]  }
 0x2e0   :  { %4375 = vmatpush2.bf16.msra.mxu1 %v10876_v19  ;;  %v10965_v19 = vld [vmem:[#allocation10 + $0x3ec] ss:$48 sps:$4 sm:$0xff]  }
 0x2e1   :  { %4420 = vmatpush2.bf16.msra.mxu0 %v10879_v20  ;;  %4376 = vmatprep.subr.bf16.mxu1 %v10884_v21  ;;  %v11940_v20 = vpop.f32.mrf.mxu0  ;;  %v10960_v21 = vld [vmem:[#allocation10 + $0xa40] ss:$48 sps:$4 sm:$0xff]  }
 0x2e2   :  { %4475 = vmatprep.subr.bf16.mxu0 %v10887_v4  ;;  %v10963_v4 = vld [vmem:[#allocation10 + $0x3e8] ss:$48 sps:$4 sm:$0xff]  }
 0x2e4   :  { %4377 = vmatpush2.bf16.msra.mxu1 %v10882_v22  ;;  %4422 = vmatmul.mubr.bf16.vlgmr.msra.gmra.mxu0 %v11902_v47  ;;  %v10968_v22 = vld [vmem:[#allocation10 + $0x9e4] ss:$48 sps:$4 sm:$0xff]  }
 0x2e5   :  { %4476 = vmatpush1.bf16.msra.mxu0 %v10885_v23  ;;  %4507 = vmatprep.mubr.bf16.mxu0 %v11900_v44  ;;  %v10903_v44 = vld [vmem:[#allocation10 + $0x1a8] ss:$48 sps:$4 sm:$0xff]   ;;  %v10971_v23 = vld [vmem:[#allocation10 + $0x38c] ss:$48 sps:$4 sm:$0xff]  }
 0x2e6   :  { %4432 = vmatprep.subr.bf16.mxu1 %v10890_v9  ;;  %4477 = vmatprep.subr.bf16.mxu0 %v10893_v24  ;;  %v11942_v9 = vpop.f32.mrf.mxu0  ;;  %v10966_v24 = vld [vmem:[#allocation10 + $0x9e0] ss:$48 sps:$4 sm:$0xff]  }
 0x2e7   :  { %4379 = vmatmul.mubr.bf16.vlgmr.msra.gmra.mxu1 %v11920_v57 }
 0x2e8   :  { %4433 = vmatpush1.bf16.msra.mxu1 %v10888_v25  ;;  %4464 = vmatprep.mubr.bf16.mxu1 %v11917_v54  ;;  %v11944_v25 = vpop.f32.mrf.mxu1 }
 0x2e9   :  { %4478 = vmatpush1.bf16.msra.mxu0 %v10891_v51  ;;  %4434 = vmatprep.subr.bf16.mxu1 %v10896_v26  ;;  %v10969_v51 = vld [vmem:[#allocation10 + $0x388] ss:$48 sps:$4 sm:$0xff]   ;;  %v10974_v26 = vld [vmem:[#allocation10 + $0x984] ss:$48 sps:$4 sm:$0xff]  }
 0x2ea   :  { %4479 = vmatprep.subr.bf16.mxu0 %v10899_v27  ;;  %v10977_v27 = vld [vmem:[#allocation10 + $0x32c] ss:$48 sps:$4 sm:$0xff]  }
 0x2ec   :  { %4435 = vmatpush1.bf16.msra.mxu1 %v10894_v28  ;;  %v11946_v28 = vpop.f32.mrf.mxu0 }
 0x2ed   :  { %4480 = vmatpush1.bf16.msra.mxu0 %v10897_v29  ;;  %4436 = vmatprep.subr.bf16.mxu1 %v10902_v30  ;;  %v10972_v29 = vld [vmem:[#allocation10 + $0x980] ss:$48 sps:$4 sm:$0xff]  }
 0x2ee   :  { %4481 = vmatprep.subr.bf16.mxu0 %v10905_v31  ;;  %v4165_v30 = vpop.f32.mrf.mxu0  ;;  %v11948_v31 = vpop.f32.mrf.mxu1 }
 0x2f0   :  { %4437 = vmatpush1.bf16.msra.mxu1 %v10900_v32  ;;  %v10975_v32 = vld [vmem:[#allocation10 + $0x328] ss:$48 sps:$4 sm:$0xff]  }
 0x2f1   :  { %4482 = vmatpush1.bf16.msra.mxu0 %v10903_v44  ;;  %4438 = vmatprep.subr.bf16.mxu1 %v10908_v33  ;;  %v10980_v44 = vld [vmem:[#allocation10 + $0x924] ss:$48 sps:$4 sm:$0xff]  }
 0x2f2   :  { %4483 = vmatprep.subr.bf16.mxu0 %v10911_v34  ;;  %v11017_v33 = vld [vmem:[%s12236_s1 + $0x78] sm:$0xff]   ;;  %v10978_v34 = vld [vmem:[#allocation10 + $0x920] ss:$48 sps:$4 sm:$0xff]  }
 0x2f4   :  { %4439 = vmatpush1.bf16.msra.mxu1 %v10906_v16  ;;  %v11953_v16 = vld [vmem:[#allocation11] sm:$0xff] }
 0x2f5   :  { %4484 = vmatpush1.bf16.msra.mxu0 %v10909_v35  ;;  %4440 = vmatprep.subr.bf16.mxu1 %v10914_v36  ;;  %v4167_v35 = vpop.f32.mrf.mxu0  ;;  %v11955_v36 = vpop.f32.mrf.mxu1 }
 0x2f6   :  { %4485 = vmatprep.subr.bf16.mxu0 %v10917_v37  ;;  %v10983_v37 = vld [vmem:[#allocation10 + $0x8cc] ss:$48 sps:$4 sm:$0xff]  }
 0x2f8   :  { %4441 = vmatpush1.bf16.msra.mxu1 %v10912_v38  ;;  %v11018_v38 = vld [vmem:[%s12236_s1 + $0x38] sm:$0xff]  }
 0x2f9   :  { %4486 = vmatpush1.bf16.msra.mxu0 %v10915_v39  ;;  %4442 = vmatprep.subr.bf16.mxu1 %v10920_v40  ;;  %v2076_v39 = vrot.slane %v11953_v16, %v11911_v13  ;;  %v11022_v40 = vld [vmem:[%s12236_s1 + $0x70] sm:$0xff]  }
 0x2fa   :  { %4487 = vmatprep.subr.bf16.mxu0 %v10923_v41  ;;  %v2080_v41 = vrot.slane %v11953_v16, %v11908_v11 }
 0x2fc   :  { %4443 = vmatpush1.bf16.msra.mxu1 %v10918_v42  ;;  %v10981_v42 = vld [vmem:[#allocation10 + $0x8c8] ss:$48 sps:$4 sm:$0xff]  }
 0x2fd   :  { %4488 = vmatpush1.bf16.msra.mxu0 %v10921_v43  ;;  %4444 = vmatprep.subr.bf16.mxu1 %v10926_v45  ;;  %v4169_v43 = vpop.f32.mrf.mxu0  ;;  %v11968_v45 = vpop.f32.mrf.mxu1 }
 0x2fe   :  { %4489 = vmatprep.subr.bf16.mxu0 %v10929_v46  ;;  %v10986_v46 = vld [vmem:[#allocation10 + $0x86c] ss:$48 sps:$4 sm:$0xff]  }
 0x300   :  { %4445 = vmatpush1.bf16.msra.mxu1 %v10924_v48  ;;  %v11023_v48 = vld [vmem:[%s12236_s1 + $0x30] sm:$0xff]  }
 0x301   :  { %4490 = vmatpush1.bf16.msra.mxu0 %v10927_v49  ;;  %4446 = vmatprep.subr.bf16.mxu1 %v10932_v50  ;;  %v4166_v49 = vadd.f32 %v4165_v30, %v2076_v39  ;;  %v11027_v50 = vld [vmem:[%s12236_s1 + $0x68] sm:$0xff]  }
 0x302   :  { %4491 = vmatprep.subr.bf16.mxu0 %v10935_v52  ;;  %v10999_v30 = vld [vmem:[#allocation10 + $0x688] ss:$48 sps:$4 sm:$0xff]  }
 0x304   :  { %4447 = vmatpush1.bf16.msra.mxu1 %v10930_v53 }
 0x305   :  { %4492 = vmatpush2.bf16.msra.mxu0 %v10933_v55  ;;  %4448 = vmatprep.subr.bf16.mxu1 %v10938_v56  ;;  %v10984_v55 = vld [vmem:[#allocation10 + $0x868] ss:$48 sps:$4 sm:$0xff]   ;;  %v4171_v56 = vpop.f32.mrf.mxu0 }
 0x306   :  { %4493 = vmatprep.subr.bf16.mxu0 %v10941_v58 }
 0x308   :  { %4449 = vmatpush2.bf16.msra.mxu1 %v10936_v59  ;;  %v10989_v59 = vld [vmem:[#allocation10 + $0x80c] ss:$48 sps:$4 sm:$0xff]  }
 0x309   :  { %4494 = vmatpush2.bf16.msra.mxu0 %v10939_v60  ;;  %4450 = vmatprep.subr.bf16.mxu1 %v10944_v61  ;;  %v11028_v60 = vld [vmem:[%s12236_s1 + $0x28] sm:$0xff]   ;;  %v4170_v61 = vadd.f32 %v4169_v43, %v2076_v39  ;;  %v11013_v39 = vld [vmem:[#allocation10 + $0xb0c] ss:$48 sps:$4 sm:$0xff]  }
 0x30a   :  { %4495 = vmatprep.subr.bf16.mxu0 %v10947_v62  ;;  %v11021_v43 = vld [vmem:[#allocation10 + $0xa4c] ss:$48 sps:$4 sm:$0xff]  }
 0x30c   :  { %4451 = vmatpush2.bf16.msra.mxu1 %v10942_v63  ;;  %v11032_v63 = vld [vmem:[%s12236_s1 + $0x60] sm:$0xff]  }
 0x30d   :  { %4496 = vmatpush2.bf16.msra.mxu0 %v10945_v0  ;;  %4452 = vmatprep.subr.bf16.mxu1 %v10950_v1 }
 0x30e   :  { %4497 = vmatprep.subr.bf16.mxu0 %v10953_v2  ;;  %v10987_v2 = vld [vmem:[#allocation10 + $0x808] ss:$48 sps:$4 sm:$0xff]  }
 0x310   :  { %4453 = vmatpush2.bf16.msra.mxu1 %v10948_v3 }
 0x311   :  { %4498 = vmatpush2.bf16.msra.mxu0 %v10951_v5  ;;  %4454 = vmatprep.subr.bf16.mxu1 %v10956_v6  ;;  %v10992_v5 = vld [vmem:[#allocation10 + $0x7ac] ss:$48 sps:$4 sm:$0xff]  }
 0x312   :  { %4499 = vmatprep.subr.bf16.mxu0 %v10959_v7  ;;  %v11033_v6 = vld [vmem:[%s12236_s1 + $0x20] sm:$0xff]  }
 0x314   :  { %4455 = vmatpush2.bf16.msra.mxu1 %v10954_v10  ;;  %v11037_v10 = vld [vmem:[%s12236_s1 + $0x58] sm:$0xff]  }
 0x315   :  { %4500 = vmatpush2.bf16.msra.mxu0 %v10957_v12  ;;  %4456 = vmatprep.subr.bf16.mxu1 %v10962_v15  ;;  %v10990_v12 = vld [vmem:[#allocation10 + $0x7a8] ss:$48 sps:$4 sm:$0xff]   ;;  %v10995_v15 = vld [vmem:[#allocation10 + $0x74c] ss:$48 sps:$4 sm:$0xff]  }
 0x316   :  { %4501 = vmatprep.subr.bf16.mxu0 %v10965_v19  ;;  %v11038_v19 = vld [vmem:[%s12236_s1 + $0x18] sm:$0xff]  }
 0x318   :  { %4457 = vmatpush2.bf16.msra.mxu1 %v10960_v21  ;;  %v11039_v21 = vld [vmem:[%s12236_s1 + $0x50] sm:$0xff]  }
 0x319   :  { %4502 = vmatpush2.bf16.msra.mxu0 %v10963_v4  ;;  %4458 = vmatprep.subr.bf16.mxu1 %v10968_v22  ;;  %v10993_v4 = vld [vmem:[#allocation10 + $0x748] ss:$48 sps:$4 sm:$0xff]   ;;  %v10998_v22 = vld [vmem:[#allocation10 + $0x6ec] ss:$48 sps:$4 sm:$0xff]  }
 0x31a   :  { %4503 = vmatprep.subr.bf16.mxu0 %v10971_v23  ;;  %v11040_v23 = vld [vmem:[%s12236_s1 + $0x10] sm:$0xff]  }
 0x31c   :  { %4459 = vmatpush2.bf16.msra.mxu1 %v10966_v24  ;;  %v11041_v24 = vld [vmem:[%s12236_s1 + $0x48] sm:$0xff]  }
 0x31d   :  { %4504 = vmatpush2.bf16.msra.mxu0 %v10969_v51  ;;  %4460 = vmatprep.subr.bf16.mxu1 %v10974_v26  ;;  %v10996_v51 = vld [vmem:[#allocation10 + $0x6e8] ss:$48 sps:$4 sm:$0xff]   ;;  %v11001_v26 = vld [vmem:[#allocation10 + $0x68c] ss:$48 sps:$4 sm:$0xff]  }
 0x31e   :  { %4505 = vmatprep.subr.bf16.mxu0 %v10977_v27  ;;  %v11042_v27 = vld [vmem:[%s12236_s1 + $0x8] sm:$0xff]  }
 0x320   :  { %4461 = vmatpush2.bf16.msra.mxu1 %v10972_v29  ;;  %v11043_v29 = vld [vmem:[%s12236_s1 + $0x40] sm:$0xff]  }
 0x321   :  { %4506 = vmatpush2.bf16.msra.mxu0 %v10975_v32  ;;  %4462 = vmatprep.subr.bf16.mxu1 %v10980_v44  ;;  %v11004_v32 = vld [vmem:[#allocation10 + $0x62c] ss:$48 sps:$4 sm:$0xff]  }
 0x322   :  { %10088 = vmatprep.subr.bf16.mxu0 %v11017_v33  ;;  %v11044_v44 = vld [vmem:[%s12236_s1] sm:$0xff]   ;;  %v11002_v33 = vld [vmem:[#allocation10 + $0x628] ss:$48 sps:$4 sm:$0xff]  }
 0x324   :  { %4463 = vmatpush2.bf16.msra.mxu1 %v10978_v34  ;;  %4508 = vmatmul.mubr.bf16.vlgmr.msra.gmra.mxu0 %v11902_v47  ;;  %v4168_v47 = vadd.f32 %v4167_v35, %v2080_v41  ;;  %v11007_v34 = vld [vmem:[#allocation10 + $0xbcc] ss:$48 sps:$4 sm:$0xff]   ;;  %v11005_v35 = vld [vmem:[#allocation10 + $0xbc8] ss:$48 sps:$4 sm:$0xff]  }
 0x325   :  { %4518 = vmatprep.subr.bf16.mxu1 %v10983_v37  ;;  %10089 = vmatpush3.bf16.msra.mxu0 %v11018_v38  ;;  %v11010_v37 = vld [vmem:[#allocation10 + $0xb6c] ss:$48 sps:$4 sm:$0xff]   ;;  %v11008_v38 = vld [vmem:[#allocation10 + $0xb68] ss:$48 sps:$4 sm:$0xff]  }
 0x326   :  { %10090 = vmatprep.subr.bf16.mxu0 %v11022_v40  ;;  %v11011_v40 = vld [vmem:[#allocation10 + $0xb08] ss:$48 sps:$4 sm:$0xff]  }
 0x327   :  { %v4208_v52 = vpop.f32.mrf.mxu1  ;;  %4465 = vmatmul.mubr.bf16.vlgmr.msra.gmra.mxu1 %v11920_v57 }
 0x328   :  { %v11977_v53 = vadd.f32 %v4208_v52, %v4166_v49  ;;  %4519 = vmatpush1.bf16.msra.mxu1 %v10981_v42  ;;  %4550 = vmatprep.mubr.bf16.mxu1 %v11917_v54  ;;  %v4172_v54 = vadd.f32 %v4171_v56, %v2080_v41  ;;  %v11016_v41 = vld [vmem:[#allocation10 + $0xaac] ss:$48 sps:$4 sm:$0xff]   ;;  %v11014_v42 = vld [vmem:[#allocation10 + $0xaa8] ss:$48 sps:$4 sm:$0xff]  }
 0x329   :  { %v4210_v58 = vpop.f32.mrf.mxu1  ;;  %4520 = vmatprep.subr.bf16.mxu1 %v10986_v46  ;;  %10091 = vmatpush3.bf16.msra.mxu0 %v11023_v48  ;;  %v11019_v46 = vld [vmem:[#allocation10 + $0xa48] ss:$48 sps:$4 sm:$0xff]   ;;  %v11026_v48 = vld [vmem:[#allocation10 + $0x9ec] ss:$48 sps:$4 sm:$0xff]  }
 0x32a   :  { %v11983_v62 = vadd.f32 %v4210_v58, %v4168_v47  ;;  %10092 = vmatprep.subr.bf16.mxu0 %v11027_v50  ;;  %v11024_v49 = vld [vmem:[#allocation10 + $0x9e8] ss:$48 sps:$4 sm:$0xff]   ;;  %v11031_v50 = vld [vmem:[#allocation10 + $0x98c] ss:$48 sps:$4 sm:$0xff]   ;;  %v4251_v47 = vpop.f32.mrf.mxu0 }
 0x32b   :  { %v4212_v0 = vpop.f32.mrf.mxu1  ;;  %v11029_v52 = vld [vmem:[#allocation10 + $0x988] ss:$48 sps:$4 sm:$0xff]  }
 0x32c   :  { %v11988_v1 = vadd.f32 %v4212_v0, %v4170_v61  ;;  %4521 = vmatpush1.bf16.msra.mxu1 %v10984_v55  ;;  %v11036_v55 = vld [vmem:[#allocation10 + $0x92c] ss:$48 sps:$4 sm:$0xff]   ;;  %v11034_v56 = vld [vmem:[#allocation10 + $0x928] ss:$48 sps:$4 sm:$0xff]   ;;  %v4253_v58 = vpop.f32.mrf.mxu0  ;;  %v2083_v61 = vsub.s32 4, %v11886_v14 }
 0x32d   :  { %v4214_v3 = vpop.f32.mrf.mxu1  ;;  %4522 = vmatprep.subr.bf16.mxu1 %v10989_v59  ;;  %10093 = vmatpush3.bf16.msra.mxu0 %v11028_v60  ;;  %v11045_v59 = vld [vmem:[%s12236_s1 + $0xf8] sm:$0xff]   ;;  %v2087_v60 = vsub.s32 5, %v11886_v14 }
 0x32e   :  { %v11993_v7 = vadd.f32 %v4214_v3, %v4172_v54  ;;  %10094 = vmatprep.subr.bf16.mxu0 %v11032_v63  ;;  %v11046_v63 = vld [vmem:[%s12236_s1 + $0xb8] sm:$0xff]   ;;  %v4255_v0 = vpop.f32.mrf.mxu0  ;;  %v11047_v54 = vld [vmem:[%s12236_s1 + $0xf0] sm:$0xff]   ;;  %v2072_v3 = vrot.slane %v11953_v16, %v11894_v18 }
 0x330   :  { %4523 = vmatpush1.bf16.msra.mxu1 %v10987_v2  ;;  %v2088_v2 = vrot.slane %v11953_v16, %v2087_v60 }
 0x331   :  { %4524 = vmatprep.subr.bf16.mxu1 %v10992_v5  ;;  %10095 = vmatpush3.bf16.msra.mxu0 %v11033_v6  ;;  %v2084_v5 = vrot.slane %v11953_v16, %v2083_v61 }
 0x332   :  { %10096 = vmatprep.subr.bf16.mxu0 %v11037_v10  ;;  %v11048_v10 = vld [vmem:[%s12236_s1 + $0xb0] sm:$0xff]  }
 0x334   :  { %4525 = vmatpush1.bf16.msra.mxu1 %v10990_v12  ;;  %v2068_v12 = vrot.slane %v11953_v16, %v11891_v17 }
 0x335   :  { %4526 = vmatprep.subr.bf16.mxu1 %v10995_v15  ;;  %10097 = vmatpush3.bf16.msra.mxu0 %v11038_v19  ;;  %v4257_v15 = vpop.f32.mrf.mxu0 }
 0x336   :  { %10098 = vmatprep.subr.bf16.mxu0 %v11039_v21  ;;  %v11049_v21 = vld [vmem:[%s12236_s1 + $0xe8] sm:$0xff]  }
 0x338   :  { %4527 = vmatpush1.bf16.msra.mxu1 %v10993_v4  ;;  %v4254_v4 = vadd.f32 %v4253_v58, %v2088_v2  ;;  %v2095_v58 = vsub.s32 7, %v11886_v14 }
 0x339   :  { %4528 = vmatprep.subr.bf16.mxu1 %v10998_v22  ;;  %10099 = vmatpush3.bf16.msra.mxu0 %v11040_v23  ;;  %v4256_v22 = vadd.f32 %v4255_v0, %v2084_v5  ;;  %v4082_v23 = vadd.f32 %v11940_v20, %v2072_v3 }
 0x33a   :  { %10100 = vmatprep.subr.bf16.mxu0 %v11041_v24  ;;  %v4252_v24 = vadd.f32 %v4251_v47, %v2084_v5  ;;  %v2096_v0 = vrot.slane %v11953_v16, %v2095_v58 }
 0x33c   :  { %4529 = vmatpush1.bf16.msra.mxu1 %v10996_v51 }
 0x33d   :  { %4530 = vmatprep.subr.bf16.mxu1 %v11001_v26  ;;  %10101 = vmatpush3.bf16.msra.mxu0 %v11042_v27  ;;  %v4086_v26 = vadd.f32 %v11946_v28, %v2072_v3  ;;  %v4258_v27 = vadd.f32 %v4257_v15, %v2088_v2  ;;  %v4125_v28 = vadd.f32 %v11948_v31, %v4082_v23 }
 0x33e   :  { %10102 = vmatprep.subr.bf16.mxu0 %v11043_v29 }
 0x340   :  { %4531 = vmatpush1.bf16.msra.mxu1 %v10999_v30 }
 0x341   :  { %4532 = vmatprep.subr.bf16.mxu1 %v11004_v32  ;;  %10103 = vmatpush3.bf16.msra.mxu0 %v11044_v44  ;;  %v11050_v32 = vld [vmem:[%s12236_s1 + $0xa8] sm:$0xff]   ;;  %v4080_v44 = vadd.f32 %v11938_v8, %v2068_v12  ;;  %v11052_v8 = vld [vmem:[%s12236_s1 + $0xa0] sm:$0xff]  }
 0x344   :  { %4533 = vmatpush1.bf16.msra.mxu1 %v11002_v33 }
 0x345   :  { %4534 = vmatprep.subr.bf16.mxu1 %v11007_v34 }
 0x348   :  { %4535 = vmatpush2.bf16.msra.mxu1 %v11005_v35  ;;  %v4129_v35 = vadd.f32 %v11968_v45, %v4086_v26  ;;  %v11055_v45 = vld [vmem:[%s12236_s1 + $0xd0] sm:$0xff]  }
 0x349   :  { %4536 = vmatprep.subr.bf16.mxu1 %v11010_v37 }
 0x34c   :  { %4537 = vmatpush2.bf16.msra.mxu1 %v11008_v38  ;;  %v4123_v38 = vadd.f32 %v11944_v25, %v4080_v44  ;;  %v11054_v25 = vld [vmem:[%s12236_s1 + $0x98] sm:$0xff]  }
 0x34d   :  { %4538 = vmatprep.subr.bf16.mxu1 %v11013_v39 }
 0x350   :  { %4539 = vmatpush2.bf16.msra.mxu1 %v11011_v40 }
 0x351   :  { %4540 = vmatprep.subr.bf16.mxu1 %v11016_v41 }
 0x354   :  { %4541 = vmatpush2.bf16.msra.mxu1 %v11014_v42  ;;  %v11053_v42 = vld [vmem:[%s12236_s1 + $0xd8] sm:$0xff]  }
 0x355   :  { %4542 = vmatprep.subr.bf16.mxu1 %v11021_v43 }
 0x358   :  { %4543 = vmatpush2.bf16.msra.mxu1 %v11019_v46  ;;  %v11056_v46 = vld [vmem:[%s12236_s1 + $0x90] sm:$0xff]  }
 0x359   :  { %4544 = vmatprep.subr.bf16.mxu1 %v11026_v48  ;;  %v11057_v48 = vld [vmem:[%s12236_s1 + $0xc8] sm:$0xff]  }
 0x35c   :  { %4545 = vmatpush2.bf16.msra.mxu1 %v11024_v49  ;;  %v11058_v49 = vld [vmem:[%s12236_s1 + $0x88] sm:$0xff]  }
 0x35d   :  { %4546 = vmatprep.subr.bf16.mxu1 %v11031_v50  ;;  %v11059_v50 = vld [vmem:[%s12236_s1 + $0xc0] sm:$0xff]  }
 0x360   :  { %4547 = vmatpush2.bf16.msra.mxu1 %v11029_v52  ;;  %v11060_v52 = vld [vmem:[%s12236_s1 + $0x80] sm:$0xff]  }
 0x361   :  { %4548 = vmatprep.subr.bf16.mxu1 %v11036_v55  ;;  %v2091_v55 = vsub.s32 6, %v11886_v14 }
 0x364   :  { %4549 = vmatpush2.bf16.msra.mxu1 %v11034_v56  ;;  %v4337_v47 = vpop.f32.mrf.mxu0 }
 0x365   :  { %10110 = vmatprep.subr.bf16.mxu1 %v11045_v59  ;;  %v2092_v59 = vrot.slane %v11953_v16, %v2091_v55 }
 0x366   :  { %v4339_v56 = vpop.f32.mrf.mxu0 }
 0x367   :  { %v4294_v6 = vpop.f32.mrf.mxu1  ;;  %4551 = vmatmul.mubr.bf16.vlgmr.msra.gmra.mxu1 %v11920_v57  ;;  %v4084_v57 = vadd.f32 %v11942_v9, %v2068_v12  ;;  %v11051_v9 = vld [vmem:[%s12236_s1 + $0xe0] sm:$0xff]   ;;  %v4338_v2 = vadd.f32 %v4337_v47, %v2092_v59  ;;  %s11757_s1 = smov [#allocation22]  }
 0x368   :  { %10111 = vmatpush3.bf16.msra.mxu1 %v11046_v63  ;;  %v4295_v34 = vadd.f32 %v4294_v6, %v4252_v24  ;;  %v4341_v63 = vpop.f32.mrf.mxu0  ;;  %v4340_v6 = vadd.f32 %v4339_v56, %v2096_v0  ;;  %s8936_s5 = sshll.u32 %s11757_s1, 4  ;;  %s8937_s5 = int_to_ptr.vmem [resolvable:$true] %s8936_s5 }
 0x369   :  { %v4296_v19 = vpop.f32.mrf.mxu1  ;;  %10112 = vmatprep.subr.bf16.mxu1 %v11047_v54  ;;  %v4127_v33 = vadd.f32 %v11955_v36, %v4084_v57  ;;  %s11698_s16 = scalar_lea.vmem %s8937_s5, 512  ;;  %p11703_p5 = scmp.lt.s32.totalorder %s8937_s5, %s8937_s5 }
 0x36a   :  { %v4297_v29 = vadd.f32 %v4296_v19, %v4254_v4  ;;  %v4561_v36 = vmul.f32 %v4295_v34, %v4123_v38  ;;  %v4343_v3 = vpop.f32.mrf.mxu0  ;;  %p11699_p4 = scmp.ne.s32.totalorder %s8937_s5, %s11698_s16  ;;  %p11704_p6 = scmp.lt.s32.totalorder %s11698_s16, %s11698_s16 }
 0x36b   :  { %v4298_v51 = vpop.f32.mrf.mxu1  ;;  %v4344_v19 = vadd.f32 %v4343_v3, %v2096_v0 }
 0x36c   :  { %v4299_v30 = vadd.f32 %v4298_v51, %v4256_v22  ;;  %10113 = vmatpush3.bf16.msra.mxu1 %v11048_v10  ;;  %v4562_v40 = vmul.f32 %v4297_v29, %v4125_v28  ;;  %v4342_v10 = vadd.f32 %v4341_v63, %v2092_v59  ;;  %p11705_p7 = por %p11704_p6, %p11703_p5 }
 0x36d   :  { %v4300_v20 = vpop.f32.mrf.mxu1  ;;  %10114 = vmatprep.subr.bf16.mxu1 %v11049_v21 }
 0x36e   :  { %v4301_v37 = vadd.f32 %v4300_v20, %v4258_v27  ;;  %v4565_v39 = vmul.f32 %v4299_v30, %v4127_v33  ;;  %v2062_v30 = vld [vmem:[#allocation11 + $0x8] sm:$0xf]  ;;  %p11706_p8 = pnand %p11705_p7, %p11699_p4 }
 0x36f   :  { %v2100_v44 = vrot.slane %v2062_v30, %v11891_v17  ;;  %v2104_v33 = vrot.slane %v2062_v30, %v11894_v18 }
 0x370   :  { %v4566_v41 = vmul.f32 %v4301_v37, %v4129_v35  ;;  %10115 = vmatpush3.bf16.msra.mxu1 %v11050_v32  ;;  %v4569_v43 = vpack.c.bf16 %v4565_v39, %v4561_v36  ;;  %v2108_v36 = vrot.slane %v2062_v30, %v11911_v13 }
 0x371   :  { %10116 = vmatprep.subr.bf16.mxu1 %v11051_v9 }
 0x372   :  { %v4570_v31 = vpack.c.bf16 %v4566_v41, %v4562_v40 }
 0x374   :  { %4861 = vmatprep.mubr.bf16.mxu0 %v4570_v31  ;;  %10117 = vmatpush3.bf16.msra.mxu1 %v11052_v8  ;;  %v12112_v31 = vrot.slane %v2062_v30, %v11908_v11 }
 0x375   :  { %4862 = vmatmul.mubr.bf16.vlgmr.msra.gmra.mxu0 %v4569_v43  ;;  %10118 = vmatprep.subr.bf16.mxu1 %v11053_v42 }
 0x378   :  { %10119 = vmatpush3.bf16.msra.mxu1 %v11054_v25 }
 0x379   :  { %10120 = vmatprep.subr.bf16.mxu1 %v11055_v45 }
 0x37c   :  { %10121 = vmatpush3.bf16.msra.mxu1 %v11056_v46 }
 0x37d   :  { %10122 = vmatprep.subr.bf16.mxu1 %v11057_v48 }
 0x380   :  { %10123 = vmatpush3.bf16.msra.mxu1 %v11058_v49 }
 0x381   :  { %10124 = vmatprep.subr.bf16.mxu1 %v11059_v50 }
 0x384   :  { %10125 = vmatpush3.bf16.msra.mxu1 %v11060_v52 }
 0x3a4   :  { %v4423_v29 = vpop.f32.mrf.mxu0 }
 0x3a6   :  { %v4425_v32 = vpop.f32.mrf.mxu0 }
 0x3a7   :  { %v4380_v54 = vpop.f32.mrf.mxu1 }
 0x3a8   :  { %v4381_v12 = vadd.f32 %v4380_v54, %v4338_v2  ;;  %v4427_v34 = vpop.f32.mrf.mxu0 }
 0x3a9   :  { %v4382_v5 = vpop.f32.mrf.mxu1  ;;  %v4428_v35 = vadd.f32 %v4427_v34, %v2100_v44 }
 0x3aa   :  { %v4383_v21 = vadd.f32 %v4382_v5, %v4340_v6  ;;  %v4563_v23 = vmul.f32 %v4381_v12, %v11977_v53  ;;  %v4424_v53 = vadd.f32 %v4423_v29, %v2100_v44 }
 0x3ab   :  { %v4384_v15 = vpop.f32.mrf.mxu1 }
 0x3ac   :  { %v4385_v4 = vadd.f32 %v4384_v15, %v4342_v10  ;;  %v4564_v51 = vmul.f32 %v4383_v21, %v11983_v62  ;;  %v4429_v62 = vpop.f32.mrf.mxu0 }
 0x3ad   :  { %v4386_v22 = vpop.f32.mrf.mxu1  ;;  %v4430_v38 = vadd.f32 %v4429_v62, %v2104_v33  ;;  %v4938_v62 = vld [vmem:[#allocation5 + $0x8] sm:$0xff] }
 0x3ae   :  { %v4567_v57 = vmul.f32 %v4385_v4, %v11988_v1  ;;  %v4387_v24 = vadd.f32 %v4386_v22, %v4344_v19  ;;  %v4426_v1 = vadd.f32 %v4425_v32, %v2104_v33 }
 0x3b0   :  { %v4571_v16 = vpack.c.bf16 %v4567_v57, %v4563_v23  ;;  %v4568_v26 = vmul.f32 %v4387_v24, %v11993_v7 }
 0x3b2   :  { %v4572_v27 = vpack.c.bf16 %v4568_v26, %v4564_v51 }
 0x3b4   :  { %4902 = vmatprep.mubr.bf16.mxu1 %v4572_v27 }
 0x3b5   :  { %4903 = vmatmul.mubr.bf16.vlgmr.msra.gmra.mxu1 %v4571_v16 }
 0x3e4   :  { %v4509_v8 = vpop.f32.mrf.mxu0 }
 0x3e5   :  { %v4510_v43 = vadd.f32 %v4509_v8, %v2108_v36 }
 0x3e6   :  { %v4511_v42 = vpop.f32.mrf.mxu0 }
 0x3e7   :  { %v4466_v20 = vpop.f32.mrf.mxu1  ;;  %v4512_v46 = vadd.f32 %v4511_v42, %v12112_v31  ;;  %v11067_v42 = vld [vmem:[#allocation13 + $0xe4] ss:$16 sps:$4 sm:$0xff]  }
 0x3e8   :  { %v12102_v9 = vadd.f32 %v4466_v20, %v4424_v53  ;;  %v4513_v25 = vpop.f32.mrf.mxu0 }
 0x3e9   :  { %v4468_v28 = vpop.f32.mrf.mxu1  ;;  %v4514_v50 = vadd.f32 %v4513_v25, %v2108_v36  ;;  %v11756_v36 = vmov 0  }
 0x3ea   :  { %v12104_v7 = vadd.f32 %v4468_v28, %v4426_v1  ;;  %v12121_v59 = vpop.f32.mrf.mxu0  ;;  %v4937_v1 = vld [vmem:[#allocation5] sm:$0xff]  ;;  %4997 = vmatprep.mubr.bf16.mxu0 %v11756_v36  ;;  %5040 = vmatprep.mubr.bf16.mxu1 %v11756_v36 }
 0x3eb   :  { %v4470_v37 = vpop.f32.mrf.mxu1  ;;  %v9569_v28 = vcombine.high %v4937_v1, %v4937_v1  ;;  %v11124_v36 = vld [vmem:[#allocation13 + $0x3c4] ss:$16 sps:$4 sm:$0xff]  }
 0x3ec   :  { %v12106_v39 = vadd.f32 %v4470_v37, %v4428_v35  ;;  %v9568_v35 = vcombine.low %v4937_v1, %v4937_v1  ;;  %v9571_v37 = vcombine.high %v4938_v62, %v4938_v62  ;;  %v11112_v1 = vld [vmem:[#allocation13 + $0x204] ss:$16 sps:$4 sm:$0xff]  }
 0x3ed   :  { %v4472_v40 = vpop.f32.mrf.mxu1  ;;  %9572 = vmatprep.subr.msk.bf16.mxu0 %vm4952_vm1, %v9569_v28  ;;  %v11110_v28 = vld [vmem:[#allocation13 + $0x200] ss:$16 sps:$4 sm:$0xff]  }
 0x3ee   :  { %v12108_v41 = vadd.f32 %v4472_v40, %v4430_v38  ;;  %v9570_v38 = vcombine.low %v4938_v62, %v4938_v62  ;;  %v4954_v40 = vsel %vm4952_vm1, %v9568_v35, 0  ;;  %9574 = vmatprep.subr.msk.bf16.mxu1 %vm4952_vm1, %v9571_v37  ;;  %v11107_v62 = vld [vmem:[#allocation13] ss:$16 sps:$4 sm:$0xff]   ;;  %v11115_v35 = vld [vmem:[#allocation13 + $0x1e4] ss:$16 sps:$4 sm:$0xff]  }
 0x3ef   :  { %4980 = vmatpush1.bf16.msra.mxu0 %v4954_v40  ;;  %v11118_v37 = vld [vmem:[#allocation13 + $0x3e4] ss:$16 sps:$4 sm:$0xff]   ;;  %v11116_v40 = vld [vmem:[#allocation13 + $0x3e0] ss:$16 sps:$4 sm:$0xff]  }
 0x3f0   :  { %v4960_v8 = vsel %vm4952_vm1, %v9570_v38, 0  ;;  %5853 = vmatprep.subr.bf16.mxu0 %v11067_v42  ;;  %v11113_v38 = vld [vmem:[#allocation13 + $0x1e0] ss:$16 sps:$4 sm:$0xff]  }
 0x3f1   :  { %5023 = vmatpush1.bf16.msra.mxu1 %v4960_v8  ;;  %v11121_v8 = vld [vmem:[#allocation13 + $0x1c4] ss:$16 sps:$4 sm:$0xff]   ;;  %v11119_v42 = vld [vmem:[#allocation13 + $0x1c0] ss:$16 sps:$4 sm:$0xff]  }
 0x427   :  { %v4552_v45 = vpop.f32.mrf.mxu1 }
 0x428   :  { %v12115_v48 = vadd.f32 %v4552_v45, %v4510_v43  ;;  %v11070_v43 = vld [vmem:[#allocation13 + $0x2e4] ss:$16 sps:$4 sm:$0xff]  }
 0x429   :  { %v4554_v49 = vpop.f32.mrf.mxu1  ;;  %5896 = vmatprep.subr.bf16.mxu1 %v11070_v43  ;;  %v11122_v43 = vld [vmem:[#allocation13 + $0x3c0] ss:$16 sps:$4 sm:$0xff]  }
 0x42a   :  { %v12117_v52 = vadd.f32 %v4554_v49, %v4512_v46 }
 0x42b   :  { %v4556_v47 = vpop.f32.mrf.mxu1 }
 0x42c   :  { %v12119_v56 = vadd.f32 %v4556_v47, %v4514_v50 }
 0x42d   :  { %v12123_v54 = vpop.f32.mrf.mxu1 }
 0x435   :  { %v10104_v63 = vpop.f32.mrf.mxu0 }
 0x437   :  { %v10105_v0 = vpop.f32.mrf.mxu0 }
 0x438   :  { %v10106_v6 = vadd.f32 %v10105_v0, %v10104_v63  ;;  %v11065_v63 = vld [vmem:[#allocation13 + $0xe0] ss:$16 sps:$4 sm:$0xff]  }
 0x439   :  { %v10107_v2 = vpop.f32.mrf.mxu0  ;;  %v11068_v0 = vld [vmem:[#allocation13 + $0x2e0] ss:$16 sps:$4 sm:$0xff]  }
 0x43b   :  { %v10108_v12 = vpop.f32.mrf.mxu0 }
 0x43c   :  { %v10109_v4 = vadd.f32 %v10108_v12, %v10107_v2  ;;  %v11079_v12 = vld [vmem:[#allocation13 + $0xa4] ss:$16 sps:$4 sm:$0xff]  }
 0x475   :  { %v10126_v3 = vpop.f32.mrf.mxu1 }
 0x477   :  { %v10127_v5 = vpop.f32.mrf.mxu1 }
 0x478   :  { %v10128_v10 = vadd.f32 %v10127_v5, %v10126_v3  ;;  %v11073_v3 = vld [vmem:[#allocation13 + $0xc4] ss:$16 sps:$4 sm:$0xff]  }
 0x479   :  { %v10129_v15 = vpop.f32.mrf.mxu1  ;;  %v11076_v5 = vld [vmem:[#allocation13 + $0x2c4] ss:$16 sps:$4 sm:$0xff]  }
 0x47a   :  { %v4905_v19 = vadd.f32 %v10128_v10, %v10106_v6  ;;  %v11071_v6 = vld [vmem:[#allocation13 + $0xc0] ss:$16 sps:$4 sm:$0xff]  }
 0x47b   :  { %v10130_v21 = vpop.f32.mrf.mxu1  ;;  %v11074_v10 = vld [vmem:[#allocation13 + $0x2c0] ss:$16 sps:$4 sm:$0xff]  }
 0x47c   :  { %v10131_v22 = vadd.f32 %v10130_v21, %v10129_v15  ;;  %v4911_v23 = vmul.f32 0.125, %v4905_v19  ;;  %v11082_v15 = vld [vmem:[#allocation13 + $0x2a4] ss:$16 sps:$4 sm:$0xff]   ;;  %v11077_v19 = vld [vmem:[#allocation13 + $0xa0] ss:$16 sps:$4 sm:$0xff]  }
 0x47d   :  { %v11080_v21 = vld [vmem:[#allocation13 + $0x2a0] ss:$16 sps:$4 sm:$0xff]  }
 0x47e   :  { %v4908_v57 = vadd.f32 %v10131_v22, %v10109_v4  ;;  %v4914_v24 = vsel %vm4913_vm0, %v4911_v23, -inf  ;;  %v11085_v4 = vld [vmem:[#allocation13 + $0x84] ss:$16 sps:$4 sm:$0xff]  }
 0x47f   :  { %4915 = vmax.xlane.f32.xlu0 %v4914_v24  ;;  %v11088_v22 = vld [vmem:[#allocation13 + $0x284] ss:$16 sps:$4 sm:$0xff]  }
 0x480   :  { %v4912_v51 = vmul.f32 0.125, %v4908_v57  ;;  %v11086_v57 = vld [vmem:[#allocation13 + $0x280] ss:$16 sps:$4 sm:$0xff]   ;;  %v11091_v24 = vld [vmem:[#allocation13 + $0x64] ss:$16 sps:$4 sm:$0xff]  }
 0x482   :  { %v4917_v16 = vsel %vm4913_vm0, %v4912_v51, -inf }
 0x483   :  { %4918 = vmax.xlane.f32.xlu0 %v4917_v16  ;;  %v11089_v16 = vld [vmem:[#allocation13 + $0x60] ss:$16 sps:$4 sm:$0xff]  }
 0x508   :  { %v4916_v26 = vpop.xlane.xlu0 %4915 }
 0x509   :  { %v4920_v27 = vsub.f32 %v4911_v23, %v4916_v26  ;;  %v11083_v23 = vld [vmem:[#allocation13 + $0x80] ss:$16 sps:$4 sm:$0xff]  }
 0x50a   :  { %v11092_v26 = vld [vmem:[#allocation13 + $0x260] ss:$16 sps:$4 sm:$0xff]  }
 0x50b   :  { %v4922_v29 = vmul.f32 1.442695, %v4920_v27  ;;  %v11097_v27 = vld [vmem:[#allocation13 + $0x44] ss:$16 sps:$4 sm:$0xff]  }
 0x50c   :  { %v4919_v30 = vpop.xlane.xlu0 %4918 }
 0x50d   :  { %11449 = vpow2.f32 %v4922_v29  ;;  %v4921_v32 = vsub.f32 %v4912_v51, %v4919_v30  ;;  %v11094_v51 = vld [vmem:[#allocation13 + $0x264] ss:$16 sps:$4 sm:$0xff]   ;;  %v11095_v30 = vld [vmem:[#allocation13 + $0x40] ss:$16 sps:$4 sm:$0xff]  }
 0x50e   :  { %v11100_v29 = vld [vmem:[#allocation13 + $0x244] ss:$16 sps:$4 sm:$0xff]  }
 0x50f   :  { %v4924_v44 = vmul.f32 1.442695, %v4921_v32  ;;  %v11098_v32 = vld [vmem:[#allocation13 + $0x240] ss:$16 sps:$4 sm:$0xff]  }
 0x511   :  { %11451 = vpow2.f32 %v4924_v44  ;;  %v11103_v44 = vld [vmem:[#allocation13 + $0x24] ss:$16 sps:$4 sm:$0xff]  }
 0x51a   :  { %v11450_v33 = vpop.eup %11449 }
 0x51b   :  { %v4926_v34 = vsel %vm4913_vm0, %v11450_v33, 0.0 }
 0x51c   :  { %4927 = vadd.xlane.f32.xlu1 %v4926_v34  ;;  %v11101_v34 = vld [vmem:[#allocation13 + $0x20] ss:$16 sps:$4 sm:$0xff]  }
 0x51e   :  { %v11452_v53 = vpop.eup %11451 }
 0x51f   :  { %v4929_v20 = vsel %vm4913_vm0, %v11452_v53, 0.0 }
 0x520   :  { %4930 = vadd.xlane.f32.xlu1 %v4929_v20  ;;  %v11109_v20 = vld [vmem:[#allocation13 + $0x4] ss:$16 sps:$4 sm:$0xff]  }
 0x5a5   :  { %v4928_v25 = vpop.xlane.xlu1 %4927 }
 0x5a6   :  { %11453 = vrcp.f32 %v4928_v25  ;;  %v11127_v25 = vld [vmem:[#allocation13 + $0x1a4] ss:$16 sps:$4 sm:$0xff]  }
 0x5a9   :  { %v4931_v45 = vpop.xlane.xlu1 %4930 }
 0x5aa   :  { %11455 = vrcp.f32 %v4931_v45  ;;  %v11130_v45 = vld [vmem:[#allocation13 + $0x3a4] ss:$16 sps:$4 sm:$0xff]  }
 0x5b3   :  { %v11454_v46 = vpop.eup %11453 }
 0x5b4   :  { %v4934_v47 = vmul.f32 %v11454_v46, %v11450_v33  ;;  %v11106_v33 = vld [vmem:[#allocation13 + $0x224] ss:$16 sps:$4 sm:$0xff]   ;;  %v11125_v46 = vld [vmem:[#allocation13 + $0x1a0] ss:$16 sps:$4 sm:$0xff]  }
 0x5b7   :  { %v11456_v49 = vpop.eup %11455 }
 0x5b8   :  { %v4935_v50 = vmul.f32 %v11456_v49, %v11452_v53  ;;  %v11104_v53 = vld [vmem:[#allocation13 + $0x220] ss:$16 sps:$4 sm:$0xff]  }
 0x5b9   :  { %v11128_v49 = vld [vmem:[#allocation13 + $0x3a0] ss:$16 sps:$4 sm:$0xff]  }
 0x5ba   :  { %v4936_v2 = vpack.c.bf16 %v4935_v50, %v4934_v47  ;;  %v11133_v50 = vld [vmem:[#allocation13 + $0x184] ss:$16 sps:$4 sm:$0xff]  }
 0x5bb   :  { %v11136_v47 = vld [vmem:[#allocation13 + $0x384] ss:$16 sps:$4 sm:$0xff]  }
 0x5bc   :  { %9573 = vmatmul.mubr.msk.bf16.vlgmr.msra.gmra.mxu0 %vm4913_vm0, %v4936_v2  ;;  %9575 = vmatmul.mubr.msk.bf16.vlgmr.msra.gmra.mxu1 %vm4913_vm0, %v4936_v2  ;;  %v11139_v2 = vld [vmem:[#allocation13 + $0x164] ss:$16 sps:$4 sm:$0xff]  }
 0x5bd   :  { %5854 = vmatpush1.bf16.msra.mxu0 %v11065_v63  ;;  %5897 = vmatpush1.bf16.msra.mxu1 %v11068_v0  ;;  %v11131_v63 = vld [vmem:[#allocation13 + $0x180] ss:$16 sps:$4 sm:$0xff]  }
 0x5be   :  { %5855 = vmatprep.subr.bf16.mxu0 %v11073_v3  ;;  %5898 = vmatprep.subr.bf16.mxu1 %v11076_v5  ;;  %v11134_v0 = vld [vmem:[#allocation13 + $0x380] ss:$16 sps:$4 sm:$0xff]   ;;  %v11142_v3 = vld [vmem:[#allocation13 + $0x364] ss:$16 sps:$4 sm:$0xff]  }
 0x5bf   :  { %v11137_v5 = vld [vmem:[#allocation13 + $0x160] ss:$16 sps:$4 sm:$0xff]  }
 0x5c1   :  { %5856 = vmatpush1.bf16.msra.mxu0 %v11071_v6  ;;  %5899 = vmatpush1.bf16.msra.mxu1 %v11074_v10  ;;  %v11140_v6 = vld [vmem:[#allocation13 + $0x360] ss:$16 sps:$4 sm:$0xff]   ;;  %v11145_v10 = vld [vmem:[#allocation13 + $0x144] ss:$16 sps:$4 sm:$0xff]  }
 0x5c2   :  { %5857 = vmatprep.subr.bf16.mxu0 %v11079_v12  ;;  %5900 = vmatprep.subr.bf16.mxu1 %v11082_v15  ;;  %v11148_v12 = vld [vmem:[#allocation13 + $0x344] ss:$16 sps:$4 sm:$0xff]   ;;  %v11143_v15 = vld [vmem:[#allocation13 + $0x140] ss:$16 sps:$4 sm:$0xff]  }
 0x5c5   :  { %5858 = vmatpush1.bf16.msra.mxu0 %v11077_v19  ;;  %5901 = vmatpush1.bf16.msra.mxu1 %v11080_v21  ;;  %v11146_v19 = vld [vmem:[#allocation13 + $0x340] ss:$16 sps:$4 sm:$0xff]   ;;  %v11151_v21 = vld [vmem:[#allocation13 + $0x124] ss:$16 sps:$4 sm:$0xff]  }
 0x5c6   :  { %5859 = vmatprep.subr.bf16.mxu0 %v11085_v4  ;;  %5902 = vmatprep.subr.bf16.mxu1 %v11088_v22  ;;  %v11154_v4 = vld [vmem:[#allocation13 + $0x324] ss:$16 sps:$4 sm:$0xff]   ;;  %v11149_v22 = vld [vmem:[#allocation13 + $0x120] ss:$16 sps:$4 sm:$0xff]  }
 0x5c9   :  { %5860 = vmatpush1.bf16.msra.mxu0 %v11083_v23  ;;  %5903 = vmatpush1.bf16.msra.mxu1 %v11086_v57  ;;  %v11152_v23 = vld [vmem:[#allocation13 + $0x320] ss:$16 sps:$4 sm:$0xff]   ;;  %v11157_v57 = vld [vmem:[#allocation13 + $0x104] ss:$16 sps:$4 sm:$0xff]  }
 0x5ca   :  { %5861 = vmatprep.subr.bf16.mxu0 %v11091_v24  ;;  %5904 = vmatprep.subr.bf16.mxu1 %v11094_v51  ;;  %v11160_v24 = vld [vmem:[#allocation13 + $0x304] ss:$16 sps:$4 sm:$0xff]   ;;  %v11155_v51 = vld [vmem:[#allocation13 + $0x100] ss:$16 sps:$4 sm:$0xff]  }
 0x5cd   :  { %5862 = vmatpush1.bf16.msra.mxu0 %v11089_v16  ;;  %5905 = vmatpush1.bf16.msra.mxu1 %v11092_v26  ;;  %v11158_v16 = vld [vmem:[#allocation13 + $0x300] ss:$16 sps:$4 sm:$0xff]   ;;  %v11163_v26 = vld [vmem:[#allocation13 + $0xec] ss:$16 sps:$4 sm:$0xff]  }
 0x5ce   :  { %5863 = vmatprep.subr.bf16.mxu0 %v11097_v27  ;;  %5906 = vmatprep.subr.bf16.mxu1 %v11100_v29  ;;  %v11166_v27 = vld [vmem:[#allocation13 + $0x2ec] ss:$16 sps:$4 sm:$0xff]  }
 0x5d1   :  { %5864 = vmatpush1.bf16.msra.mxu0 %v11095_v30  ;;  %5907 = vmatpush1.bf16.msra.mxu1 %v11098_v32  ;;  %v4516_v32 = vadd.f32 %v12121_v59, %v12112_v31 }
 0x5d2   :  { %5865 = vmatprep.subr.bf16.mxu0 %v11103_v44  ;;  %5908 = vmatprep.subr.bf16.mxu1 %v11106_v33 }
 0x5d5   :  { %5866 = vmatpush1.bf16.msra.mxu0 %v11101_v34  ;;  %5909 = vmatpush1.bf16.msra.mxu1 %v11104_v53  ;;  %v4559_v34 = vadd.f32 %v12123_v54, %v4516_v32  ;;  %v11220_v32 = vld [vmem:[#allocation13 + $0x3cc] ss:$16 sps:$4 sm:$0xff]  }
 0x5d6   :  { %5867 = vmatprep.subr.bf16.mxu0 %v11109_v20  ;;  %5910 = vmatprep.subr.bf16.mxu1 %v11112_v1 }
 0x5d9   :  { %5868 = vmatpush1.bf16.msra.mxu0 %v11107_v62  ;;  %5911 = vmatpush1.bf16.msra.mxu1 %v11110_v28 }
 0x5da   :  { %5869 = vmatprep.subr.bf16.mxu0 %v11115_v35  ;;  %5912 = vmatprep.subr.bf16.mxu1 %v11118_v37 }
 0x5dd   :  { %5870 = vmatpush2.bf16.msra.mxu0 %v11113_v38  ;;  %5913 = vmatpush2.bf16.msra.mxu1 %v11116_v40 }
 0x5de   :  { %5871 = vmatprep.subr.bf16.mxu0 %v11121_v8  ;;  %5914 = vmatprep.subr.bf16.mxu1 %v11124_v36 }
 0x5e1   :  { %5872 = vmatpush2.bf16.msra.mxu0 %v11119_v42  ;;  %5915 = vmatpush2.bf16.msra.mxu1 %v11122_v43  ;;  %v11164_v43 = vld [vmem:[#allocation13 + $0x2e8] ss:$16 sps:$4 sm:$0xff]  }
 0x5e2   :  { %5873 = vmatprep.subr.bf16.mxu0 %v11127_v25  ;;  %5916 = vmatprep.subr.bf16.mxu1 %v11130_v45  ;;  %v11178_v25 = vld [vmem:[#allocation13 + $0x2ac] ss:$16 sps:$4 sm:$0xff]   ;;  %v11173_v45 = vld [vmem:[#allocation13 + $0xa8] ss:$16 sps:$4 sm:$0xff]  }
 0x5e5   :  { %5874 = vmatpush2.bf16.msra.mxu0 %v11125_v46  ;;  %5917 = vmatpush2.bf16.msra.mxu1 %v11128_v49  ;;  %v11176_v46 = vld [vmem:[#allocation13 + $0x2a8] ss:$16 sps:$4 sm:$0xff]   ;;  %v11181_v49 = vld [vmem:[#allocation13 + $0x8c] ss:$16 sps:$4 sm:$0xff]  }
 0x5e6   :  { %5875 = vmatprep.subr.bf16.mxu0 %v11133_v50  ;;  %5918 = vmatprep.subr.bf16.mxu1 %v11136_v47  ;;  %v11184_v50 = vld [vmem:[#allocation13 + $0x28c] ss:$16 sps:$4 sm:$0xff]   ;;  %v11179_v47 = vld [vmem:[#allocation13 + $0x88] ss:$16 sps:$4 sm:$0xff]  }
 0x5e9   :  { %5876 = vmatpush2.bf16.msra.mxu0 %v11131_v63  ;;  %5919 = vmatpush2.bf16.msra.mxu1 %v11134_v0  ;;  %v11182_v63 = vld [vmem:[#allocation13 + $0x288] ss:$16 sps:$4 sm:$0xff]   ;;  %v11187_v0 = vld [vmem:[#allocation13 + $0x6c] ss:$16 sps:$4 sm:$0xff]  }
 0x5ea   :  { %5877 = vmatprep.subr.bf16.mxu0 %v11139_v2  ;;  %5920 = vmatprep.subr.bf16.mxu1 %v11142_v3  ;;  %v11190_v2 = vld [vmem:[#allocation13 + $0x26c] ss:$16 sps:$4 sm:$0xff]   ;;  %v11185_v3 = vld [vmem:[#allocation13 + $0x68] ss:$16 sps:$4 sm:$0xff]  }
 0x5ed   :  { %5878 = vmatpush2.bf16.msra.mxu0 %v11137_v5  ;;  %5921 = vmatpush2.bf16.msra.mxu1 %v11140_v6  ;;  %v11188_v5 = vld [vmem:[#allocation13 + $0x268] ss:$16 sps:$4 sm:$0xff]   ;;  %v11193_v6 = vld [vmem:[#allocation13 + $0x4c] ss:$16 sps:$4 sm:$0xff]  }
 0x5ee   :  { %5879 = vmatprep.subr.bf16.mxu0 %v11145_v10  ;;  %5922 = vmatprep.subr.bf16.mxu1 %v11148_v12  ;;  %v11196_v10 = vld [vmem:[#allocation13 + $0x24c] ss:$16 sps:$4 sm:$0xff]   ;;  %v11191_v12 = vld [vmem:[#allocation13 + $0x48] ss:$16 sps:$4 sm:$0xff]  }
 0x5f1   :  { %5880 = vmatpush2.bf16.msra.mxu0 %v11143_v15  ;;  %5923 = vmatpush2.bf16.msra.mxu1 %v11146_v19  ;;  %v11194_v15 = vld [vmem:[#allocation13 + $0x248] ss:$16 sps:$4 sm:$0xff]   ;;  %v11199_v19 = vld [vmem:[#allocation13 + $0x2c] ss:$16 sps:$4 sm:$0xff]  }
 0x5f2   :  { %5881 = vmatprep.subr.bf16.mxu0 %v11151_v21  ;;  %5924 = vmatprep.subr.bf16.mxu1 %v11154_v4  ;;  %v11202_v21 = vld [vmem:[#allocation13 + $0x22c] ss:$16 sps:$4 sm:$0xff]   ;;  %v11197_v4 = vld [vmem:[#allocation13 + $0x28] ss:$16 sps:$4 sm:$0xff]  }
 0x5f5   :  { %5882 = vmatpush2.bf16.msra.mxu0 %v11149_v22  ;;  %5925 = vmatpush2.bf16.msra.mxu1 %v11152_v23  ;;  %v11200_v22 = vld [vmem:[#allocation13 + $0x228] ss:$16 sps:$4 sm:$0xff]   ;;  %v11205_v23 = vld [vmem:[#allocation13 + $0xc] ss:$16 sps:$4 sm:$0xff]  }
 0x5f6   :  { %5883 = vmatprep.subr.bf16.mxu0 %v11157_v57  ;;  %5926 = vmatprep.subr.bf16.mxu1 %v11160_v24  ;;  %v11208_v57 = vld [vmem:[#allocation13 + $0x20c] ss:$16 sps:$4 sm:$0xff]   ;;  %v11203_v24 = vld [vmem:[#allocation13 + $0x8] ss:$16 sps:$4 sm:$0xff]  }
 0x5f9   :  { %5884 = vmatpush2.bf16.msra.mxu0 %v11155_v51  ;;  %5927 = vmatpush2.bf16.msra.mxu1 %v11158_v16  ;;  %v11206_v51 = vld [vmem:[#allocation13 + $0x208] ss:$16 sps:$4 sm:$0xff]   ;;  %v11211_v16 = vld [vmem:[#allocation13 + $0x1ec] ss:$16 sps:$4 sm:$0xff]  }
 0x5fa   :  { %5939 = vmatprep.subr.bf16.mxu0 %v11163_v26  ;;  %5982 = vmatprep.subr.bf16.mxu1 %v11166_v27  ;;  %v11214_v26 = vld [vmem:[#allocation13 + $0x3ec] ss:$16 sps:$4 sm:$0xff]   ;;  %v11209_v27 = vld [vmem:[#allocation13 + $0x1e8] ss:$16 sps:$4 sm:$0xff]  }
 0x67c   :  { %v4999_v29 = vpop.f32.mrf.mxu0  ;;  %v5042_v30 = vpop.f32.mrf.mxu1 }
 0x67d   :  { %v5051_v1 = vmul.f32 %v4999_v29, %v12102_v9  ;;  %v5053_v62 = vmul.f32 %v5042_v30, %v12115_v48  ;;  %v11161_v48 = vld [vmem:[#allocation13 + $0xe8] ss:$16 sps:$4 sm:$0xff]   ;;  %v11217_v30 = vld [vmem:[#allocation13 + $0x1cc] ss:$16 sps:$4 sm:$0xff]  }
 0x67e   :  { %v5001_v44 = vpop.f32.mrf.mxu0  ;;  %v5044_v33 = vpop.f32.mrf.mxu1  ;;  %v11212_v29 = vld [vmem:[#allocation13 + $0x3e8] ss:$16 sps:$4 sm:$0xff]  }
 0x67f   :  { %v5052_v37 = vmul.f32 %v5001_v44, %v12104_v7  ;;  %v5054_v38 = vmul.f32 %v5044_v33, %v12117_v52  ;;  %v11167_v7 = vld [vmem:[#allocation13 + $0xc8] ss:$16 sps:$4 sm:$0xff]  }
 0x680   :  { %v5003_v53 = vpop.f32.mrf.mxu0  ;;  %v5046_v20 = vpop.f32.mrf.mxu1  ;;  %v11170_v52 = vld [vmem:[#allocation13 + $0x2c8] ss:$16 sps:$4 sm:$0xff]  }
 0x681   :  { %v5055_v28 = vmul.f32 %v5003_v53, %v12106_v39  ;;  %v5057_v35 = vmul.f32 %v5046_v20, %v12119_v56  ;;  %v11169_v39 = vld [vmem:[#allocation13 + $0xcc] ss:$16 sps:$4 sm:$0xff]   ;;  %v11215_v44 = vld [vmem:[#allocation13 + $0x1c8] ss:$16 sps:$4 sm:$0xff]  }
 0x682   :  { %v5005_v40 = vpop.f32.mrf.mxu0  ;;  %v5048_v31 = vpop.f32.mrf.mxu1  ;;  %v11172_v56 = vld [vmem:[#allocation13 + $0x2cc] ss:$16 sps:$4 sm:$0xff]   ;;  %v11218_v33 = vld [vmem:[#allocation13 + $0x3c8] ss:$16 sps:$4 sm:$0xff]  }
 0x683   :  { %v12140_v59 = vpack.c.bf16 %v5055_v28, %v5051_v1  ;;  %v12142_v8 = vpack.c.bf16 %v5057_v35, %v5053_v62  ;;  %v5056_v54 = vmul.f32 %v5005_v40, %v12108_v41  ;;  %v5058_v36 = vmul.f32 %v5048_v31, %v4559_v34  ;;  %v11175_v41 = vld [vmem:[#allocation13 + $0xac] ss:$16 sps:$4 sm:$0xff]   ;;  %v11221_v20 = vld [vmem:[#allocation13 + $0x1a8] ss:$16 sps:$4 sm:$0xff]  }
 0x684   :  { %v11223_v34 = vld [vmem:[#allocation13 + $0x1ac] ss:$16 sps:$4 sm:$0xff]   ;;  %v11224_v1 = vld [vmem:[#allocation13 + $0x3a8] ss:$16 sps:$4 sm:$0xff]  }
 0x685   :  { %v5060_v9 = vpack.c.bf16 %v5056_v54, %v5052_v37  ;;  %v5062_v42 = vpack.c.bf16 %v5058_v36, %v5054_v38  ;;  %v11226_v53 = vld [vmem:[#allocation13 + $0x3ac] ss:$16 sps:$4 sm:$0xff]   ;;  %v11227_v35 = vld [vmem:[#allocation13 + $0x188] ss:$16 sps:$4 sm:$0xff]  }
 0x686   :  { %v11229_v62 = vld [vmem:[#allocation13 + $0x18c] ss:$16 sps:$4 sm:$0xff]   ;;  %v11230_v37 = vld [vmem:[#allocation13 + $0x388] ss:$16 sps:$4 sm:$0xff]  }
 0x687   :  { %5885 = vmatprep.mubr.bf16.mxu0 %v5060_v9  ;;  %5928 = vmatprep.mubr.bf16.mxu1 %v5062_v42  ;;  %v11232_v28 = vld [vmem:[#allocation13 + $0x38c] ss:$16 sps:$4 sm:$0xff]   ;;  %v11233_v31 = vld [vmem:[#allocation13 + $0x168] ss:$16 sps:$4 sm:$0xff]  }
 0x688   :  { %5886 = vmatmul.mubr.bf16.vlgmr.msra.gmra.mxu0 %v12140_v59  ;;  %5929 = vmatmul.mubr.bf16.vlgmr.msra.gmra.mxu1 %v12142_v8  ;;  %v11235_v38 = vld [vmem:[#allocation13 + $0x16c] ss:$16 sps:$4 sm:$0xff]   ;;  %v11236_v54 = vld [vmem:[#allocation13 + $0x368] ss:$16 sps:$4 sm:$0xff]  }
 0x689   :  { %5940 = vmatpush1.bf16.msra.mxu0 %v11161_v48  ;;  %5983 = vmatpush1.bf16.msra.mxu1 %v11164_v43  ;;  %v11238_v40 = vld [vmem:[#allocation13 + $0x36c] ss:$16 sps:$4 sm:$0xff]   ;;  %v11242_v48 = vld [vmem:[#allocation13 + $0x348] ss:$16 sps:$4 sm:$0xff]  }
 0x68a   :  { %5971 = vmatprep.mubr.bf16.mxu0 %v5060_v9  ;;  %6014 = vmatprep.mubr.bf16.mxu1 %v5062_v42  ;;  %v11241_v36 = vld [vmem:[#allocation13 + $0x14c] ss:$16 sps:$4 sm:$0xff]   ;;  %v11239_v42 = vld [vmem:[#allocation13 + $0x148] ss:$16 sps:$4 sm:$0xff]  }
 0x68b   :  { %5941 = vmatprep.subr.bf16.mxu0 %v11169_v39  ;;  %5984 = vmatprep.subr.bf16.mxu1 %v11172_v56  ;;  %v11244_v9 = vld [vmem:[#allocation13 + $0x34c] ss:$16 sps:$4 sm:$0xff]   ;;  %v11245_v56 = vld [vmem:[#allocation13 + $0x128] ss:$16 sps:$4 sm:$0xff]  }
 0x68c   :  { %v11247_v43 = vld [vmem:[#allocation13 + $0x12c] ss:$16 sps:$4 sm:$0xff]  }
 0x68d   :  { %5942 = vmatpush1.bf16.msra.mxu0 %v11167_v7  ;;  %5985 = vmatpush1.bf16.msra.mxu1 %v11170_v52  ;;  %v11250_v39 = vld [vmem:[#allocation13 + $0x32c] ss:$16 sps:$4 sm:$0xff]   ;;  %v11248_v7 = vld [vmem:[#allocation13 + $0x328] ss:$16 sps:$4 sm:$0xff]  }
 0x68e   :  { %5943 = vmatprep.subr.bf16.mxu0 %v11175_v41  ;;  %5986 = vmatprep.subr.bf16.mxu1 %v11178_v25  ;;  %v11253_v52 = vld [vmem:[#allocation13 + $0x10c] ss:$16 sps:$4 sm:$0xff]   ;;  %v6085_v25 = vld [vmem:[#allocation16 + $0x1c0] sm:$0xff] }
 0x68f   :  { %v11256_v41 = vld [vmem:[#allocation13 + $0x30c] ss:$16 sps:$4 sm:$0xff]  }
 0x691   :  { %5944 = vmatpush1.bf16.msra.mxu0 %v11173_v45  ;;  %5987 = vmatpush1.bf16.msra.mxu1 %v11176_v46  ;;  %v6089_v45 = vld [vmem:[#allocation16 + $0x1e0] sm:$0xff] }
 0x692   :  { %5945 = vmatprep.subr.bf16.mxu0 %v11181_v49  ;;  %5988 = vmatprep.subr.bf16.mxu1 %v11184_v50  ;;  %v11251_v46 = vld [vmem:[#allocation13 + $0x108] ss:$16 sps:$4 sm:$0xff]   ;;  %v9761_v50 = vcombine.high %v6085_v25, %v6089_v45 }
 0x693   :  { %v11254_v49 = vld [vmem:[#allocation13 + $0x308] ss:$16 sps:$4 sm:$0xff]  }
 0x695   :  { %5946 = vmatpush1.bf16.msra.mxu0 %v11179_v47  ;;  %5989 = vmatpush1.bf16.msra.mxu1 %v11182_v63  ;;  %v6077_v47 = vld [vmem:[#allocation16 + $0x180] sm:$0xff] }
 0x696   :  { %5947 = vmatprep.subr.bf16.mxu0 %v11187_v0  ;;  %5990 = vmatprep.subr.bf16.mxu1 %v11190_v2  ;;  %v6081_v63 = vld [vmem:[#allocation16 + $0x1a0] sm:$0xff]  ;;  %v9760_v0 = vcombine.low %v6085_v25, %v6089_v45 }
 0x697   :  { %v9753_v2 = vcombine.high %v6077_v47, %v6081_v63  ;;  %v6181_v45 = vld [vmem:[#allocation16 + $0x4c0] sm:$0xff] }
 0x699   :  { %5948 = vmatpush1.bf16.msra.mxu0 %v11185_v3  ;;  %5991 = vmatpush1.bf16.msra.mxu1 %v11188_v5  ;;  %v6069_v3 = vld [vmem:[#allocation16 + $0x140] sm:$0xff] }
 0x69a   :  { %5949 = vmatprep.subr.bf16.mxu0 %v11193_v6  ;;  %5992 = vmatprep.subr.bf16.mxu1 %v11196_v10  ;;  %v6073_v5 = vld [vmem:[#allocation16 + $0x160] sm:$0xff]  ;;  %v9752_v6 = vcombine.low %v6077_v47, %v6081_v63 }
 0x69b   :  { %v9745_v10 = vcombine.high %v6069_v3, %v6073_v5 }
 0x69d   :  { %5950 = vmatpush1.bf16.msra.mxu0 %v11191_v12  ;;  %5993 = vmatpush1.bf16.msra.mxu1 %v11194_v15  ;;  %v6061_v12 = vld [vmem:[#allocation16 + $0x100] sm:$0xff] }
 0x69e   :  { %5951 = vmatprep.subr.bf16.mxu0 %v11199_v19  ;;  %5994 = vmatprep.subr.bf16.mxu1 %v11202_v21  ;;  %v6065_v15 = vld [vmem:[#allocation16 + $0x120] sm:$0xff]  ;;  %v9744_v19 = vcombine.low %v6069_v3, %v6073_v5 }
 0x69f   :  { %v9737_v21 = vcombine.high %v6061_v12, %v6065_v15  ;;  %v6173_v3 = vld [vmem:[#allocation16 + $0x480] sm:$0xff] }
 0x6a0   :  { %v6177_v5 = vld [vmem:[#allocation16 + $0x4a0] sm:$0xff] }
 0x6a1   :  { %5952 = vmatpush1.bf16.msra.mxu0 %v11197_v4  ;;  %5995 = vmatpush1.bf16.msra.mxu1 %v11200_v22  ;;  %v6053_v4 = vld [vmem:[#allocation16 + $0xc0] sm:$0xff] }
 0x6a2   :  { %5953 = vmatprep.subr.bf16.mxu0 %v11205_v23  ;;  %5996 = vmatprep.subr.bf16.mxu1 %v11208_v57  ;;  %v6057_v22 = vld [vmem:[#allocation16 + $0xe0] sm:$0xff]  ;;  %v9736_v23 = vcombine.low %v6061_v12, %v6065_v15  ;;  %v9848_v12 = vcombine.low %v6173_v3, %v6177_v5  ;;  %v9849_v15 = vcombine.high %v6173_v3, %v6177_v5 }
 0x6a3   :  { %v9729_v57 = vcombine.high %v6053_v4, %v6057_v22 }
 0x6a5   :  { %5954 = vmatpush1.bf16.msra.mxu0 %v11203_v24  ;;  %5997 = vmatpush1.bf16.msra.mxu1 %v11206_v51  ;;  %v6045_v24 = vld [vmem:[#allocation16 + $0x80] sm:$0xff] }
 0x6a6   :  { %5955 = vmatprep.subr.bf16.mxu0 %v11211_v16  ;;  %5998 = vmatprep.subr.bf16.mxu1 %v11214_v26  ;;  %v6217_v51 = vld [vmem:[#allocation16 + $0x5e0] sm:$0xff] }
 0x6a9   :  { %5956 = vmatpush2.bf16.msra.mxu0 %v11209_v27  ;;  %5999 = vmatpush2.bf16.msra.mxu1 %v11212_v29  ;;  %v12149_v27 = vld [vmem:[#allocation16 + $0x1c8] sm:$0xff] }
 0x6aa   :  { %5957 = vmatprep.subr.bf16.mxu0 %v11217_v30  ;;  %6000 = vmatprep.subr.bf16.mxu1 %v11220_v32  ;;  %v12151_v29 = vld [vmem:[#allocation16 + $0x1e8] sm:$0xff]  ;;  %v9728_v30 = vcombine.low %v6053_v4, %v6057_v22  ;;  %v6165_v4 = vld [vmem:[#allocation16 + $0x440] sm:$0xff] }
 0x6ab   :  { %v9762_v32 = vcombine.low %v12149_v27, %v12151_v29  ;;  %v6169_v22 = vld [vmem:[#allocation16 + $0x460] sm:$0xff]  ;;  %v9763_v5 = vcombine.high %v12149_v27, %v12151_v29  ;;  %v6050_v27 = vld [vmem:[#allocation16 + $0xa8] sm:$0xff] }
 0x6ad   :  { %5958 = vmatpush2.bf16.msra.mxu0 %v11215_v44  ;;  %6001 = vmatpush2.bf16.msra.mxu1 %v11218_v33  ;;  %v6205_v33 = vld [vmem:[#allocation16 + $0x580] sm:$0xff] }
 0x6ae   :  { %5959 = vmatprep.subr.bf16.mxu0 %v11223_v34  ;;  %6002 = vmatprep.subr.bf16.mxu1 %v11226_v53  ;;  %v6209_v34 = vld [vmem:[#allocation16 + $0x5a0] sm:$0xff] }
 0x6af   :  { %v6037_v53 = vld [vmem:[#allocation16 + $0x40] sm:$0xff] }
 0x6b1   :  { %5960 = vmatpush2.bf16.msra.mxu0 %v11221_v20  ;;  %6003 = vmatpush2.bf16.msra.mxu1 %v11224_v1  ;;  %v6041_v20 = vld [vmem:[#allocation16 + $0x60] sm:$0xff]  ;;  %v9880_v1 = vcombine.low %v6205_v33, %v6209_v34 }
 0x6b2   :  { %5961 = vmatprep.subr.bf16.mxu0 %v11229_v62  ;;  %6004 = vmatprep.subr.bf16.mxu1 %v11232_v28  ;;  %v9881_v62 = vcombine.high %v6205_v33, %v6209_v34 }
 0x6b5   :  { %5962 = vmatpush2.bf16.msra.mxu0 %v11227_v35  ;;  %6005 = vmatpush2.bf16.msra.mxu1 %v11230_v37  ;;  %v9713_v35 = vcombine.high %v6037_v53, %v6041_v20  ;;  %v6197_v37 = vld [vmem:[#allocation16 + $0x540] sm:$0xff] }
 0x6b6   :  { %5963 = vmatprep.subr.bf16.mxu0 %v11235_v38  ;;  %6006 = vmatprep.subr.bf16.mxu1 %v11238_v40  ;;  %v6201_v38 = vld [vmem:[#allocation16 + $0x560] sm:$0xff] }
 0x6b7   :  { %v6029_v40 = vld [vmem:[#allocation16] sm:$0xff] }
 0x6b9   :  { %5964 = vmatpush2.bf16.msra.mxu0 %v11233_v31  ;;  %6007 = vmatpush2.bf16.msra.mxu1 %v11236_v54  ;;  %v6033_v31 = vld [vmem:[#allocation16 + $0x20] sm:$0xff]  ;;  %v9872_v54 = vcombine.low %v6197_v37, %v6201_v38 }
 0x6ba   :  { %5965 = vmatprep.subr.bf16.mxu0 %v11241_v36  ;;  %6008 = vmatprep.subr.bf16.mxu1 %v11244_v9  ;;  %v9873_v36 = vcombine.high %v6197_v37, %v6201_v38  ;;  %v9712_v9 = vcombine.low %v6037_v53, %v6041_v20 }
 0x6bd   :  { %5966 = vmatpush2.bf16.msra.mxu0 %v11239_v42  ;;  %6009 = vmatpush2.bf16.msra.mxu1 %v11242_v48  ;;  %v9705_v42 = vcombine.high %v6029_v40, %v6033_v31  ;;  %v6189_v48 = vld [vmem:[#allocation16 + $0x500] sm:$0xff] }
 0x6be   :  { %5967 = vmatprep.subr.bf16.mxu0 %v11247_v43  ;;  %6010 = vmatprep.subr.bf16.mxu1 %v11250_v39  ;;  %v6193_v43 = vld [vmem:[#allocation16 + $0x520] sm:$0xff] }
 0x6bf   :  { %v6149_v39 = vld [vmem:[#allocation16 + $0x3c0] sm:$0xff] }
 0x6c1   :  { %5968 = vmatpush2.bf16.msra.mxu0 %v11245_v56  ;;  %6011 = vmatpush2.bf16.msra.mxu1 %v11248_v7  ;;  %v6153_v56 = vld [vmem:[#allocation16 + $0x3e0] sm:$0xff]  ;;  %v9864_v7 = vcombine.low %v6189_v48, %v6193_v43 }
 0x6c2   :  { %5969 = vmatprep.subr.bf16.mxu0 %v11253_v52  ;;  %6012 = vmatprep.subr.bf16.mxu1 %v11256_v41  ;;  %v9865_v52 = vcombine.high %v6189_v48, %v6193_v43  ;;  %v9704_v41 = vcombine.low %v6029_v40, %v6033_v31  ;;  %v9825_v25 = vcombine.high %v6149_v39, %v6153_v56 }
 0x6c5   :  { %5970 = vmatpush2.bf16.msra.mxu0 %v11251_v46  ;;  %6013 = vmatpush2.bf16.msra.mxu1 %v11254_v49  ;;  %v6185_v46 = vld [vmem:[#allocation16 + $0x4e0] sm:$0xff] }
 0x6c6   :  { %7607 = vmatprep.subr.bf16.mxu0 %v9761_v50  ;;  %v6141_v49 = vld [vmem:[#allocation16 + $0x380] sm:$0xff]  ;;  %v9856_v47 = vcombine.low %v6181_v45, %v6185_v46  ;;  %v9857_v63 = vcombine.high %v6181_v45, %v6185_v46 }
 0x6c7   :  { %v6145_v50 = vld [vmem:[#allocation16 + $0x3a0] sm:$0xff] }
 0x6c8   :  { %5972 = vmatmul.mubr.bf16.vlgmr.msra.gmra.mxu0 %v12140_v59  ;;  %6015 = vmatmul.mubr.bf16.vlgmr.msra.gmra.mxu1 %v12142_v8  ;;  %v6213_v59 = vld [vmem:[#allocation16 + $0x5c0] sm:$0xff] }
 0x6c9   :  { %7608 = vmatpush1.bf16.msra.mxu0 %v9760_v0  ;;  %v6049_v8 = vld [vmem:[#allocation16 + $0xa0] sm:$0xff]  ;;  %v9888_v16 = vcombine.low %v6213_v59, %v6217_v51  ;;  %v9889_v26 = vcombine.high %v6213_v59, %v6217_v51  ;;  %v9824_v0 = vcombine.low %v6149_v39, %v6153_v56  ;;  %v9841_v59 = vcombine.high %v6165_v4, %v6169_v22 }
 0x6ca   :  { %7609 = vmatprep.subr.bf16.mxu0 %v9753_v2  ;;  %v9721_v44 = vcombine.high %v6045_v24, %v6049_v8  ;;  %v9720_v28 = vcombine.low %v6045_v24, %v6049_v8  ;;  %v9817_v2 = vcombine.high %v6141_v49, %v6145_v50  ;;  %v9840_v24 = vcombine.low %v6165_v4, %v6169_v22 }
 0x6cb   :  { %7650 = vmatprep.subr.bf16.mxu1 %v9889_v26  ;;  %v6161_v26 = vld [vmem:[#allocation16 + $0x420] sm:$0xff] }
 0x6cc   :  { %7651 = vmatpush1.bf16.msra.mxu1 %v9888_v16  ;;  %v6157_v16 = vld [vmem:[#allocation16 + $0x400] sm:$0xff] }
 0x6cd   :  { %7610 = vmatpush1.bf16.msra.mxu0 %v9752_v6  ;;  %7652 = vmatprep.subr.bf16.mxu1 %v9881_v62  ;;  %v6133_v6 = vld [vmem:[#allocation16 + $0x340] sm:$0xff]  ;;  %v9832_v33 = vcombine.low %v6157_v16, %v6161_v26  ;;  %v9833_v34 = vcombine.high %v6157_v16, %v6161_v26 }
 0x6ce   :  { %7611 = vmatprep.subr.bf16.mxu0 %v9745_v10  ;;  %v6137_v10 = vld [vmem:[#allocation16 + $0x360] sm:$0xff] }
 0x6cf   :  { %v9808_v51 = vcombine.low %v6133_v6, %v6137_v10  ;;  %v6281_v62 = vld [vmem:[#allocation16 + $0x7e0] sm:$0xff] }
 0x6d0   :  { %7653 = vmatpush1.bf16.msra.mxu1 %v9880_v1  ;;  %v6277_v1 = vld [vmem:[#allocation16 + $0x7c0] sm:$0xff] }
 0x6d1   :  { %7612 = vmatpush1.bf16.msra.mxu0 %v9744_v19  ;;  %7654 = vmatprep.subr.bf16.mxu1 %v9873_v36  ;;  %v9816_v19 = vcombine.low %v6141_v49, %v6145_v50  ;;  %v9952_v37 = vcombine.low %v6277_v1, %v6281_v62  ;;  %v9953_v38 = vcombine.high %v6277_v1, %v6281_v62  ;;  %v6273_v36 = vld [vmem:[#allocation16 + $0x7a0] sm:$0xff] }
 0x6d2   :  { %7613 = vmatprep.subr.bf16.mxu0 %v9737_v21  ;;  %v9809_v21 = vcombine.high %v6133_v6, %v6137_v10  ;;  %v6245_v6 = vld [vmem:[#allocation16 + $0x6c0] sm:$0xff] }
 0x6d3   :  { %v6249_v10 = vld [vmem:[#allocation16 + $0x6e0] sm:$0xff] }
 0x6d4   :  { %7655 = vmatpush1.bf16.msra.mxu1 %v9872_v54  ;;  %v6269_v54 = vld [vmem:[#allocation16 + $0x780] sm:$0xff] }
 0x6d5   :  { %7614 = vmatpush1.bf16.msra.mxu0 %v9736_v23  ;;  %7656 = vmatprep.subr.bf16.mxu1 %v9865_v52  ;;  %v6125_v23 = vld [vmem:[#allocation16 + $0x300] sm:$0xff]  ;;  %v9944_v48 = vcombine.low %v6269_v54, %v6273_v36  ;;  %v9945_v43 = vcombine.high %v6269_v54, %v6273_v36 }
 0x6d6   :  { %7615 = vmatprep.subr.bf16.mxu0 %v9729_v57  ;;  %v6129_v57 = vld [vmem:[#allocation16 + $0x320] sm:$0xff] }
 0x6d7   :  { %v9801_v8 = vcombine.high %v6125_v23, %v6129_v57  ;;  %v9800_v53 = vcombine.low %v6125_v23, %v6129_v57  ;;  %v6265_v52 = vld [vmem:[#allocation16 + $0x760] sm:$0xff] }
 0x6d8   :  { %7657 = vmatpush1.bf16.msra.mxu1 %v9864_v7  ;;  %v6261_v7 = vld [vmem:[#allocation16 + $0x740] sm:$0xff] }
 0x6d9   :  { %7616 = vmatpush1.bf16.msra.mxu0 %v9728_v30  ;;  %7658 = vmatprep.subr.bf16.mxu1 %v9857_v63  ;;  %v6117_v30 = vld [vmem:[#allocation16 + $0x2c0] sm:$0xff]  ;;  %v9936_v45 = vcombine.low %v6261_v7, %v6265_v52  ;;  %v9937_v46 = vcombine.high %v6261_v7, %v6265_v52  ;;  %v6078_v7 = vld [vmem:[#allocation16 + $0x188] sm:$0xff] }
 0x6da   :  { %7617 = vmatprep.subr.bf16.mxu0 %v9721_v44  ;;  %v6121_v44 = vld [vmem:[#allocation16 + $0x2e0] sm:$0xff]  ;;  %v6082_v52 = vld [vmem:[#allocation16 + $0x1a8] sm:$0xff] }
 0x6db   :  { %v9793_v20 = vcombine.high %v6117_v30, %v6121_v44  ;;  %v9792_v40 = vcombine.low %v6117_v30, %v6121_v44  ;;  %v6257_v63 = vld [vmem:[#allocation16 + $0x720] sm:$0xff]  ;;  %v12157_v30 = vld [vmem:[#allocation16 + $0x5c8] sm:$0xff] }
 0x6dc   :  { %7659 = vmatpush1.bf16.msra.mxu1 %v9856_v47  ;;  %v6253_v47 = vld [vmem:[#allocation16 + $0x700] sm:$0xff]  ;;  %v12159_v44 = vld [vmem:[#allocation16 + $0x5e8] sm:$0xff] }
 0x6dd   :  { %7618 = vmatpush1.bf16.msra.mxu0 %v9720_v28  ;;  %7660 = vmatprep.subr.bf16.mxu1 %v9849_v15  ;;  %v6109_v28 = vld [vmem:[#allocation16 + $0x280] sm:$0xff]  ;;  %v9921_v15 = vcombine.high %v6245_v6, %v6249_v10 }
 0x6de   :  { %7619 = vmatprep.subr.bf16.mxu0 %v9713_v35  ;;  %v6113_v35 = vld [vmem:[#allocation16 + $0x2a0] sm:$0xff] }
 0x6df   :  { %v9785_v31 = vcombine.high %v6109_v28, %v6113_v35  ;;  %v9784_v39 = vcombine.low %v6109_v28, %v6113_v35  ;;  %v6229_v23 = vld [vmem:[#allocation16 + $0x640] sm:$0xff] }
 0x6e0   :  { %7661 = vmatpush1.bf16.msra.mxu1 %v9848_v12  ;;  %v9920_v12 = vcombine.low %v6245_v6, %v6249_v10  ;;  %v6233_v57 = vld [vmem:[#allocation16 + $0x660] sm:$0xff]  ;;  %v6054_v6 = vld [vmem:[#allocation16 + $0xc8] sm:$0xff] }
 0x6e1   :  { %7620 = vmatpush1.bf16.msra.mxu0 %v9712_v9  ;;  %7662 = vmatprep.subr.bf16.mxu1 %v9841_v59  ;;  %v6101_v9 = vld [vmem:[#allocation16 + $0x240] sm:$0xff]  ;;  %v9904_v59 = vcombine.low %v6229_v23, %v6233_v57  ;;  %v6058_v10 = vld [vmem:[#allocation16 + $0xe8] sm:$0xff] }
 0x6e2   :  { %7621 = vmatprep.subr.bf16.mxu0 %v9705_v42  ;;  %v6105_v42 = vld [vmem:[#allocation16 + $0x260] sm:$0xff]  ;;  %v9730_v29 = vcombine.low %v6054_v6, %v6058_v10 }
 0x6e3   :  { %v9777_v56 = vcombine.high %v6101_v9, %v6105_v42  ;;  %v9776_v49 = vcombine.low %v6101_v9, %v6105_v42 }
 0x6e4   :  { %7663 = vmatpush1.bf16.msra.mxu1 %v9840_v24  ;;  %v9905_v24 = vcombine.high %v6229_v23, %v6233_v57  ;;  %v6030_v57 = vld [vmem:[#allocation16 + $0x8] sm:$0xff] }
 0x6e5   :  { %7622 = vmatpush1.bf16.msra.mxu0 %v9704_v41  ;;  %7664 = vmatprep.subr.bf16.mxu1 %v9833_v34  ;;  %v6093_v41 = vld [vmem:[#allocation16 + $0x200] sm:$0xff]  ;;  %v9890_v34 = vcombine.low %v12157_v30, %v12159_v44 }
 0x6e6   :  { %7623 = vmatprep.subr.bf16.mxu0 %v9825_v25  ;;  %v6097_v25 = vld [vmem:[#allocation16 + $0x220] sm:$0xff] }
 0x6e7   :  { %v9769_v50 = vcombine.high %v6093_v41, %v6097_v25  ;;  %v9768_v3 = vcombine.low %v6093_v41, %v6097_v25 }
 0x6e8   :  { %7665 = vmatpush1.bf16.msra.mxu1 %v9832_v33  ;;  %v9891_v33 = vcombine.high %v12157_v30, %v12159_v44 }
 0x6e9   :  { %7624 = vmatpush2.bf16.msra.mxu0 %v9824_v0  ;;  %7666 = vmatprep.subr.bf16.mxu1 %v9953_v38  ;;  %v9928_v0 = vcombine.low %v6253_v47, %v6257_v63 }
 0x6ea   :  { %7625 = vmatprep.subr.bf16.mxu0 %v9817_v2  ;;  %v9929_v2 = vcombine.high %v6253_v47, %v6257_v63  ;;  %v9754_v47 = vcombine.low %v6078_v7, %v6082_v52 }
 0x6ec   :  { %7667 = vmatpush2.bf16.msra.mxu1 %v9952_v37 }
 0x6ed   :  { %7626 = vmatpush2.bf16.msra.mxu0 %v9816_v19  ;;  %7668 = vmatprep.subr.bf16.mxu1 %v9945_v43  ;;  %v6237_v19 = vld [vmem:[#allocation16 + $0x680] sm:$0xff] }
 0x6ee   :  { %7627 = vmatprep.subr.bf16.mxu0 %v9809_v21  ;;  %v6241_v21 = vld [vmem:[#allocation16 + $0x6a0] sm:$0xff] }
 0x6ef   :  { %v9913_v4 = vcombine.high %v6237_v19, %v6241_v21  ;;  %v9912_v22 = vcombine.low %v6237_v19, %v6241_v21  ;;  %v6046_v19 = vld [vmem:[#allocation16 + $0x88] sm:$0xff] }
 0x6f0   :  { %7669 = vmatpush2.bf16.msra.mxu1 %v9944_v48  ;;  %v6038_v21 = vld [vmem:[#allocation16 + $0x48] sm:$0xff] }
 0x6f1   :  { %7628 = vmatpush2.bf16.msra.mxu0 %v9808_v51  ;;  %7670 = vmatprep.subr.bf16.mxu1 %v9937_v46  ;;  %v6221_v51 = vld [vmem:[#allocation16 + $0x600] sm:$0xff]  ;;  %v9755_v46 = vcombine.high %v6078_v7, %v6082_v52  ;;  %v6114_v7 = vld [vmem:[#allocation16 + $0x2a8] sm:$0xff] }
 0x6f2   :  { %7629 = vmatprep.subr.bf16.mxu0 %v9801_v8  ;;  %v6225_v8 = vld [vmem:[#allocation16 + $0x620] sm:$0xff] }
 0x6f3   :  { %v9897_v16 = vcombine.high %v6221_v51, %v6225_v8  ;;  %v9896_v26 = vcombine.low %v6221_v51, %v6225_v8  ;;  %v6150_v8 = vld [vmem:[#allocation16 + $0x3c8] sm:$0xff] }
 0x6f4   :  { %7671 = vmatpush2.bf16.msra.mxu1 %v9936_v45 }
 0x6f5   :  { %7630 = vmatpush2.bf16.msra.mxu0 %v9800_v53  ;;  %7672 = vmatprep.subr.bf16.mxu1 %v9929_v2  ;;  %v12165_v53 = vld [vmem:[#allocation14] sm:$0xf]  ;;  %v6066_v2 = vld [vmem:[#allocation16 + $0x128] sm:$0xff] }
 0x6f6   :  { %7631 = vmatprep.subr.bf16.mxu0 %v9793_v20  ;;  %v5200_v62 = vrot.slane %v12165_v53, %v11894_v18  ;;  %v5196_v28 = vrot.slane %v12165_v53, %v11891_v17 }
 0x6f8   :  { %7673 = vmatpush2.bf16.msra.mxu1 %v9928_v0  ;;  %v6062_v0 = vld [vmem:[#allocation16 + $0x108] sm:$0xff] }
 0x6f9   :  { %7632 = vmatpush2.bf16.msra.mxu0 %v9792_v40  ;;  %7674 = vmatprep.subr.bf16.mxu1 %v9921_v15  ;;  %v9731_v15 = vcombine.high %v6054_v6, %v6058_v10  ;;  %v5204_v6 = vrot.slane %v12165_v53, %v11911_v13 }
 0x6fa   :  { %7633 = vmatprep.subr.bf16.mxu0 %v9785_v31 }
 0x6fc   :  { %7675 = vmatpush2.bf16.msra.mxu1 %v9920_v12  ;;  %v9738_v12 = vcombine.low %v6062_v0, %v6066_v2 }
 0x6fd   :  { %7634 = vmatpush2.bf16.msra.mxu0 %v9784_v39  ;;  %7676 = vmatprep.subr.bf16.mxu1 %v9913_v4  ;;  %v6042_v4 = vld [vmem:[#allocation16 + $0x68] sm:$0xff] }
 0x6fe   :  { %7635 = vmatprep.subr.bf16.mxu0 %v9777_v56  ;;  %v9715_v23 = vcombine.high %v6038_v21, %v6042_v4 }
 0x700   :  { %7677 = vmatpush2.bf16.msra.mxu1 %v9912_v22  ;;  %v9722_v22 = vcombine.low %v6046_v19, %v6050_v27 }
 0x701   :  { %7636 = vmatpush2.bf16.msra.mxu0 %v9776_v49  ;;  %7678 = vmatprep.subr.bf16.mxu1 %v9905_v24  ;;  %v6070_v49 = vld [vmem:[#allocation16 + $0x148] sm:$0xff] }
 0x702   :  { %7637 = vmatprep.subr.bf16.mxu0 %v9769_v50  ;;  %v6074_v50 = vld [vmem:[#allocation16 + $0x168] sm:$0xff] }
 0x703   :  { %v9747_v63 = vcombine.high %v6070_v49, %v6074_v50  ;;  %v6034_v24 = vld [vmem:[#allocation16 + $0x28] sm:$0xff] }
 0x704   :  { %7679 = vmatpush2.bf16.msra.mxu1 %v9904_v59  ;;  %v9714_v59 = vcombine.low %v6038_v21, %v6042_v4  ;;  %v9707_v51 = vcombine.high %v6030_v57, %v6034_v24  ;;  %v6087_v4 = vld [vmem:[#allocation16 + $0x1d0] sm:$0xff] }
 0x705   :  { %7638 = vmatpush2.bf16.msra.mxu0 %v9768_v3  ;;  %7680 = vmatprep.subr.bf16.mxu1 %v9897_v16  ;;  %v9746_v3 = vcombine.low %v6070_v49, %v6074_v50  ;;  %v6154_v16 = vld [vmem:[#allocation16 + $0x3e8] sm:$0xff] }
 0x706   :  { %7693 = vmatprep.subr.bf16.mxu0 %v9763_v5  ;;  %v9739_v5 = vcombine.high %v6062_v0, %v6066_v2  ;;  %v6106_v49 = vld [vmem:[#allocation16 + $0x268] sm:$0xff]  ;;  %v5208_v2 = vrot.slane %v12165_v53, %v11908_v11 }
 0x708   :  { %7681 = vmatpush2.bf16.msra.mxu1 %v9896_v26  ;;  %v9706_v26 = vcombine.low %v6030_v57, %v6034_v24 }
 0x709   :  { %7736 = vmatprep.subr.bf16.mxu1 %v9891_v33  ;;  %v9827_v33 = vcombine.high %v6150_v8, %v6154_v16 }
 0x748   :  { %v5887_v20 = vpop.f32.mrf.mxu0  ;;  %v5930_v1 = vpop.f32.mrf.mxu1 }
 0x749   :  { %v5888_v36 = vadd.f32 %v5887_v20, %v5196_v28  ;;  %v6142_v20 = vld [vmem:[#allocation16 + $0x388] sm:$0xff] }
 0x74a   :  { %v5889_v35 = vpop.f32.mrf.mxu0  ;;  %v5932_v37 = vpop.f32.mrf.mxu1 }
 0x74b   :  { %v5890_v31 = vadd.f32 %v5889_v35, %v5200_v62  ;;  %v5931_v41 = vadd.f32 %v5930_v1, %v5888_v36  ;;  %v6146_v1 = vld [vmem:[#allocation16 + $0x3a8] sm:$0xff] }
 0x74c   :  { %v5891_v38 = vpop.f32.mrf.mxu0  ;;  %v5934_v40 = vpop.f32.mrf.mxu1  ;;  %v6134_v35 = vld [vmem:[#allocation16 + $0x348] sm:$0xff] }
 0x74d   :  { %v5892_v54 = vadd.f32 %v5891_v38, %v5196_v28  ;;  %v5933_v39 = vadd.f32 %v5932_v37, %v5890_v31  ;;  %v9819_v28 = vcombine.high %v6142_v20, %v6146_v1  ;;  %v6138_v37 = vld [vmem:[#allocation16 + $0x368] sm:$0xff]  ;;  %v9818_v38 = vcombine.low %v6142_v20, %v6146_v1 }
 0x74e   :  { %v5893_v9 = vpop.f32.mrf.mxu0  ;;  %v5936_v43 = vpop.f32.mrf.mxu1  ;;  %v6126_v31 = vld [vmem:[#allocation16 + $0x308] sm:$0xff]  ;;  %v9810_v36 = vcombine.low %v6134_v35, %v6138_v37 }
 0x74f   :  { %v5894_v42 = vadd.f32 %v5893_v9, %v5200_v62  ;;  %v5935_v48 = vadd.f32 %v5934_v40, %v5892_v54  ;;  %v9826_v62 = vcombine.low %v6150_v8, %v6154_v16  ;;  %v9811_v40 = vcombine.high %v6134_v35, %v6138_v37  ;;  %v6130_v54 = vld [vmem:[#allocation16 + $0x328] sm:$0xff] }
 0x750   :  { %v9803_v9 = vcombine.high %v6126_v31, %v6130_v54  ;;  %v6210_v1 = vld [vmem:[#allocation16 + $0x5a8] sm:$0xff] }
 0x751   :  { %v5937_v56 = vadd.f32 %v5936_v43, %v5894_v42  ;;  %v12173_v45 = vpack.c.bf16 %v5935_v48, %v5931_v41  ;;  %v6118_v42 = vld [vmem:[#allocation16 + $0x2c8] sm:$0xff]  ;;  %v9802_v43 = vcombine.low %v6126_v31, %v6130_v54 }
 0x752   :  { %v6122_v48 = vld [vmem:[#allocation16 + $0x2e8] sm:$0xff] }
 0x753   :  { %v12171_v25 = vpack.c.bf16 %v5937_v56, %v5933_v39  ;;  %v9795_v39 = vcombine.high %v6118_v42, %v6122_v48  ;;  %v6110_v56 = vld [vmem:[#allocation16 + $0x288] sm:$0xff]  ;;  %v9794_v52 = vcombine.low %v6118_v42, %v6122_v48  ;;  %v6075_v42 = vld [vmem:[#allocation16 + $0x170] sm:$0xff] }
 0x754   :  { %v9787_v41 = vcombine.high %v6110_v56, %v6114_v7  ;;  %v9786_v50 = vcombine.low %v6110_v56, %v6114_v7  ;;  %v6198_v54 = vld [vmem:[#allocation16 + $0x548] sm:$0xff] }
 0x755   :  { %7639 = vmatprep.mubr.bf16.mxu0 %v12171_v25  ;;  %v6190_v7 = vld [vmem:[#allocation16 + $0x508] sm:$0xff] }
 0x756   :  { %7640 = vmatmul.mubr.bf16.vlgmr.msra.gmra.mxu0 %v12173_v45 }
 0x757   :  { %7694 = vmatpush1.bf16.msra.mxu0 %v9762_v32  ;;  %7725 = vmatprep.mubr.bf16.mxu0 %v12171_v25  ;;  %v9723_v32 = vcombine.high %v6046_v19, %v6050_v27 }
 0x758   :  { %7695 = vmatprep.subr.bf16.mxu0 %v9755_v46  ;;  %v6102_v46 = vld [vmem:[#allocation16 + $0x248] sm:$0xff] }
 0x759   :  { %v9779_v0 = vcombine.high %v6102_v46, %v6106_v49 }
 0x75b   :  { %7696 = vmatpush1.bf16.msra.mxu0 %v9754_v47 }
 0x75c   :  { %7697 = vmatprep.subr.bf16.mxu0 %v9747_v63 }
 0x75f   :  { %7698 = vmatpush1.bf16.msra.mxu0 %v9746_v3  ;;  %v6094_v3 = vld [vmem:[#allocation16 + $0x208] sm:$0xff] }
 0x760   :  { %7699 = vmatprep.subr.bf16.mxu0 %v9739_v5  ;;  %v6098_v5 = vld [vmem:[#allocation16 + $0x228] sm:$0xff] }
 0x763   :  { %7700 = vmatpush1.bf16.msra.mxu0 %v9738_v12 }
 0x764   :  { %7701 = vmatprep.subr.bf16.mxu0 %v9731_v15  ;;  %v9778_v15 = vcombine.low %v6102_v46, %v6106_v49  ;;  %v6067_v46 = vld [vmem:[#allocation16 + $0x130] sm:$0xff] }
 0x767   :  { %7702 = vmatpush1.bf16.msra.mxu0 %v9730_v29  ;;  %v9771_v29 = vcombine.high %v6094_v3, %v6098_v5 }
 0x768   :  { %7703 = vmatprep.subr.bf16.mxu0 %v9723_v32 }
 0x76b   :  { %7704 = vmatpush1.bf16.msra.mxu0 %v9722_v22  ;;  %v6091_v22 = vld [vmem:[#allocation16 + $0x1f0] sm:$0xff] }
 0x76c   :  { %7705 = vmatprep.subr.bf16.mxu0 %v9715_v23  ;;  %v9765_v53 = vcombine.high %v6087_v4, %v6091_v22 }
 0x76f   :  { %7706 = vmatpush1.bf16.msra.mxu0 %v9714_v59  ;;  %v9770_v59 = vcombine.low %v6094_v3, %v6098_v5 }
 0x770   :  { %7707 = vmatprep.subr.bf16.mxu0 %v9707_v51 }
 0x773   :  { %7708 = vmatpush1.bf16.msra.mxu0 %v9706_v26 }
 0x774   :  { %7709 = vmatprep.subr.bf16.mxu0 %v9827_v33  ;;  %v6206_v33 = vld [vmem:[#allocation16 + $0x588] sm:$0xff] }
 0x775   :  { %v9882_v48 = vcombine.low %v6206_v33, %v6210_v1 }
 0x777   :  { %7710 = vmatpush2.bf16.msra.mxu0 %v9826_v62  ;;  %v6079_v62 = vld [vmem:[#allocation16 + $0x190] sm:$0xff] }
 0x778   :  { %7711 = vmatprep.subr.bf16.mxu0 %v9819_v28  ;;  %v6083_v28 = vld [vmem:[#allocation16 + $0x1b0] sm:$0xff] }
 0x779   :  { %v9757_v31 = vcombine.high %v6079_v62, %v6083_v28 }
 0x77b   :  { %7712 = vmatpush2.bf16.msra.mxu0 %v9818_v38  ;;  %v9764_v38 = vcombine.low %v6087_v4, %v6091_v22  ;;  %v6166_v4 = vld [vmem:[#allocation16 + $0x448] sm:$0xff] }
 0x77c   :  { %7713 = vmatprep.subr.bf16.mxu0 %v9811_v40  ;;  %v9883_v40 = vcombine.high %v6206_v33, %v6210_v1  ;;  %v6170_v22 = vld [vmem:[#allocation16 + $0x468] sm:$0xff]  ;;  %v6035_v33 = vld [vmem:[#allocation16 + $0x30] sm:$0xff] }
 0x77f   :  { %7714 = vmatpush2.bf16.msra.mxu0 %v9810_v36  ;;  %v6202_v36 = vld [vmem:[#allocation16 + $0x568] sm:$0xff] }
 0x780   :  { %7715 = vmatprep.subr.bf16.mxu0 %v9803_v9  ;;  %v6071_v9 = vld [vmem:[#allocation16 + $0x150] sm:$0xff]  ;;  %v9874_v49 = vcombine.low %v6198_v54, %v6202_v36 }
 0x781   :  { %v9749_v56 = vcombine.high %v6071_v9, %v6075_v42  ;;  %v9748_v30 = vcombine.low %v6071_v9, %v6075_v42 }
 0x783   :  { %7716 = vmatpush2.bf16.msra.mxu0 %v9802_v43  ;;  %v9756_v43 = vcombine.low %v6079_v62, %v6083_v28 }
 0x784   :  { %7717 = vmatprep.subr.bf16.mxu0 %v9795_v39  ;;  %v9875_v39 = vcombine.high %v6198_v54, %v6202_v36  ;;  %v6155_v54 = vld [vmem:[#allocation16 + $0x3f0] sm:$0xff] }
 0x787   :  { %7718 = vmatpush2.bf16.msra.mxu0 %v9794_v52  ;;  %v6194_v52 = vld [vmem:[#allocation16 + $0x528] sm:$0xff] }
 0x788   :  { %v5973_v47 = vpop.f32.mrf.mxu0  ;;  %v6016_v63 = vpop.f32.mrf.mxu1  ;;  %7719 = vmatprep.subr.bf16.mxu0 %v9787_v41  ;;  %v6063_v41 = vld [vmem:[#allocation16 + $0x110] sm:$0xff]  ;;  %v9867_v44 = vcombine.high %v6190_v7, %v6194_v52 }
 0x789   :  { %v5974_v23 = vadd.f32 %v5973_v47, %v5204_v6  ;;  %v6186_v47 = vld [vmem:[#allocation16 + $0x4e8] sm:$0xff]  ;;  %v9740_v3 = vcombine.low %v6063_v41, %v6067_v46 }
 0x78a   :  { %v5975_v10 = vpop.f32.mrf.mxu0  ;;  %v6018_v12 = vpop.f32.mrf.mxu1 }
 0x78b   :  { %7720 = vmatpush2.bf16.msra.mxu0 %v9786_v50  ;;  %v5976_v32 = vadd.f32 %v5975_v10, %v5208_v2  ;;  %v6017_v20 = vadd.f32 %v6016_v63, %v5974_v23  ;;  %v6182_v50 = vld [vmem:[#allocation16 + $0x4c8] sm:$0xff]  ;;  %v6055_v63 = vld [vmem:[#allocation16 + $0xd0] sm:$0xff] }
 0x78c   :  { %v5977_v19 = vpop.f32.mrf.mxu0  ;;  %v6020_v27 = vpop.f32.mrf.mxu1  ;;  %7721 = vmatprep.subr.bf16.mxu0 %v9779_v0  ;;  %v6059_v0 = vld [vmem:[#allocation16 + $0xf0] sm:$0xff]  ;;  %v9859_v5 = vcombine.high %v6182_v50, %v6186_v47  ;;  %v6174_v10 = vld [vmem:[#allocation16 + $0x488] sm:$0xff] }
 0x78d   :  { %v5978_v21 = vadd.f32 %v5977_v19, %v5204_v6  ;;  %v6019_v16 = vadd.f32 %v6018_v12, %v5976_v32  ;;  %v9733_v6 = vcombine.high %v6055_v63, %v6059_v0  ;;  %v6178_v12 = vld [vmem:[#allocation16 + $0x4a8] sm:$0xff]  ;;  %v6051_v19 = vld [vmem:[#allocation16 + $0xb0] sm:$0xff] }
 0x78e   :  { %v5979_v57 = vpop.f32.mrf.mxu0  ;;  %v6022_v8 = vpop.f32.mrf.mxu1  ;;  %v9851_v32 = vcombine.high %v6174_v10, %v6178_v12  ;;  %v6039_v23 = vld [vmem:[#allocation16 + $0x50] sm:$0xff] }
 0x78f   :  { %v5980_v24 = vadd.f32 %v5979_v57, %v5208_v2  ;;  %7722 = vmatpush2.bf16.msra.mxu0 %v9778_v15  ;;  %v6021_v51 = vadd.f32 %v6020_v27, %v5978_v21  ;;  %v9866_v2 = vcombine.low %v6190_v7, %v6194_v52  ;;  %v6047_v15 = vld [vmem:[#allocation16 + $0x90] sm:$0xff]  ;;  %v9858_v27 = vcombine.low %v6182_v50, %v6186_v47 }
 0x790   :  { %7723 = vmatprep.subr.bf16.mxu0 %v9771_v29  ;;  %v9732_v29 = vcombine.low %v6055_v63, %v6059_v0  ;;  %v9725_v21 = vcombine.high %v6047_v15, %v6051_v19  ;;  %v6043_v57 = vld [vmem:[#allocation16 + $0x70] sm:$0xff] }
 0x791   :  { %v6023_v26 = vadd.f32 %v6022_v8, %v5980_v24  ;;  %v12187_v37 = vpack.c.bf16 %v6021_v51, %v6017_v20  ;;  %v9850_v24 = vcombine.low %v6174_v10, %v6178_v12  ;;  %v9843_v51 = vcombine.high %v6166_v4, %v6170_v22  ;;  %v6147_v7 = vld [vmem:[#allocation16 + $0x3b0] sm:$0xff] }
 0x792   :  { %v9717_v8 = vcombine.high %v6039_v23, %v6043_v57  ;;  %v9842_v20 = vcombine.low %v6166_v4, %v6170_v22  ;;  %v9716_v1 = vcombine.low %v6039_v23, %v6043_v57  ;;  %v6139_v50 = vld [vmem:[#allocation16 + $0x370] sm:$0xff] }
 0x793   :  { %v12185_v35 = vpack.c.bf16 %v6023_v26, %v6019_v16  ;;  %7724 = vmatpush2.bf16.msra.mxu0 %v9770_v59  ;;  %v9724_v59 = vcombine.low %v6047_v15, %v6051_v19  ;;  %v6162_v16 = vld [vmem:[#allocation16 + $0x428] sm:$0xff]  ;;  %v6031_v26 = vld [vmem:[#allocation16 + $0x10] sm:$0xff] }
 0x794   :  { %7779 = vmatprep.subr.bf16.mxu0 %v9765_v53  ;;  %v6158_v53 = vld [vmem:[#allocation16 + $0x408] sm:$0xff]  ;;  %v9709_v28 = vcombine.high %v6031_v26, %v6035_v33  ;;  %v9708_v9 = vcombine.low %v6031_v26, %v6035_v33  ;;  %v6131_v10 = vld [vmem:[#allocation16 + $0x330] sm:$0xff] }
 0x795   :  { %7682 = vmatprep.mubr.bf16.mxu1 %v12185_v35  ;;  %v9835_v62 = vcombine.high %v6158_v53, %v6162_v16  ;;  %v9834_v36 = vcombine.low %v6158_v53, %v6162_v16  ;;  %v6123_v4 = vld [vmem:[#allocation16 + $0x2f0] sm:$0xff] }
 0x796   :  { %7683 = vmatmul.mubr.bf16.vlgmr.msra.gmra.mxu1 %v12187_v37  ;;  %7726 = vmatmul.mubr.bf16.vlgmr.msra.gmra.mxu0 %v12173_v45  ;;  %v6115_v53 = vld [vmem:[#allocation16 + $0x2b0] sm:$0xff] }
 0x797   :  { %7737 = vmatpush1.bf16.msra.mxu1 %v9890_v34  ;;  %7768 = vmatprep.mubr.bf16.mxu1 %v12185_v35  ;;  %v9741_v34 = vcombine.high %v6063_v41, %v6067_v46 }
 0x798   :  { %7780 = vmatpush1.bf16.msra.mxu0 %v9764_v38  ;;  %7811 = vmatprep.mubr.bf16.mxu0 %v12171_v25  ;;  %v6278_v38 = vld [vmem:[#allocation16 + $0x7c8] sm:$0xff] }
 0x799   :  { %7738 = vmatprep.subr.bf16.mxu1 %v9883_v40  ;;  %7781 = vmatprep.subr.bf16.mxu0 %v9757_v31  ;;  %v6282_v40 = vld [vmem:[#allocation16 + $0x7e8] sm:$0xff]  ;;  %v6151_v31 = vld [vmem:[#allocation16 + $0x3d0] sm:$0xff] }
 0x79a   :  { %v9955_v42 = vcombine.high %v6278_v38, %v6282_v40  ;;  %v9954_v52 = vcombine.low %v6278_v38, %v6282_v40  ;;  %v9828_v41 = vcombine.low %v6151_v31, %v6155_v54  ;;  %v6107_v38 = vld [vmem:[#allocation16 + $0x270] sm:$0xff] }
 0x79b   :  { %7739 = vmatpush1.bf16.msra.mxu1 %v9882_v48  ;;  %v9829_v48 = vcombine.high %v6151_v31, %v6155_v54 }
 0x79c   :  { %7782 = vmatpush1.bf16.msra.mxu0 %v9756_v43  ;;  %7740 = vmatprep.subr.bf16.mxu1 %v9875_v39  ;;  %v6270_v43 = vld [vmem:[#allocation16 + $0x788] sm:$0xff] }
 0x79d   :  { %7783 = vmatprep.subr.bf16.mxu0 %v9749_v56  ;;  %v6274_v39 = vld [vmem:[#allocation16 + $0x7a8] sm:$0xff]  ;;  %v6143_v56 = vld [vmem:[#allocation16 + $0x390] sm:$0xff] }
 0x79e   :  { %v9947_v46 = vcombine.high %v6270_v43, %v6274_v39  ;;  %v9946_v47 = vcombine.low %v6270_v43, %v6274_v39  ;;  %v9820_v63 = vcombine.low %v6143_v56, %v6147_v7  ;;  %v6099_v43 = vld [vmem:[#allocation16 + $0x230] sm:$0xff] }
 0x79f   :  { %7741 = vmatpush1.bf16.msra.mxu1 %v9874_v49  ;;  %v9821_v49 = vcombine.high %v6143_v56, %v6147_v7 }
 0x7a0   :  { %7784 = vmatpush1.bf16.msra.mxu0 %v9748_v30  ;;  %7742 = vmatprep.subr.bf16.mxu1 %v9867_v44  ;;  %v6262_v30 = vld [vmem:[#allocation16 + $0x748] sm:$0xff] }
 0x7a1   :  { %7785 = vmatprep.subr.bf16.mxu0 %v9741_v34  ;;  %v6266_v44 = vld [vmem:[#allocation16 + $0x768] sm:$0xff]  ;;  %v6135_v34 = vld [vmem:[#allocation16 + $0x350] sm:$0xff] }
 0x7a2   :  { %v9939_v0 = vcombine.high %v6262_v30, %v6266_v44  ;;  %v9938_v12 = vcombine.low %v6262_v30, %v6266_v44  ;;  %v9812_v15 = vcombine.low %v6135_v34, %v6139_v50  ;;  %v6092_v30 = vld [vmem:[#allocation16 + $0x1f8] sm:$0xff] }
 0x7a3   :  { %7743 = vmatpush1.bf16.msra.mxu1 %v9866_v2  ;;  %v9813_v2 = vcombine.high %v6135_v34, %v6139_v50 }
 0x7a4   :  { %7786 = vmatpush1.bf16.msra.mxu0 %v9740_v3  ;;  %7744 = vmatprep.subr.bf16.mxu1 %v9859_v5  ;;  %v6254_v3 = vld [vmem:[#allocation16 + $0x708] sm:$0xff] }
 0x7a5   :  { %7787 = vmatprep.subr.bf16.mxu0 %v9733_v6  ;;  %v6258_v5 = vld [vmem:[#allocation16 + $0x728] sm:$0xff]  ;;  %v6127_v6 = vld [vmem:[#allocation16 + $0x310] sm:$0xff] }
 0x7a6   :  { %v9931_v19 = vcombine.high %v6254_v3, %v6258_v5  ;;  %v9930_v22 = vcombine.low %v6254_v3, %v6258_v5  ;;  %v9804_v23 = vcombine.low %v6127_v6, %v6131_v10  ;;  %v6080_v3 = vld [vmem:[#allocation16 + $0x198] sm:$0xff] }
 0x7a7   :  { %7745 = vmatpush1.bf16.msra.mxu1 %v9858_v27  ;;  %v9805_v27 = vcombine.high %v6127_v6, %v6131_v10  ;;  %v6084_v5 = vld [vmem:[#allocation16 + $0x1b8] sm:$0xff] }
 0x7a8   :  { %7788 = vmatpush1.bf16.msra.mxu0 %v9732_v29  ;;  %7746 = vmatprep.subr.bf16.mxu1 %v9851_v32  ;;  %v6246_v29 = vld [vmem:[#allocation16 + $0x6c8] sm:$0xff] }
 0x7a9   :  { %7789 = vmatprep.subr.bf16.mxu0 %v9725_v21  ;;  %v6250_v32 = vld [vmem:[#allocation16 + $0x6e8] sm:$0xff]  ;;  %v6119_v21 = vld [vmem:[#allocation16 + $0x2d0] sm:$0xff] }
 0x7aa   :  { %v9923_v57 = vcombine.high %v6246_v29, %v6250_v32  ;;  %v9922_v16 = vcombine.low %v6246_v29, %v6250_v32  ;;  %v9796_v26 = vcombine.low %v6119_v21, %v6123_v4  ;;  %v6076_v29 = vld [vmem:[#allocation16 + $0x178] sm:$0xff] }
 0x7ab   :  { %7747 = vmatpush1.bf16.msra.mxu1 %v9850_v24  ;;  %v9797_v24 = vcombine.high %v6119_v21, %v6123_v4  ;;  %v9758_v21 = vcombine.low %v6080_v3, %v6084_v5 }
 0x7ac   :  { %7790 = vmatpush1.bf16.msra.mxu0 %v9724_v59  ;;  %7748 = vmatprep.subr.bf16.mxu1 %v9843_v51  ;;  %v6238_v59 = vld [vmem:[#allocation16 + $0x688] sm:$0xff] }
 0x7ad   :  { %7791 = vmatprep.subr.bf16.mxu0 %v9717_v8  ;;  %v6242_v51 = vld [vmem:[#allocation16 + $0x6a8] sm:$0xff]  ;;  %v6111_v8 = vld [vmem:[#allocation16 + $0x290] sm:$0xff] }
 0x7ae   :  { %v9915_v33 = vcombine.high %v6238_v59, %v6242_v51  ;;  %v9914_v40 = vcombine.low %v6238_v59, %v6242_v51  ;;  %v9788_v31 = vcombine.low %v6111_v8, %v6115_v53  ;;  %v6068_v59 = vld [vmem:[#allocation16 + $0x138] sm:$0xff] }
 0x7af   :  { %7749 = vmatpush1.bf16.msra.mxu1 %v9842_v20  ;;  %v9789_v20 = vcombine.high %v6111_v8, %v6115_v53 }
 0x7b0   :  { %7792 = vmatpush1.bf16.msra.mxu0 %v9716_v1  ;;  %7750 = vmatprep.subr.bf16.mxu1 %v9835_v62  ;;  %v6230_v1 = vld [vmem:[#allocation16 + $0x648] sm:$0xff] }
 0x7b1   :  { %7793 = vmatprep.subr.bf16.mxu0 %v9709_v28  ;;  %v6234_v62 = vld [vmem:[#allocation16 + $0x668] sm:$0xff]  ;;  %v6103_v28 = vld [vmem:[#allocation16 + $0x250] sm:$0xff] }
 0x7b2   :  { %v9907_v54 = vcombine.high %v6230_v1, %v6234_v62  ;;  %v9906_v39 = vcombine.low %v6230_v1, %v6234_v62  ;;  %v9780_v56 = vcombine.low %v6103_v28, %v6107_v38  ;;  %v6060_v1 = vld [vmem:[#allocation16 + $0xf8] sm:$0xff] }
 0x7b3   :  { %7751 = vmatpush1.bf16.msra.mxu1 %v9834_v36  ;;  %v9781_v36 = vcombine.high %v6103_v28, %v6107_v38 }
 0x7b4   :  { %7794 = vmatpush1.bf16.msra.mxu0 %v9708_v9  ;;  %7752 = vmatprep.subr.bf16.mxu1 %v9955_v42  ;;  %v6222_v9 = vld [vmem:[#allocation16 + $0x608] sm:$0xff] }
 0x7b5   :  { %7795 = vmatprep.subr.bf16.mxu0 %v9829_v48  ;;  %v6226_v42 = vld [vmem:[#allocation16 + $0x628] sm:$0xff]  ;;  %v6095_v48 = vld [vmem:[#allocation16 + $0x210] sm:$0xff] }
 0x7b6   :  { %v9899_v7 = vcombine.high %v6222_v9, %v6226_v42  ;;  %v9898_v44 = vcombine.low %v6222_v9, %v6226_v42  ;;  %v9772_v34 = vcombine.low %v6095_v48, %v6099_v43 }
 0x7b7   :  { %7753 = vmatpush2.bf16.msra.mxu1 %v9954_v52  ;;  %v9773_v52 = vcombine.high %v6095_v48, %v6099_v43 }
 0x7b8   :  { %7796 = vmatpush2.bf16.msra.mxu0 %v9828_v41  ;;  %7754 = vmatprep.subr.bf16.mxu1 %v9947_v46  ;;  %v6215_v41 = vld [vmem:[#allocation16 + $0x5d0] sm:$0xff] }
 0x7b9   :  { %7797 = vmatprep.subr.bf16.mxu0 %v9821_v49  ;;  %v6219_v46 = vld [vmem:[#allocation16 + $0x5f0] sm:$0xff]  ;;  %v6088_v49 = vld [vmem:[#allocation16 + $0x1d8] sm:$0xff] }
 0x7ba   :  { %v9893_v50 = vcombine.high %v6215_v41, %v6219_v46  ;;  %v9766_v6 = vcombine.low %v6088_v49, %v6092_v30 }
 0x7bb   :  { %7755 = vmatpush2.bf16.msra.mxu1 %v9946_v47  ;;  %v9767_v47 = vcombine.high %v6088_v49, %v6092_v30 }
 0x7bc   :  { %7798 = vmatpush2.bf16.msra.mxu0 %v9820_v63  ;;  %7756 = vmatprep.subr.bf16.mxu1 %v9939_v0  ;;  %v6207_v63 = vld [vmem:[#allocation16 + $0x590] sm:$0xff] }
 0x7bd   :  { %7799 = vmatprep.subr.bf16.mxu0 %v9813_v2  ;;  %v6211_v0 = vld [vmem:[#allocation16 + $0x5b0] sm:$0xff]  ;;  %v9892_v2 = vcombine.low %v6215_v41, %v6219_v46 }
 0x7be   :  { %v9885_v10 = vcombine.high %v6207_v63, %v6211_v0  ;;  %v9884_v32 = vcombine.low %v6207_v63, %v6211_v0 }
 0x7bf   :  { %7757 = vmatpush2.bf16.msra.mxu1 %v9938_v12  ;;  %v6199_v12 = vld [vmem:[#allocation16 + $0x550] sm:$0xff] }
 0x7c0   :  { %7800 = vmatpush2.bf16.msra.mxu0 %v9812_v15  ;;  %7758 = vmatprep.subr.bf16.mxu1 %v9931_v19  ;;  %v6203_v15 = vld [vmem:[#allocation16 + $0x570] sm:$0xff]  ;;  %v9759_v19 = vcombine.high %v6080_v3, %v6084_v5 }
 0x7c1   :  { %7801 = vmatprep.subr.bf16.mxu0 %v9805_v27  ;;  %v6072_v27 = vld [vmem:[#allocation16 + $0x158] sm:$0xff]  ;;  %v9877_v4 = vcombine.high %v6199_v12, %v6203_v15  ;;  %v9876_v51 = vcombine.low %v6199_v12, %v6203_v15  ;;  %v6279_v5 = vld [vmem:[#allocation16 + $0x7d0] sm:$0xff] }
 0x7c2   :  { %v9750_v8 = vcombine.low %v6072_v27, %v6076_v29  ;;  %v6156_v12 = vld [vmem:[#allocation16 + $0x3f8] sm:$0xff] }
 0x7c3   :  { %7759 = vmatpush2.bf16.msra.mxu1 %v9930_v22  ;;  %v9751_v22 = vcombine.high %v6072_v27, %v6076_v29 }
 0x7c4   :  { %7802 = vmatpush2.bf16.msra.mxu0 %v9804_v23  ;;  %7760 = vmatprep.subr.bf16.mxu1 %v9923_v57  ;;  %v6191_v23 = vld [vmem:[#allocation16 + $0x510] sm:$0xff] }
 0x7c5   :  { %7803 = vmatprep.subr.bf16.mxu0 %v9797_v24  ;;  %v6195_v57 = vld [vmem:[#allocation16 + $0x530] sm:$0xff]  ;;  %v6064_v24 = vld [vmem:[#allocation16 + $0x118] sm:$0xff] }
 0x7c6   :  { %v9869_v53 = vcombine.high %v6191_v23, %v6195_v57  ;;  %v9742_v62 = vcombine.low %v6064_v24, %v6068_v59 }
 0x7c7   :  { %7761 = vmatpush2.bf16.msra.mxu1 %v9922_v16  ;;  %v9743_v16 = vcombine.high %v6064_v24, %v6068_v59 }
 0x7c8   :  { %7804 = vmatpush2.bf16.msra.mxu0 %v9796_v26  ;;  %7762 = vmatprep.subr.bf16.mxu1 %v9915_v33  ;;  %v6183_v26 = vld [vmem:[#allocation16 + $0x4d0] sm:$0xff] }
 0x7c9   :  { %7805 = vmatprep.subr.bf16.mxu0 %v9789_v20  ;;  %v6187_v33 = vld [vmem:[#allocation16 + $0x4f0] sm:$0xff]  ;;  %v6056_v20 = vld [vmem:[#allocation16 + $0xd8] sm:$0xff] }
 0x7ca   :  { %v9861_v28 = vcombine.high %v6183_v26, %v6187_v33  ;;  %v9735_v38 = vcombine.high %v6056_v20, %v6060_v1  ;;  %v9860_v9 = vcombine.low %v6183_v26, %v6187_v33  ;;  %v9734_v42 = vcombine.low %v6056_v20, %v6060_v1 }
 0x7cb   :  { %7763 = vmatpush2.bf16.msra.mxu1 %v9914_v40  ;;  %v6175_v40 = vld [vmem:[#allocation16 + $0x490] sm:$0xff] }
 0x7cc   :  { %7806 = vmatpush2.bf16.msra.mxu0 %v9788_v31  ;;  %7764 = vmatprep.subr.bf16.mxu1 %v9907_v54  ;;  %v6179_v31 = vld [vmem:[#allocation16 + $0x4b0] sm:$0xff]  ;;  %v6048_v54 = vld [vmem:[#allocation16 + $0x98] sm:$0xff] }
 0x7cd   :  { %7807 = vmatprep.subr.bf16.mxu0 %v9781_v36  ;;  %v6052_v36 = vld [vmem:[#allocation16 + $0xb8] sm:$0xff]  ;;  %v9853_v48 = vcombine.high %v6175_v40, %v6179_v31  ;;  %v9852_v41 = vcombine.low %v6175_v40, %v6179_v31 }
 0x7ce   :  { %v9727_v43 = vcombine.high %v6048_v54, %v6052_v36  ;;  %v9726_v46 = vcombine.low %v6048_v54, %v6052_v36 }
 0x7cf   :  { %7765 = vmatpush2.bf16.msra.mxu1 %v9906_v39  ;;  %v6167_v39 = vld [vmem:[#allocation16 + $0x450] sm:$0xff] }
 0x7d0   :  { %7808 = vmatpush2.bf16.msra.mxu0 %v9780_v56  ;;  %7766 = vmatprep.subr.bf16.mxu1 %v9899_v7  ;;  %v6171_v56 = vld [vmem:[#allocation16 + $0x470] sm:$0xff]  ;;  %v6040_v7 = vld [vmem:[#allocation16 + $0x58] sm:$0xff] }
 0x7d1   :  { %7809 = vmatprep.subr.bf16.mxu0 %v9773_v52  ;;  %v6044_v52 = vld [vmem:[#allocation16 + $0x78] sm:$0xff]  ;;  %v9845_v49 = vcombine.high %v6167_v39, %v6171_v56  ;;  %v9844_v63 = vcombine.low %v6167_v39, %v6171_v56 }
 0x7d2   :  { %v9719_v30 = vcombine.high %v6040_v7, %v6044_v52  ;;  %v9718_v0 = vcombine.low %v6040_v7, %v6044_v52 }
 0x7d3   :  { %7767 = vmatpush2.bf16.msra.mxu1 %v9898_v44  ;;  %v6159_v44 = vld [vmem:[#allocation16 + $0x410] sm:$0xff] }
 0x7d4   :  { %7810 = vmatpush2.bf16.msra.mxu0 %v9772_v34  ;;  %7822 = vmatprep.subr.bf16.mxu1 %v9893_v50  ;;  %v6163_v34 = vld [vmem:[#allocation16 + $0x430] sm:$0xff]  ;;  %v6032_v50 = vld [vmem:[#allocation16 + $0x18] sm:$0xff] }
 0x7d5   :  { %7865 = vmatprep.subr.bf16.mxu0 %v9767_v47  ;;  %v6036_v47 = vld [vmem:[#allocation16 + $0x38] sm:$0xff]  ;;  %v9836_v15 = vcombine.low %v6159_v44, %v6163_v34 }
 0x7d6   :  { %7769 = vmatmul.mubr.bf16.vlgmr.msra.gmra.mxu1 %v12187_v37  ;;  %v9711_v3 = vcombine.high %v6032_v50, %v6036_v47 }
 0x7d7   :  { %7812 = vmatmul.mubr.bf16.vlgmr.msra.gmra.mxu0 %v12173_v45  ;;  %7823 = vmatpush1.bf16.msra.mxu1 %v9892_v2  ;;  %v9837_v2 = vcombine.high %v6159_v44, %v6163_v34 }
 0x7d8   :  { %7854 = vmatprep.mubr.bf16.mxu1 %v12185_v35  ;;  %7866 = vmatpush1.bf16.msra.mxu0 %v9766_v6  ;;  %v6283_v6 = vld [vmem:[#allocation16 + $0x7f0] sm:$0xff] }
 0x7d9   :  { %7897 = vmatprep.mubr.bf16.mxu0 %v12171_v25  ;;  %7824 = vmatprep.subr.bf16.mxu1 %v9885_v10  ;;  %v9868_v25 = vcombine.low %v6191_v23, %v6195_v57  ;;  %v6152_v10 = vld [vmem:[#allocation16 + $0x3d8] sm:$0xff]  ;;  %v9957_v27 = vcombine.high %v6279_v5, %v6283_v6  ;;  %v9956_v23 = vcombine.low %v6279_v5, %v6283_v6 }
 0x7da   :  { %7867 = vmatprep.subr.bf16.mxu0 %v9759_v19  ;;  %v9710_v19 = vcombine.low %v6032_v50, %v6036_v47  ;;  %v9831_v29 = vcombine.high %v6152_v10, %v6156_v12  ;;  %v9830_v57 = vcombine.low %v6152_v10, %v6156_v12 }
 0x7db   :  { %7825 = vmatpush1.bf16.msra.mxu1 %v9884_v32  ;;  %v6271_v32 = vld [vmem:[#allocation16 + $0x790] sm:$0xff] }
 0x7dc   :  { %7868 = vmatpush1.bf16.msra.mxu0 %v9758_v21  ;;  %7826 = vmatprep.subr.bf16.mxu1 %v9877_v4  ;;  %v6275_v21 = vld [vmem:[#allocation16 + $0x7b0] sm:$0xff]  ;;  %v6144_v4 = vld [vmem:[#allocation16 + $0x398] sm:$0xff] }
 0x7dd   :  { %7869 = vmatprep.subr.bf16.mxu0 %v9751_v22  ;;  %v6148_v22 = vld [vmem:[#allocation16 + $0x3b8] sm:$0xff]  ;;  %v9949_v24 = vcombine.high %v6271_v32, %v6275_v21  ;;  %v9948_v26 = vcombine.low %v6271_v32, %v6275_v21 }
 0x7de   :  { %v9823_v59 = vcombine.high %v6144_v4, %v6148_v22  ;;  %v9822_v33 = vcombine.low %v6144_v4, %v6148_v22 }
 0x7df   :  { %7827 = vmatpush1.bf16.msra.mxu1 %v9876_v51  ;;  %v6263_v51 = vld [vmem:[#allocation16 + $0x750] sm:$0xff] }
 0x7e0   :  { %7870 = vmatpush1.bf16.msra.mxu0 %v9750_v8  ;;  %7828 = vmatprep.subr.bf16.mxu1 %v9869_v53  ;;  %v6267_v8 = vld [vmem:[#allocation16 + $0x770] sm:$0xff]  ;;  %v6136_v53 = vld [vmem:[#allocation16 + $0x358] sm:$0xff] }
 0x7e1   :  { %7871 = vmatprep.subr.bf16.mxu0 %v9743_v16  ;;  %v6140_v16 = vld [vmem:[#allocation16 + $0x378] sm:$0xff]  ;;  %v9941_v20 = vcombine.high %v6263_v51, %v6267_v8  ;;  %v9940_v40 = vcombine.low %v6263_v51, %v6267_v8 }
 0x7e2   :  { %v9815_v1 = vcombine.high %v6136_v53, %v6140_v16  ;;  %v9814_v31 = vcombine.low %v6136_v53, %v6140_v16  ;;  %v6208_v8 = vld [vmem:[#allocation16 + $0x598] sm:$0xff] }
 0x7e3   :  { %7829 = vmatpush1.bf16.msra.mxu1 %v9868_v25  ;;  %v6255_v25 = vld [vmem:[#allocation16 + $0x710] sm:$0xff]  ;;  %v6212_v53 = vld [vmem:[#allocation16 + $0x5b8] sm:$0xff] }
 0x7e4   :  { %7872 = vmatpush1.bf16.msra.mxu0 %v9742_v62  ;;  %7830 = vmatprep.subr.bf16.mxu1 %v9861_v28  ;;  %v6259_v62 = vld [vmem:[#allocation16 + $0x730] sm:$0xff]  ;;  %v6128_v28 = vld [vmem:[#allocation16 + $0x318] sm:$0xff] }
 0x7e5   :  { %7873 = vmatprep.subr.bf16.mxu0 %v9735_v38  ;;  %v6132_v38 = vld [vmem:[#allocation16 + $0x338] sm:$0xff]  ;;  %v9933_v54 = vcombine.high %v6255_v25, %v6259_v62  ;;  %v9932_v39 = vcombine.low %v6255_v25, %v6259_v62  ;;  %v11262_v62 = vld [vmem:[#allocation19 + $0x64] ss:$8 sps:$4 sm:$0xff]  }
 0x7e6   :  { %v9807_v36 = vcombine.high %v6128_v28, %v6132_v38  ;;  %v9806_v56 = vcombine.low %v6128_v28, %v6132_v38  ;;  %v11259_v16 = vld [vmem:[#allocation19 + $0x74] ss:$8 sps:$4 sm:$0xff]   ;;  %v11257_v25 = vld [vmem:[#allocation19 + $0x70] ss:$8 sps:$4 sm:$0xff]   ;;  %v9886_v28 = vcombine.low %v6208_v8, %v6212_v53 }
 0x7e7   :  { %7831 = vmatpush1.bf16.msra.mxu1 %v9860_v9  ;;  %v6247_v9 = vld [vmem:[#allocation16 + $0x6d0] sm:$0xff] }
 0x7e8   :  { %7874 = vmatpush1.bf16.msra.mxu0 %v9734_v42  ;;  %7832 = vmatprep.subr.bf16.mxu1 %v9853_v48  ;;  %v6251_v42 = vld [vmem:[#allocation16 + $0x6f0] sm:$0xff]  ;;  %v6120_v48 = vld [vmem:[#allocation16 + $0x2d8] sm:$0xff] }
 0x7e9   :  { %7875 = vmatprep.subr.bf16.mxu0 %v9727_v43  ;;  %v6124_v43 = vld [vmem:[#allocation16 + $0x2f8] sm:$0xff]  ;;  %v9925_v7 = vcombine.high %v6247_v9, %v6251_v42  ;;  %v9924_v44 = vcombine.low %v6247_v9, %v6251_v42 }
 0x7ea   :  { %v9799_v52 = vcombine.high %v6120_v48, %v6124_v43  ;;  %v9798_v34 = vcombine.low %v6120_v48, %v6124_v43  ;;  %v6184_v48 = vld [vmem:[#allocation16 + $0x4d8] sm:$0xff] }
 0x7eb   :  { %7833 = vmatpush1.bf16.msra.mxu1 %v9852_v41  ;;  %v6239_v41 = vld [vmem:[#allocation16 + $0x690] sm:$0xff]  ;;  %v6188_v43 = vld [vmem:[#allocation16 + $0x4f8] sm:$0xff] }
 0x7ec   :  { %7876 = vmatpush1.bf16.msra.mxu0 %v9726_v46  ;;  %7834 = vmatprep.subr.bf16.mxu1 %v9845_v49  ;;  %v6243_v46 = vld [vmem:[#allocation16 + $0x6b0] sm:$0xff]  ;;  %v6112_v49 = vld [vmem:[#allocation16 + $0x298] sm:$0xff] }
 0x7ed   :  { %7877 = vmatprep.subr.bf16.mxu0 %v9719_v30  ;;  %v6116_v30 = vld [vmem:[#allocation16 + $0x2b8] sm:$0xff]  ;;  %v9917_v50 = vcombine.high %v6239_v41, %v6243_v46  ;;  %v9916_v5 = vcombine.low %v6239_v41, %v6243_v46  ;;  %v11266_v41 = vld [vmem:[#allocation19 + $0x40] ss:$8 sps:$4 sm:$0xff]  }
 0x7ee   :  { %v9791_v47 = vcombine.high %v6112_v49, %v6116_v30  ;;  %v9790_v6 = vcombine.low %v6112_v49, %v6116_v30  ;;  %v11271_v46 = vld [vmem:[#allocation19 + $0x34] ss:$8 sps:$4 sm:$0xff]   ;;  %v9862_v49 = vcombine.low %v6184_v48, %v6188_v43 }
 0x7ef   :  { %7835 = vmatpush1.bf16.msra.mxu1 %v9844_v63  ;;  %v6231_v63 = vld [vmem:[#allocation16 + $0x650] sm:$0xff] }
 0x7f0   :  { %7878 = vmatpush1.bf16.msra.mxu0 %v9718_v0  ;;  %7836 = vmatprep.subr.bf16.mxu1 %v9837_v2  ;;  %v6235_v0 = vld [vmem:[#allocation16 + $0x670] sm:$0xff]  ;;  %v6104_v2 = vld [vmem:[#allocation16 + $0x258] sm:$0xff] }
 0x7f1   :  { %7879 = vmatprep.subr.bf16.mxu0 %v9711_v3  ;;  %v6108_v3 = vld [vmem:[#allocation16 + $0x278] sm:$0xff]  ;;  %v9909_v10 = vcombine.high %v6231_v63, %v6235_v0  ;;  %v9908_v32 = vcombine.low %v6231_v63, %v6235_v0 }
 0x7f2   :  { %v9783_v12 = vcombine.high %v6104_v2, %v6108_v3  ;;  %v9782_v21 = vcombine.low %v6104_v2, %v6108_v3  ;;  %v6160_v2 = vld [vmem:[#allocation16 + $0x418] sm:$0xff] }
 0x7f3   :  { %7837 = vmatpush1.bf16.msra.mxu1 %v9836_v15  ;;  %v6223_v15 = vld [vmem:[#allocation16 + $0x610] sm:$0xff]  ;;  %v6164_v3 = vld [vmem:[#allocation16 + $0x438] sm:$0xff] }
 0x7f4   :  { %7880 = vmatpush1.bf16.msra.mxu0 %v9710_v19  ;;  %7838 = vmatprep.subr.bf16.mxu1 %v9957_v27  ;;  %v6227_v19 = vld [vmem:[#allocation16 + $0x630] sm:$0xff]  ;;  %v6096_v27 = vld [vmem:[#allocation16 + $0x218] sm:$0xff] }
 0x7f5   :  { %7881 = vmatprep.subr.bf16.mxu0 %v9831_v29  ;;  %v6100_v29 = vld [vmem:[#allocation16 + $0x238] sm:$0xff]  ;;  %v9901_v4 = vcombine.high %v6223_v15, %v6227_v19 }
 0x7f6   :  { %v9775_v22 = vcombine.high %v6096_v27, %v6100_v29 }
 0x7f7   :  { %7839 = vmatpush2.bf16.msra.mxu1 %v9956_v23  ;;  %v6216_v23 = vld [vmem:[#allocation16 + $0x5d8] sm:$0xff] }
 0x7f8   :  { %7882 = vmatpush2.bf16.msra.mxu0 %v9830_v57  ;;  %7840 = vmatprep.subr.bf16.mxu1 %v9949_v24  ;;  %v6220_v57 = vld [vmem:[#allocation16 + $0x5f8] sm:$0xff]  ;;  %v9900_v24 = vcombine.low %v6223_v15, %v6227_v19 }
 0x7f9   :  { %7883 = vmatprep.subr.bf16.mxu0 %v9823_v59  ;;  %v9774_v59 = vcombine.low %v6096_v27, %v6100_v29  ;;  %v9895_v51 = vcombine.high %v6216_v23, %v6220_v57  ;;  %v6280_v15 = vld [vmem:[#allocation16 + $0x7d8] sm:$0xff]  ;;  %v11280_v29 = vld [vmem:[#allocation19 + $0x4] ss:$8 sps:$4 sm:$0xff]  }
 0x7fa   :  { %v6284_v19 = vld [vmem:[#allocation16 + $0x7f8] sm:$0xff] }
 0x7fb   :  { %7841 = vmatpush2.bf16.msra.mxu1 %v9948_v26  ;;  %v9894_v26 = vcombine.low %v6216_v23, %v6220_v57  ;;  %v11275_v27 = vld [vmem:[#allocation19 + $0x10] ss:$8 sps:$4 sm:$0xff]   ;;  %v11278_v23 = vld [vmem:[#allocation19] ss:$8 sps:$4 sm:$0xff]   ;;  %v11283_v57 = vld [vmem:[#allocation19 + $0xf4] ss:$8 sps:$4 sm:$0xff]  }
 0x7fc   :  { %7884 = vmatpush2.bf16.msra.mxu0 %v9822_v33  ;;  %7842 = vmatprep.subr.bf16.mxu1 %v9941_v20  ;;  %v9887_v33 = vcombine.high %v6208_v8, %v6212_v53  ;;  %v6200_v20 = vld [vmem:[#allocation16 + $0x558] sm:$0xff] }
 0x7fd   :  { %7885 = vmatprep.subr.bf16.mxu0 %v9815_v1  ;;  %v6204_v1 = vld [vmem:[#allocation16 + $0x578] sm:$0xff] }
 0x7fe   :  { %v9879_v38 = vcombine.high %v6200_v20, %v6204_v1  ;;  %v9878_v9 = vcombine.low %v6200_v20, %v6204_v1  ;;  %v6268_v8 = vld [vmem:[#allocation16 + $0x778] sm:$0xff] }
 0x7ff   :  { %7843 = vmatpush2.bf16.msra.mxu1 %v9940_v40  ;;  %v6192_v40 = vld [vmem:[#allocation16 + $0x518] sm:$0xff] }
 0x800   :  { %7886 = vmatpush2.bf16.msra.mxu0 %v9814_v31  ;;  %7844 = vmatprep.subr.bf16.mxu1 %v9933_v54  ;;  %v6196_v31 = vld [vmem:[#allocation16 + $0x538] sm:$0xff]  ;;  %v11260_v54 = vld [vmem:[#allocation19 + $0x60] ss:$8 sps:$4 sm:$0xff]  }
 0x801   :  { %7887 = vmatprep.subr.bf16.mxu0 %v9807_v36  ;;  %v11265_v36 = vld [vmem:[#allocation19 + $0x54] ss:$8 sps:$4 sm:$0xff]   ;;  %v9871_v42 = vcombine.high %v6192_v40, %v6196_v31  ;;  %v11281_v53 = vld [vmem:[#allocation19 + $0xf0] ss:$8 sps:$4 sm:$0xff]  }
 0x802   :  { %v6256_v20 = vld [vmem:[#allocation16 + $0x718] sm:$0xff] }
 0x803   :  { %7845 = vmatpush2.bf16.msra.mxu1 %v9932_v39  ;;  %v11268_v39 = vld [vmem:[#allocation19 + $0x44] ss:$8 sps:$4 sm:$0xff]   ;;  %v6260_v1 = vld [vmem:[#allocation16 + $0x738] sm:$0xff] }
 0x804   :  { %7888 = vmatpush2.bf16.msra.mxu0 %v9806_v56  ;;  %7846 = vmatprep.subr.bf16.mxu1 %v9925_v7  ;;  %v9863_v56 = vcombine.high %v6184_v48, %v6188_v43  ;;  %v6176_v7 = vld [vmem:[#allocation16 + $0x498] sm:$0xff] }
 0x805   :  { %7889 = vmatprep.subr.bf16.mxu0 %v9799_v52  ;;  %v6180_v52 = vld [vmem:[#allocation16 + $0x4b8] sm:$0xff] }
 0x806   :  { %v9855_v30 = vcombine.high %v6176_v7, %v6180_v52  ;;  %v9854_v63 = vcombine.low %v6176_v7, %v6180_v52  ;;  %v6240_v48 = vld [vmem:[#allocation16 + $0x698] sm:$0xff] }
 0x807   :  { %7847 = vmatpush2.bf16.msra.mxu1 %v9924_v44  ;;  %v6168_v44 = vld [vmem:[#allocation16 + $0x458] sm:$0xff] }
 0x808   :  { %7890 = vmatpush2.bf16.msra.mxu0 %v9798_v34  ;;  %7848 = vmatprep.subr.bf16.mxu1 %v9917_v50  ;;  %v6172_v34 = vld [vmem:[#allocation16 + $0x478] sm:$0xff] }
 0x809   :  { %7891 = vmatprep.subr.bf16.mxu0 %v9791_v47  ;;  %v11269_v50 = vld [vmem:[#allocation19 + $0x30] ss:$8 sps:$4 sm:$0xff]   ;;  %v11274_v47 = vld [vmem:[#allocation19 + $0x24] ss:$8 sps:$4 sm:$0xff]   ;;  %v9847_v0 = vcombine.high %v6168_v44, %v6172_v34 }
 0x80a   :  { %v6244_v43 = vld [vmem:[#allocation16 + $0x6b8] sm:$0xff] }
 0x80b   :  { %7849 = vmatpush2.bf16.msra.mxu1 %v9916_v5  ;;  %v11272_v5 = vld [vmem:[#allocation19 + $0x20] ss:$8 sps:$4 sm:$0xff]   ;;  %v6232_v7 = vld [vmem:[#allocation16 + $0x658] sm:$0xff] }
 0x80c   :  { %7892 = vmatpush2.bf16.msra.mxu0 %v9790_v6  ;;  %7850 = vmatprep.subr.bf16.mxu1 %v9909_v10  ;;  %v11277_v6 = vld [vmem:[#allocation19 + $0x14] ss:$8 sps:$4 sm:$0xff]   ;;  %v9846_v10 = vcombine.low %v6168_v44, %v6172_v34 }
 0x80d   :  { %7893 = vmatprep.subr.bf16.mxu0 %v9783_v12  ;;  %v9839_v12 = vcombine.high %v6160_v2, %v6164_v3  ;;  %v6236_v52 = vld [vmem:[#allocation16 + $0x678] sm:$0xff] }
 0x80e   :  { %v6224_v44 = vld [vmem:[#allocation16 + $0x618] sm:$0xff] }
 0x80f   :  { %7851 = vmatpush2.bf16.msra.mxu1 %v9908_v32  ;;  %v9838_v32 = vcombine.low %v6160_v2, %v6164_v3  ;;  %v6228_v34 = vld [vmem:[#allocation16 + $0x638] sm:$0xff] }
 0x810   :  { %7894 = vmatpush2.bf16.msra.mxu0 %v9782_v21  ;;  %7852 = vmatprep.subr.bf16.mxu1 %v9901_v4  ;;  %v9959_v21 = vcombine.high %v6280_v15, %v6284_v19  ;;  %v6272_v4 = vld [vmem:[#allocation16 + $0x798] sm:$0xff]  ;;  %v9903_v2 = vcombine.high %v6224_v44, %v6228_v34 }
 0x811   :  { %7895 = vmatprep.subr.bf16.mxu0 %v9775_v22  ;;  %v6276_v22 = vld [vmem:[#allocation16 + $0x7b8] sm:$0xff] }
 0x812   :  { %v11299_v3 = vld [vmem:[#allocation19 + $0x90] ss:$8 sps:$4 sm:$0xff]  }
 0x813   :  { %7853 = vmatpush2.bf16.msra.mxu1 %v9900_v24  ;;  %v9958_v24 = vcombine.low %v6280_v15, %v6284_v19  ;;  %v11302_v15 = vld [vmem:[#allocation19 + $0x80] ss:$8 sps:$4 sm:$0xff]   ;;  %v11355_v19 = vld [vmem:[#allocation19 + $0x274] ss:$8 sps:$4 sm:$0xff]  }
 0x814   :  { %7896 = vmatpush2.bf16.msra.mxu0 %v9774_v59  ;;  %7908 = vmatprep.subr.bf16.mxu1 %v9895_v51  ;;  %v9951_v59 = vcombine.high %v6272_v4, %v6276_v22  ;;  %v6264_v51 = vld [vmem:[#allocation16 + $0x758] sm:$0xff] }
 0x815   :  { %8755 = vmatprep.subr.bf16.mxu0 %v11259_v16  ;;  %v11286_v16 = vld [vmem:[#allocation19 + $0xe4] ss:$8 sps:$4 sm:$0xff]  }
 0x816   :  { %7855 = vmatmul.mubr.bf16.vlgmr.msra.gmra.mxu1 %v12187_v37 }
 0x817   :  { %7898 = vmatmul.mubr.bf16.vlgmr.msra.gmra.mxu0 %v12173_v45  ;;  %7909 = vmatpush1.bf16.msra.mxu1 %v9894_v26  ;;  %v11263_v45 = vld [vmem:[#allocation19 + $0x50] ss:$8 sps:$4 sm:$0xff]   ;;  %v9950_v26 = vcombine.low %v6272_v4, %v6276_v22 }
 0x818   :  { %7940 = vmatprep.mubr.bf16.mxu1 %v12185_v35  ;;  %7910 = vmatprep.subr.bf16.mxu1 %v9887_v33  ;;  %v9870_v35 = vcombine.low %v6192_v40, %v6196_v31  ;;  %v9943_v33 = vcombine.high %v6264_v51, %v6268_v8  ;;  %v6248_v40 = vld [vmem:[#allocation16 + $0x6d8] sm:$0xff] }
 0x819   :  { %8756 = vmatpush1.bf16.msra.mxu0 %v11257_v25  ;;  %v11284_v25 = vld [vmem:[#allocation19 + $0xe0] ss:$8 sps:$4 sm:$0xff]   ;;  %v6252_v31 = vld [vmem:[#allocation16 + $0x6f8] sm:$0xff] }
 0x81a   :  { %8757 = vmatprep.subr.bf16.mxu0 %v11262_v62  ;;  %v11289_v62 = vld [vmem:[#allocation19 + $0xd4] ss:$8 sps:$4 sm:$0xff]  }
 0x81b   :  { %7911 = vmatpush1.bf16.msra.mxu1 %v9886_v28  ;;  %v9942_v28 = vcombine.low %v6264_v51, %v6268_v8  ;;  %v11313_v51 = vld [vmem:[#allocation19 + $0x154] ss:$8 sps:$4 sm:$0xff]  }
 0x81c   :  { %7912 = vmatprep.subr.bf16.mxu1 %v9879_v38  ;;  %v9935_v38 = vcombine.high %v6256_v20, %v6260_v1 }
 0x81d   :  { %8758 = vmatpush1.bf16.msra.mxu0 %v11260_v54  ;;  %v11287_v54 = vld [vmem:[#allocation19 + $0xd0] ss:$8 sps:$4 sm:$0xff]  }
 0x81e   :  { %8759 = vmatprep.subr.bf16.mxu0 %v11265_v36  ;;  %v11292_v36 = vld [vmem:[#allocation19 + $0xc4] ss:$8 sps:$4 sm:$0xff]  }
 0x81f   :  { %7913 = vmatpush1.bf16.msra.mxu1 %v9878_v9  ;;  %v9934_v9 = vcombine.low %v6256_v20, %v6260_v1 }
 0x820   :  { %7914 = vmatprep.subr.bf16.mxu1 %v9871_v42  ;;  %v9927_v42 = vcombine.high %v6248_v40, %v6252_v31 }
 0x821   :  { %8760 = vmatpush1.bf16.msra.mxu0 %v11263_v45  ;;  %v11290_v45 = vld [vmem:[#allocation19 + $0xc0] ss:$8 sps:$4 sm:$0xff]  }
 0x822   :  { %8761 = vmatprep.subr.bf16.mxu0 %v11268_v39  ;;  %v11295_v39 = vld [vmem:[#allocation19 + $0xb4] ss:$8 sps:$4 sm:$0xff]  }
 0x823   :  { %7915 = vmatpush1.bf16.msra.mxu1 %v9870_v35  ;;  %v9926_v35 = vcombine.low %v6248_v40, %v6252_v31 }
 0x824   :  { %7916 = vmatprep.subr.bf16.mxu1 %v9863_v56  ;;  %v9919_v56 = vcombine.high %v6240_v48, %v6244_v43 }
 0x825   :  { %8762 = vmatpush1.bf16.msra.mxu0 %v11266_v41  ;;  %v11293_v41 = vld [vmem:[#allocation19 + $0xb0] ss:$8 sps:$4 sm:$0xff]  }
 0x826   :  { %8763 = vmatprep.subr.bf16.mxu0 %v11271_v46  ;;  %v11298_v46 = vld [vmem:[#allocation19 + $0xa4] ss:$8 sps:$4 sm:$0xff]  }
 0x827   :  { %7917 = vmatpush1.bf16.msra.mxu1 %v9862_v49  ;;  %v9918_v49 = vcombine.low %v6240_v48, %v6244_v43  ;;  %v11353_v43 = vld [vmem:[#allocation19 + $0x270] ss:$8 sps:$4 sm:$0xff]  }
 0x828   :  { %7918 = vmatprep.subr.bf16.mxu1 %v9855_v30  ;;  %v9911_v30 = vcombine.high %v6232_v7, %v6236_v52 }
 0x829   :  { %8764 = vmatpush1.bf16.msra.mxu0 %v11269_v50  ;;  %v11296_v50 = vld [vmem:[#allocation19 + $0xa0] ss:$8 sps:$4 sm:$0xff]  }
 0x82a   :  { %8765 = vmatprep.subr.bf16.mxu0 %v11274_v47  ;;  %v11301_v47 = vld [vmem:[#allocation19 + $0x94] ss:$8 sps:$4 sm:$0xff]  }
 0x82b   :  { %7919 = vmatpush1.bf16.msra.mxu1 %v9854_v63  ;;  %v9910_v63 = vcombine.low %v6232_v7, %v6236_v52  ;;  %v11356_v7 = vld [vmem:[#allocation19 + $0x260] ss:$8 sps:$4 sm:$0xff]   ;;  %v11361_v52 = vld [vmem:[#allocation19 + $0x254] ss:$8 sps:$4 sm:$0xff]  }
 0x82c   :  { %7920 = vmatprep.subr.bf16.mxu1 %v9847_v0  ;;  %v7641_v0 = vpop.f32.mrf.mxu0 }
 0x82d   :  { %8766 = vmatpush1.bf16.msra.mxu0 %v11272_v5  ;;  %v11304_v5 = vld [vmem:[#allocation19 + $0x84] ss:$8 sps:$4 sm:$0xff]  }
 0x82e   :  { %8767 = vmatprep.subr.bf16.mxu0 %v11277_v6  ;;  %v9902_v6 = vcombine.low %v6224_v44, %v6228_v34  ;;  %v11323_v44 = vld [vmem:[#allocation19 + $0x110] ss:$8 sps:$4 sm:$0xff]   ;;  %v11328_v34 = vld [vmem:[#allocation19 + $0x104] ss:$8 sps:$4 sm:$0xff]  }
 0x82f   :  { %7921 = vmatpush1.bf16.msra.mxu1 %v9846_v10  ;;  %v7643_v10 = vpop.f32.mrf.mxu0 }
 0x830   :  { %7922 = vmatprep.subr.bf16.mxu1 %v9839_v12  ;;  %v11307_v12 = vld [vmem:[#allocation19 + $0x174] ss:$8 sps:$4 sm:$0xff]  }
 0x831   :  { %8768 = vmatpush1.bf16.msra.mxu0 %v11275_v27  ;;  %v12204_v27 = vld [vmem:[#allocation17] sm:$0xff] }
 0x832   :  { %8769 = vmatprep.subr.bf16.mxu0 %v11280_v29  ;;  %v11305_v29 = vld [vmem:[#allocation19 + $0x170] ss:$8 sps:$4 sm:$0xff]   ;;  %v6294_v4 = vrot.slane %v12204_v27, %v11894_v18  ;;  %v6290_v22 = vrot.slane %v12204_v27, %v11891_v17 }
 0x833   :  { %7923 = vmatpush1.bf16.msra.mxu1 %v9838_v32  ;;  %v7645_v32 = vpop.f32.mrf.mxu0 }
 0x834   :  { %7924 = vmatprep.subr.bf16.mxu1 %v9959_v21  ;;  %v11310_v21 = vld [vmem:[#allocation19 + $0x164] ss:$8 sps:$4 sm:$0xff]   ;;  %v7644_v8 = vadd.f32 %v7643_v10, %v6294_v4  ;;  %v11368_v10 = vld [vmem:[#allocation19 + $0x220] ss:$8 sps:$4 sm:$0xff]  }
 0x835   :  { %8770 = vmatpush1.bf16.msra.mxu0 %v11278_v23 }
 0x836   :  { %8771 = vmatprep.subr.bf16.mxu0 %v11283_v57  ;;  %v11308_v57 = vld [vmem:[#allocation19 + $0x160] ss:$8 sps:$4 sm:$0xff]  }
 0x837   :  { %7925 = vmatpush2.bf16.msra.mxu1 %v9958_v24  ;;  %v7647_v24 = vpop.f32.mrf.mxu0 }
 0x838   :  { %7926 = vmatprep.subr.bf16.mxu1 %v9951_v59 }
 0x839   :  { %8772 = vmatpush2.bf16.msra.mxu0 %v11281_v53  ;;  %v7646_v53 = vadd.f32 %v7645_v32, %v6290_v22  ;;  %v11376_v32 = vld [vmem:[#allocation19 + $0x204] ss:$8 sps:$4 sm:$0xff]  }
 0x83a   :  { %8773 = vmatprep.subr.bf16.mxu0 %v11286_v16  ;;  %v7642_v16 = vadd.f32 %v7641_v0, %v6290_v22  ;;  %v11331_v0 = vld [vmem:[#allocation19 + $0x1f4] ss:$8 sps:$4 sm:$0xff]   ;;  %v11374_v22 = vld [vmem:[#allocation19 + $0x200] ss:$8 sps:$4 sm:$0xff]  }
 0x83b   :  { %7927 = vmatpush2.bf16.msra.mxu1 %v9950_v26 }
 0x83c   :  { %7928 = vmatprep.subr.bf16.mxu1 %v9943_v33  ;;  %v7648_v33 = vadd.f32 %v7647_v24, %v6294_v4  ;;  %v11340_v4 = vld [vmem:[#allocation19 + $0x1c4] ss:$8 sps:$4 sm:$0xff]   ;;  %v11343_v24 = vld [vmem:[#allocation19 + $0x1b4] ss:$8 sps:$4 sm:$0xff]  }
 0x83d   :  { %8774 = vmatpush2.bf16.msra.mxu0 %v11284_v25  ;;  %v11311_v25 = vld [vmem:[#allocation19 + $0x150] ss:$8 sps:$4 sm:$0xff]  }
 0x83e   :  { %8775 = vmatprep.subr.bf16.mxu0 %v11289_v62 }
 0x83f   :  { %7929 = vmatpush2.bf16.msra.mxu1 %v9942_v28 }
 0x840   :  { %7930 = vmatprep.subr.bf16.mxu1 %v9935_v38 }
 0x841   :  { %8776 = vmatpush2.bf16.msra.mxu0 %v11287_v54 }
 0x842   :  { %8777 = vmatprep.subr.bf16.mxu0 %v11292_v36  ;;  %v11314_v36 = vld [vmem:[#allocation19 + $0x140] ss:$8 sps:$4 sm:$0xff]  }
 0x843   :  { %7931 = vmatpush2.bf16.msra.mxu1 %v9934_v9 }
 0x844   :  { %7932 = vmatprep.subr.bf16.mxu1 %v9927_v42  ;;  %v11319_v42 = vld [vmem:[#allocation19 + $0x134] ss:$8 sps:$4 sm:$0xff]  }
 0x845   :  { %8778 = vmatpush2.bf16.msra.mxu0 %v11290_v45 }
 0x846   :  { %8779 = vmatprep.subr.bf16.mxu0 %v11295_v39  ;;  %v11358_v39 = vld [vmem:[#allocation19 + $0x264] ss:$8 sps:$4 sm:$0xff]  }
 0x847   :  { %7933 = vmatpush2.bf16.msra.mxu1 %v9926_v35  ;;  %v11317_v35 = vld [vmem:[#allocation19 + $0x130] ss:$8 sps:$4 sm:$0xff]  }
 0x848   :  { %7934 = vmatprep.subr.bf16.mxu1 %v9919_v56  ;;  %v11322_v56 = vld [vmem:[#allocation19 + $0x124] ss:$8 sps:$4 sm:$0xff]  }
 0x849   :  { %8780 = vmatpush2.bf16.msra.mxu0 %v11293_v41  ;;  %v11320_v41 = vld [vmem:[#allocation19 + $0x120] ss:$8 sps:$4 sm:$0xff]  }
 0x84a   :  { %8781 = vmatprep.subr.bf16.mxu0 %v11298_v46  ;;  %v11325_v46 = vld [vmem:[#allocation19 + $0x114] ss:$8 sps:$4 sm:$0xff]  }
 0x84b   :  { %7935 = vmatpush2.bf16.msra.mxu1 %v9918_v49  ;;  %v11359_v49 = vld [vmem:[#allocation19 + $0x250] ss:$8 sps:$4 sm:$0xff]  }
 0x84c   :  { %7936 = vmatprep.subr.bf16.mxu1 %v9911_v30  ;;  %v11364_v30 = vld [vmem:[#allocation19 + $0x244] ss:$8 sps:$4 sm:$0xff]  }
 0x84d   :  { %8782 = vmatpush2.bf16.msra.mxu0 %v11296_v50  ;;  %v11362_v50 = vld [vmem:[#allocation19 + $0x240] ss:$8 sps:$4 sm:$0xff]  }
 0x84e   :  { %8783 = vmatprep.subr.bf16.mxu0 %v11301_v47  ;;  %v11367_v47 = vld [vmem:[#allocation19 + $0x234] ss:$8 sps:$4 sm:$0xff]  }
 0x84f   :  { %7937 = vmatpush2.bf16.msra.mxu1 %v9910_v63  ;;  %v11326_v63 = vld [vmem:[#allocation19 + $0x100] ss:$8 sps:$4 sm:$0xff]  }
 0x850   :  { %7938 = vmatprep.subr.bf16.mxu1 %v9903_v2  ;;  %v11365_v2 = vld [vmem:[#allocation19 + $0x230] ss:$8 sps:$4 sm:$0xff]  }
 0x851   :  { %8784 = vmatpush2.bf16.msra.mxu0 %v11299_v3  ;;  %v11370_v3 = vld [vmem:[#allocation19 + $0x224] ss:$8 sps:$4 sm:$0xff]  }
 0x852   :  { %8785 = vmatprep.subr.bf16.mxu0 %v11304_v5  ;;  %v11329_v5 = vld [vmem:[#allocation19 + $0x1f0] ss:$8 sps:$4 sm:$0xff]  }
 0x853   :  { %7939 = vmatpush2.bf16.msra.mxu1 %v9902_v6  ;;  %v11334_v6 = vld [vmem:[#allocation19 + $0x1e4] ss:$8 sps:$4 sm:$0xff]  }
 0x854   :  { %8798 = vmatprep.subr.bf16.mxu1 %v11307_v12  ;;  %v11373_v12 = vld [vmem:[#allocation19 + $0x214] ss:$8 sps:$4 sm:$0xff]  }
 0x855   :  { %8786 = vmatpush2.bf16.msra.mxu0 %v11302_v15  ;;  %v11332_v15 = vld [vmem:[#allocation19 + $0x1e0] ss:$8 sps:$4 sm:$0xff]  }
 0x856   :  { %7941 = vmatmul.mubr.bf16.vlgmr.msra.gmra.mxu1 %v12187_v37  ;;  %v7684_v23 = vpop.f32.mrf.mxu1  ;;  %8841 = vmatprep.subr.bf16.mxu0 %v11355_v19  ;;  %v11316_v37 = vld [vmem:[#allocation19 + $0x144] ss:$8 sps:$4 sm:$0xff]   ;;  %v11337_v19 = vld [vmem:[#allocation19 + $0x1d4] ss:$8 sps:$4 sm:$0xff]  }
 0x857   :  { %8799 = vmatpush1.bf16.msra.mxu1 %v11305_v29  ;;  %v7685_v62 = vadd.f32 %v7684_v23, %v7642_v16  ;;  %v11371_v29 = vld [vmem:[#allocation19 + $0x210] ss:$8 sps:$4 sm:$0xff]   ;;  %v11379_v23 = vld [vmem:[#allocation19 + $0x2f4] ss:$8 sps:$4 sm:$0xff]   ;;  %v11380_v16 = vld [vmem:[#allocation19 + $0x2e0] ss:$8 sps:$4 sm:$0xff]  }
 0x858   :  { %v7686_v59 = vpop.f32.mrf.mxu1  ;;  %8800 = vmatprep.subr.bf16.mxu1 %v11310_v21  ;;  %v11335_v21 = vld [vmem:[#allocation19 + $0x1d0] ss:$8 sps:$4 sm:$0xff]  }
 0x859   :  { %v7687_v20 = vadd.f32 %v7686_v59, %v7644_v8  ;;  %v7951_v9 = vmax.f32 %v7685_v62, 0.0  ;;  %v11377_v59 = vld [vmem:[#allocation19 + $0x2f0] ss:$8 sps:$4 sm:$0xff]  }
 0x85a   :  { %v7688_v26 = vpop.f32.mrf.mxu1  ;;  %v11341_v8 = vld [vmem:[#allocation19 + $0x1b0] ss:$8 sps:$4 sm:$0xff]  }
 0x85b   :  { %v7689_v1 = vadd.f32 %v7688_v26, %v7646_v53  ;;  %8801 = vmatpush1.bf16.msra.mxu1 %v11308_v57  ;;  %v7952_v31 = vmax.f32 %v7687_v20, 0.0  ;;  %v11338_v57 = vld [vmem:[#allocation19 + $0x1c0] ss:$8 sps:$4 sm:$0xff]   ;;  %v11346_v53 = vld [vmem:[#allocation19 + $0x1a4] ss:$8 sps:$4 sm:$0xff]  }
 0x85c   :  { %v7690_v28 = vpop.f32.mrf.mxu1  ;;  %8802 = vmatprep.subr.bf16.mxu1 %v11313_v51  ;;  %v11382_v51 = vld [vmem:[#allocation19 + $0x2e4] ss:$8 sps:$4 sm:$0xff]   ;;  %v11385_v26 = vld [vmem:[#allocation19 + $0x2d4] ss:$8 sps:$4 sm:$0xff]   ;;  %v11347_v62 = vld [vmem:[#allocation19 + $0x190] ss:$8 sps:$4 sm:$0xff]  }
 0x85d   :  { %v7691_v38 = vadd.f32 %v7690_v28, %v7648_v33  ;;  %v7959_v40 = vmax.f32 %v7689_v1, 0.0  ;;  %v11344_v33 = vld [vmem:[#allocation19 + $0x1a0] ss:$8 sps:$4 sm:$0xff]   ;;  %v11349_v20 = vld [vmem:[#allocation19 + $0x194] ss:$8 sps:$4 sm:$0xff]   ;;  %v7727_v28 = vpop.f32.mrf.mxu0 }
 0x85e   :  { %v11383_v1 = vld [vmem:[#allocation19 + $0x2d0] ss:$8 sps:$4 sm:$0xff]  }
 0x85f   :  { %v7960_v54 = vmax.f32 %v7691_v38, 0.0  ;;  %8803 = vmatpush1.bf16.msra.mxu1 %v11311_v25  ;;  %v7967_v45 = vpack.c.bf16 %v7959_v40, %v7951_v9  ;;  %v11388_v25 = vld [vmem:[#allocation19 + $0x2c4] ss:$8 sps:$4 sm:$0xff]   ;;  %v11386_v38 = vld [vmem:[#allocation19 + $0x2c0] ss:$8 sps:$4 sm:$0xff]  }
 0x860   :  { %8804 = vmatprep.subr.bf16.mxu1 %v11316_v37  ;;  %v11352_v37 = vld [vmem:[#allocation19 + $0x184] ss:$8 sps:$4 sm:$0xff]   ;;  %v11391_v40 = vld [vmem:[#allocation19 + $0x2b4] ss:$8 sps:$4 sm:$0xff]   ;;  %v11389_v9 = vld [vmem:[#allocation19 + $0x2b0] ss:$8 sps:$4 sm:$0xff]  }
 0x861   :  { %v7968_v48 = vpack.c.bf16 %v7960_v54, %v7952_v31  ;;  %v11350_v31 = vld [vmem:[#allocation19 + $0x180] ss:$8 sps:$4 sm:$0xff]   ;;  %v7729_v54 = vpop.f32.mrf.mxu0 }
 0x863   :  { %8787 = vmatprep.mubr.bf16.mxu0 %v7968_v48  ;;  %8805 = vmatpush1.bf16.msra.mxu1 %v11314_v36  ;;  %v11403_v36 = vld [vmem:[#allocation19 + $0x374] ss:$8 sps:$4 sm:$0xff]   ;;  %v7731_v48 = vpop.f32.mrf.mxu0 }
 0x864   :  { %8788 = vmatmul.mubr.bf16.vlgmr.msra.gmra.mxu0 %v7967_v45  ;;  %8806 = vmatprep.subr.bf16.mxu1 %v11319_v42  ;;  %v11394_v42 = vld [vmem:[#allocation19 + $0x2a4] ss:$8 sps:$4 sm:$0xff]   ;;  %v11392_v45 = vld [vmem:[#allocation19 + $0x2a0] ss:$8 sps:$4 sm:$0xff]  }
 0x865   :  { %8842 = vmatpush1.bf16.msra.mxu0 %v11353_v43  ;;  %v6302_v43 = vrot.slane %v12204_v27, %v11908_v11 }
 0x866   :  { %8843 = vmatprep.subr.bf16.mxu0 %v11358_v39  ;;  %v6298_v39 = vrot.slane %v12204_v27, %v11911_v13  ;;  %v11398_v13 = vld [vmem:[#allocation19 + $0x280] ss:$8 sps:$4 sm:$0xff]  }
 0x867   :  { %8807 = vmatpush1.bf16.msra.mxu1 %v11317_v35 }
 0x868   :  { %8808 = vmatprep.subr.bf16.mxu1 %v11322_v56  ;;  %v11397_v56 = vld [vmem:[#allocation19 + $0x294] ss:$8 sps:$4 sm:$0xff]  }
 0x869   :  { %8844 = vmatpush1.bf16.msra.mxu0 %v11356_v7  ;;  %v7733_v7 = vpop.f32.mrf.mxu0 }
 0x86a   :  { %8845 = vmatprep.subr.bf16.mxu0 %v11361_v52 }
 0x86b   :  { %8809 = vmatpush1.bf16.msra.mxu1 %v11320_v41  ;;  %v7730_v41 = vadd.f32 %v7729_v54, %v6302_v43 }
 0x86c   :  { %8810 = vmatprep.subr.bf16.mxu1 %v11325_v46  ;;  %v7732_v46 = vadd.f32 %v7731_v48, %v6298_v39  ;;  %v6310_v48 = vrot.slane %v12204_v27, %v2087_v60 }
 0x86d   :  { %8846 = vmatpush1.bf16.msra.mxu0 %v11359_v49  ;;  %v11395_v49 = vld [vmem:[#allocation19 + $0x290] ss:$8 sps:$4 sm:$0xff]  }
 0x86e   :  { %8847 = vmatprep.subr.bf16.mxu0 %v11364_v30  ;;  %v7728_v30 = vadd.f32 %v7727_v28, %v6298_v39  ;;  %v11431_v28 = vld [vmem:[#allocation19 + $0x3d0] ss:$8 sps:$4 sm:$0xff]  }
 0x86f   :  { %8811 = vmatpush1.bf16.msra.mxu1 %v11323_v44 }
 0x870   :  { %8812 = vmatprep.subr.bf16.mxu1 %v11328_v34  ;;  %v11400_v34 = vld [vmem:[#allocation19 + $0x284] ss:$8 sps:$4 sm:$0xff]  }
 0x871   :  { %8848 = vmatpush1.bf16.msra.mxu0 %v11362_v50  ;;  %v7734_v50 = vadd.f32 %v7733_v7, %v6302_v43  ;;  %v11440_v43 = vld [vmem:[#allocation19 + $0x3a0] ss:$8 sps:$4 sm:$0xff]  }
 0x872   :  { %8849 = vmatprep.subr.bf16.mxu0 %v11367_v47 }
 0x873   :  { %8813 = vmatpush1.bf16.msra.mxu1 %v11326_v63 }
 0x874   :  { %8814 = vmatprep.subr.bf16.mxu1 %v11331_v0 }
 0x875   :  { %8850 = vmatpush1.bf16.msra.mxu0 %v11365_v2 }
 0x876   :  { %8851 = vmatprep.subr.bf16.mxu0 %v11370_v3 }
 0x877   :  { %8815 = vmatpush2.bf16.msra.mxu1 %v11329_v5 }
 0x878   :  { %8816 = vmatprep.subr.bf16.mxu1 %v11334_v6 }
 0x879   :  { %8852 = vmatpush1.bf16.msra.mxu0 %v11368_v10 }
 0x87a   :  { %8853 = vmatprep.subr.bf16.mxu0 %v11373_v12 }
 0x87b   :  { %8817 = vmatpush2.bf16.msra.mxu1 %v11332_v15  ;;  %v11401_v15 = vld [vmem:[#allocation19 + $0x370] ss:$8 sps:$4 sm:$0xff]  }
 0x87c   :  { %8818 = vmatprep.subr.bf16.mxu1 %v11337_v19 }
 0x87d   :  { %8854 = vmatpush1.bf16.msra.mxu0 %v11371_v29  ;;  %v11406_v29 = vld [vmem:[#allocation19 + $0x364] ss:$8 sps:$4 sm:$0xff]  }
 0x87e   :  { %8855 = vmatprep.subr.bf16.mxu0 %v11376_v32  ;;  %v11404_v32 = vld [vmem:[#allocation19 + $0x360] ss:$8 sps:$4 sm:$0xff]  }
 0x87f   :  { %8819 = vmatpush2.bf16.msra.mxu1 %v11335_v21  ;;  %v11409_v21 = vld [vmem:[#allocation19 + $0x354] ss:$8 sps:$4 sm:$0xff]  }
 0x880   :  { %8820 = vmatprep.subr.bf16.mxu1 %v11340_v4  ;;  %v11407_v4 = vld [vmem:[#allocation19 + $0x350] ss:$8 sps:$4 sm:$0xff]  }
 0x881   :  { %8856 = vmatpush1.bf16.msra.mxu0 %v11374_v22  ;;  %v11412_v22 = vld [vmem:[#allocation19 + $0x344] ss:$8 sps:$4 sm:$0xff]  }
 0x882   :  { %8857 = vmatprep.subr.bf16.mxu0 %v11379_v23  ;;  %v11410_v23 = vld [vmem:[#allocation19 + $0x340] ss:$8 sps:$4 sm:$0xff]  }
 0x883   :  { %8821 = vmatpush2.bf16.msra.mxu1 %v11338_v57  ;;  %v11415_v57 = vld [vmem:[#allocation19 + $0x334] ss:$8 sps:$4 sm:$0xff]  }
 0x884   :  { %8822 = vmatprep.subr.bf16.mxu1 %v11343_v24  ;;  %v11413_v24 = vld [vmem:[#allocation19 + $0x330] ss:$8 sps:$4 sm:$0xff]  }
 0x885   :  { %8858 = vmatpush2.bf16.msra.mxu0 %v11377_v59  ;;  %v11418_v59 = vld [vmem:[#allocation19 + $0x324] ss:$8 sps:$4 sm:$0xff]  }
 0x886   :  { %8859 = vmatprep.subr.bf16.mxu0 %v11382_v51  ;;  %v11416_v51 = vld [vmem:[#allocation19 + $0x320] ss:$8 sps:$4 sm:$0xff]  }
 0x887   :  { %8823 = vmatpush2.bf16.msra.mxu1 %v11341_v8  ;;  %v11421_v8 = vld [vmem:[#allocation19 + $0x314] ss:$8 sps:$4 sm:$0xff]  }
 0x888   :  { %8824 = vmatprep.subr.bf16.mxu1 %v11346_v53  ;;  %v11419_v53 = vld [vmem:[#allocation19 + $0x310] ss:$8 sps:$4 sm:$0xff]  }
 0x889   :  { %8860 = vmatpush2.bf16.msra.mxu0 %v11380_v16  ;;  %v11424_v16 = vld [vmem:[#allocation19 + $0x304] ss:$8 sps:$4 sm:$0xff]  }
 0x88a   :  { %8861 = vmatprep.subr.bf16.mxu0 %v11385_v26  ;;  %v11422_v26 = vld [vmem:[#allocation19 + $0x300] ss:$8 sps:$4 sm:$0xff]  }
 0x88b   :  { %8825 = vmatpush2.bf16.msra.mxu1 %v11344_v33  ;;  %v11427_v33 = vld [vmem:[#allocation19 + $0x3f4] ss:$8 sps:$4 sm:$0xff]  }
 0x88c   :  { %8826 = vmatprep.subr.bf16.mxu1 %v11349_v20  ;;  %v11425_v20 = vld [vmem:[#allocation19 + $0x3f0] ss:$8 sps:$4 sm:$0xff]  }
 0x88d   :  { %8862 = vmatpush2.bf16.msra.mxu0 %v11383_v1  ;;  %v11430_v1 = vld [vmem:[#allocation19 + $0x3e4] ss:$8 sps:$4 sm:$0xff]  }
 0x88e   :  { %8863 = vmatprep.subr.bf16.mxu0 %v11388_v25  ;;  %v11428_v25 = vld [vmem:[#allocation19 + $0x3e0] ss:$8 sps:$4 sm:$0xff]  }
 0x88f   :  { %8827 = vmatpush2.bf16.msra.mxu1 %v11347_v62  ;;  %v11433_v62 = vld [vmem:[#allocation19 + $0x3d4] ss:$8 sps:$4 sm:$0xff]  }
 0x890   :  { %8828 = vmatprep.subr.bf16.mxu1 %v11352_v37  ;;  %v11436_v37 = vld [vmem:[#allocation19 + $0x3c4] ss:$8 sps:$4 sm:$0xff]  }
 0x891   :  { %8864 = vmatpush2.bf16.msra.mxu0 %v11386_v38 }
 0x892   :  { %8865 = vmatprep.subr.bf16.mxu0 %v11391_v40  ;;  %v11434_v40 = vld [vmem:[#allocation19 + $0x3c0] ss:$8 sps:$4 sm:$0xff]  }
 0x893   :  { %8829 = vmatpush2.bf16.msra.mxu1 %v11350_v31  ;;  %v11439_v31 = vld [vmem:[#allocation19 + $0x3b4] ss:$8 sps:$4 sm:$0xff]  }
 0x894   :  { %8884 = vmatprep.subr.bf16.mxu1 %v11403_v36  ;;  %v11437_v36 = vld [vmem:[#allocation19 + $0x3b0] ss:$8 sps:$4 sm:$0xff]  }
 0x895   :  { %8866 = vmatpush2.bf16.msra.mxu0 %v11389_v9  ;;  %v11442_v9 = vld [vmem:[#allocation19 + $0x3a4] ss:$8 sps:$4 sm:$0xff]  }
 0x896   :  { %v7770_v35 = vpop.f32.mrf.mxu1  ;;  %8867 = vmatprep.subr.bf16.mxu0 %v11394_v42 }
 0x897   :  { %v7771_v63 = vadd.f32 %v7770_v35, %v7728_v30  ;;  %v7813_v38 = vpop.f32.mrf.mxu0  ;;  %v11445_v35 = vld [vmem:[#allocation19 + $0x394] ss:$8 sps:$4 sm:$0xff]  }
 0x898   :  { %v7772_v52 = vpop.f32.mrf.mxu1 }
 0x899   :  { %8868 = vmatpush2.bf16.msra.mxu0 %v11392_v45  ;;  %v7773_v11 = vadd.f32 %v7772_v52, %v7730_v41  ;;  %v7953_v10 = vmax.f32 %v7771_v63, 0.0  ;;  %v7815_v54 = vpop.f32.mrf.mxu0  ;;  %v6306_v45 = vrot.slane %v12204_v27, %v2083_v61  ;;  %v11446_v61 = vld [vmem:[#allocation19 + $0x380] ss:$8 sps:$4 sm:$0xff]  }
 0x89a   :  { %v7774_v44 = vpop.f32.mrf.mxu1  ;;  %8869 = vmatprep.subr.bf16.mxu0 %v11397_v56  ;;  %v7816_v52 = vadd.f32 %v7815_v54, %v6310_v48 }
 0x89b   :  { %v7775_v47 = vadd.f32 %v7774_v44, %v7732_v46  ;;  %v7954_v5 = vmax.f32 %v7773_v11, 0.0  ;;  %v7817_v42 = vpop.f32.mrf.mxu0  ;;  %v11443_v46 = vld [vmem:[#allocation19 + $0x390] ss:$8 sps:$4 sm:$0xff]   ;;  %v11448_v44 = vld [vmem:[#allocation19 + $0x384] ss:$8 sps:$4 sm:$0xff]  }
 0x89c   :  { %v7776_v0 = vpop.f32.mrf.mxu1  ;;  %v7818_v41 = vadd.f32 %v7817_v42, %v6306_v45 }
 0x89d   :  { %v7777_v2 = vadd.f32 %v7776_v0, %v7734_v50  ;;  %8870 = vmatpush2.bf16.msra.mxu0 %v11395_v49  ;;  %v7961_v3 = vmax.f32 %v7775_v47, 0.0  ;;  %v7819_v56 = vpop.f32.mrf.mxu0  ;;  %v7814_v49 = vadd.f32 %v7813_v38, %v6306_v45 }
 0x89e   :  { %8871 = vmatprep.subr.bf16.mxu0 %v11400_v34  ;;  %v7820_v60 = vadd.f32 %v7819_v56, %v6310_v48 }
 0x89f   :  { %v7962_v6 = vmax.f32 %v7777_v2, 0.0  ;;  %v7969_v19 = vpack.c.bf16 %v7961_v3, %v7953_v10 }
 0x8a1   :  { %v7970_v12 = vpack.c.bf16 %v7962_v6, %v7954_v5  ;;  %8872 = vmatpush2.bf16.msra.mxu0 %v11398_v13 }
 0x8a3   :  { %8830 = vmatprep.mubr.bf16.mxu1 %v7970_v12 }
 0x8a4   :  { %8831 = vmatmul.mubr.bf16.vlgmr.msra.gmra.mxu1 %v7969_v19  ;;  %v6318_v19 = vrot.slane %v12204_v27, %v2095_v58 }
 0x8a5   :  { %8885 = vmatpush1.bf16.msra.mxu1 %v11401_v15 }
 0x8a6   :  { %8886 = vmatprep.subr.bf16.mxu1 %v11406_v29  ;;  %v6314_v29 = vrot.slane %v12204_v27, %v2091_v55 }
 0x8a9   :  { %8887 = vmatpush1.bf16.msra.mxu1 %v11404_v32 }
 0x8aa   :  { %8888 = vmatprep.subr.bf16.mxu1 %v11409_v21 }
 0x8ad   :  { %8889 = vmatpush1.bf16.msra.mxu1 %v11407_v4 }
 0x8ae   :  { %8890 = vmatprep.subr.bf16.mxu1 %v11412_v22 }
 0x8b1   :  { %8891 = vmatpush1.bf16.msra.mxu1 %v11410_v23 }
 0x8b2   :  { %8892 = vmatprep.subr.bf16.mxu1 %v11415_v57 }
 0x8b5   :  { %8893 = vmatpush1.bf16.msra.mxu1 %v11413_v24 }
 0x8b6   :  { %8894 = vmatprep.subr.bf16.mxu1 %v11418_v59 }
 0x8b9   :  { %8895 = vmatpush1.bf16.msra.mxu1 %v11416_v51 }
 0x8ba   :  { %8896 = vmatprep.subr.bf16.mxu1 %v11421_v8 }
 0x8bd   :  { %8897 = vmatpush1.bf16.msra.mxu1 %v11419_v53 }
 0x8be   :  { %8898 = vmatprep.subr.bf16.mxu1 %v11424_v16 }
 0x8c1   :  { %8899 = vmatpush1.bf16.msra.mxu1 %v11422_v26 }
 0x8c2   :  { %8900 = vmatprep.subr.bf16.mxu1 %v11427_v33 }
 0x8c5   :  { %8901 = vmatpush2.bf16.msra.mxu1 %v11425_v20 }
 0x8c6   :  { %8902 = vmatprep.subr.bf16.mxu1 %v11430_v1 }
 0x8c9   :  { %8903 = vmatpush2.bf16.msra.mxu1 %v11428_v25 }
 0x8ca   :  { %8904 = vmatprep.subr.bf16.mxu1 %v11433_v62 }
 0x8cd   :  { %8905 = vmatpush2.bf16.msra.mxu1 %v11431_v28 }
 0x8ce   :  { %8906 = vmatprep.subr.bf16.mxu1 %v11436_v37  ;;  %v8103_v37 = vld [vmem:[#allocation20] sm:$0x3] }
 0x8cf   :  { %v8108_v54 = vrot.slane %v8103_v37, %v11891_v17 }
 0x8d1   :  { %8907 = vmatpush2.bf16.msra.mxu1 %v11434_v40 }
 0x8d2   :  { %8908 = vmatprep.subr.bf16.mxu1 %v11439_v31 }
 0x8d5   :  { %8909 = vmatpush2.bf16.msra.mxu1 %v11437_v36  ;;  %v8112_v36 = vrot.slane %v8103_v37, %v11894_v18 }
 0x8d6   :  { %v7856_v39 = vpop.f32.mrf.mxu1  ;;  %8910 = vmatprep.subr.bf16.mxu1 %v11442_v9 }
 0x8d7   :  { %v7857_v11 = vadd.f32 %v7856_v39, %v7814_v49  ;;  %v7899_v10 = vpop.f32.mrf.mxu0 }
 0x8d8   :  { %v7858_v7 = vpop.f32.mrf.mxu1  ;;  %v7900_v57 = vadd.f32 %v7899_v10, %v6314_v29 }
 0x8d9   :  { %8911 = vmatpush2.bf16.msra.mxu1 %v11440_v43  ;;  %v7859_v34 = vadd.f32 %v7858_v7, %v7816_v52  ;;  %v7955_v3 = vmax.f32 %v7857_v11, 0.0  ;;  %v7901_v12 = vpop.f32.mrf.mxu0 }
 0x8da   :  { %v7860_v30 = vpop.f32.mrf.mxu1  ;;  %8912 = vmatprep.subr.bf16.mxu1 %v11445_v35  ;;  %v7902_v22 = vadd.f32 %v7901_v12, %v6318_v19 }
 0x8db   :  { %v7861_v50 = vadd.f32 %v7860_v30, %v7818_v41  ;;  %v7956_v2 = vmax.f32 %v7859_v34, 0.0  ;;  %v7903_v15 = vpop.f32.mrf.mxu0 }
 0x8dc   :  { %v7862_v47 = vpop.f32.mrf.mxu1  ;;  %v7904_v23 = vadd.f32 %v7903_v15, %v6314_v29 }
 0x8dd   :  { %v7863_v63 = vadd.f32 %v7862_v47, %v7820_v60  ;;  %8913 = vmatpush2.bf16.msra.mxu1 %v11443_v46  ;;  %v7963_v0 = vmax.f32 %v7861_v50, 0.0  ;;  %v7905_v21 = vpop.f32.mrf.mxu0 }
 0x8de   :  { %8914 = vmatprep.subr.bf16.mxu1 %v11448_v44  ;;  %v7906_v59 = vadd.f32 %v7905_v21, %v6318_v19 }
 0x8df   :  { %v7964_v13 = vmax.f32 %v7863_v63, 0.0  ;;  %v7971_v6 = vpack.c.bf16 %v7963_v0, %v7955_v3 }
 0x8e1   :  { %v7972_v5 = vpack.c.bf16 %v7964_v13, %v7956_v2  ;;  %8915 = vmatpush2.bf16.msra.mxu1 %v11446_v61 }
 0x8e3   :  { %8873 = vmatprep.mubr.bf16.mxu0 %v7972_v5 }
 0x8e4   :  { %8874 = vmatmul.mubr.bf16.vlgmr.msra.gmra.mxu0 %v7971_v6 }
 0x916   :  { %v7942_v32 = vpop.f32.mrf.mxu1 }
 0x917   :  { %v7943_v53 = vadd.f32 %v7942_v32, %v7900_v57 }
 0x918   :  { %v7944_v4 = vpop.f32.mrf.mxu1 }
 0x919   :  { %v7945_v51 = vadd.f32 %v7944_v4, %v7902_v22  ;;  %v7957_v1 = vmax.f32 %v7943_v53, 0.0 }
 0x91a   :  { %v7946_v24 = vpop.f32.mrf.mxu1 }
 0x91b   :  { %v7947_v8 = vadd.f32 %v7946_v24, %v7904_v23  ;;  %v7958_v20 = vmax.f32 %v7945_v51, 0.0 }
 0x91c   :  { %v7948_v16 = vpop.f32.mrf.mxu1 }
 0x91d   :  { %v7949_v26 = vadd.f32 %v7948_v16, %v7906_v59  ;;  %v7965_v33 = vmax.f32 %v7947_v8, 0.0 }
 0x91f   :  { %v7966_v58 = vmax.f32 %v7949_v26, 0.0  ;;  %v7973_v25 = vpack.c.bf16 %v7965_v33, %v7957_v1 }
 0x921   :  { %v7974_v14 = vpack.c.bf16 %v7966_v58, %v7958_v20 }
 0x923   :  { %8916 = vmatprep.mubr.bf16.mxu1 %v7974_v14 }
 0x924   :  { %8917 = vmatmul.mubr.bf16.vlgmr.msra.gmra.mxu1 %v7973_v25  ;;  %v8789_v55 = vpop.f32.mrf.mxu0 }
 0x925   :  { %v8790_v48 = vadd.f32 %v8789_v55, %v8108_v54 }
 0x926   :  { %v8791_v27 = vpop.f32.mrf.mxu0 }
 0x927   :  { %v8792_v43 = vadd.f32 %v8791_v27, %v8112_v36 }
 0x928   :  { %v8793_v62 = vpop.f32.mrf.mxu0 }
 0x929   :  { %v8794_v56 = vadd.f32 %v8793_v62, %v8108_v54 }
 0x92a   :  { %v8795_v38 = vpop.f32.mrf.mxu0 }
 0x92b   :  { %v8796_v46 = vadd.f32 %v8795_v38, %v8112_v36 }
 0x964   :  { %v8832_v28 = vpop.f32.mrf.mxu1 }
 0x965   :  { %v8833_v45 = vadd.f32 %v8832_v28, %v8790_v48 }
 0x966   :  { %v8834_v40 = vpop.f32.mrf.mxu1 }
 0x967   :  { %v8835_v7 = vadd.f32 %v8834_v40, %v8792_v43 }
 0x968   :  { %v8836_v9 = vpop.f32.mrf.mxu1 }
 0x969   :  { %v8837_v49 = vadd.f32 %v8836_v9, %v8794_v56 }
 0x96a   :  { %v8838_v39 = vpop.f32.mrf.mxu1 }
 0x96b   :  { %v8839_v17 = vadd.f32 %v8838_v39, %v8796_v46 }
 0x9a4   :  { %v8875_v31 = vpop.f32.mrf.mxu0 }
 0x9a5   :  { %v8876_v52 = vadd.f32 %v8875_v31, %v8833_v45 }
 0x9a6   :  { %v8877_v42 = vpop.f32.mrf.mxu0 }
 0x9a7   :  { %v8878_v30 = vadd.f32 %v8877_v42, %v8835_v7 }
 0x9a8   :  { %v8879_v35 = vpop.f32.mrf.mxu0 }
 0x9a9   :  { %v8880_v50 = vadd.f32 %v8879_v35, %v8837_v49 }
 0x9aa   :  { %v8881_v60 = vpop.f32.mrf.mxu0 }
 0x9ab   :  { %v8882_v47 = vadd.f32 %v8881_v60, %v8839_v17 }
 0x9e4   :  { %v8918_v41 = vpop.f32.mrf.mxu1 }
 0x9e5   :  { %v8919_v44 = vadd.f32 %v8918_v41, %v8876_v52 }
 0x9e6   :  { %v8920_v34 = vpop.f32.mrf.mxu1 }
 0x9e7   :  { %8927 = vst [vmem:[#allocation22] sm:$0xff] %v8919_v44  ;;  %v8921_v18 = vadd.f32 %v8920_v34, %v8878_v30 }
 0x9e8   :  { %v8922_v11 = vpop.f32.mrf.mxu1 }
 0x9e9   :  { %8928 = vst [vmem:[#allocation22 + $0x8] sm:$0xff] %v8921_v18  ;;  %v8923_v63 = vadd.f32 %v8922_v11, %v8880_v50 }
 0x9ea   :  { %v8924_v61 = vpop.f32.mrf.mxu1 }
 0x9eb   :  { %8929 = vst [vmem:[#allocation22 + $0x10] sm:$0xff] %v8923_v63  ;;  %v8925_v0 = vadd.f32 %v8924_v61, %v8882_v47 }
 0x9ed   :  { %8930 = vst [vmem:[#allocation22 + $0x18] sm:$0xff] %v8925_v0 }
 0x9ee   :  { %11709 = shalt.err (!%p11706_p8)
}
 0x9ef   :  { %8942 = dma.vmem_to_hbm [thread:$0]  %s8937_s5, 512, %s12248_s13, [#allocation4], %s11743_s10, %s11743_s10, %s11744_s22  }
 0x9f0   :  { %11732 = dma.done.wait [#allocation4], 512  }
 0x9f1   :  { %11733 = vsyncadd [#allocation4], 4294966784 }
 0x9f2   :  { %8946 = vsyncpa [#allocation3], 1 }
 0x9f3   :  { %8947 = vsyncpa [#allocation6], 1 }
 0x9f4   :  { %8948 = vsyncpa [#allocation9], 1 }
 0x9f5   :  { %8949 = vsyncpa [#allocation12], 1 }
 0x9f6   :  { %8950 = vsyncpa [#allocation15], 1 }
 0x9f7   :  { %8951 = vsyncpa [#allocation18], 1 }
 0x9f8   :  { %8952 = vsyncpa [#allocation21], 1 }
 0x9f9   :  { %8953 = vsyncpa [#allocation4], 1 }

</bundles_post_ra>
